<compile_context>
chip_gen: v5e
topology: v5e:2x2
jax: 0.10.0
libtpu: 0.0.40
codegen_flags: <defaults>
</compile_context>

<pallas_src>
import functools
import math

import jax
import jax.numpy as jnp
from jax.experimental import pallas as pl
from jax.experimental.pallas import tpu as pltpu

LANE = 128      # TPU vreg lane width
SUBLANE = 8     # TPU vreg sublane count


def _round_up(x, m):
    return (x + m - 1) // m * m


# ----------------------------------------------------------------------------
# Pallas kernel: one GRU layer, both directions fused.
#
# grid = (num_dirs, num_time_chunks)
#   axis 0 (direction): independent recurrences -> "parallel"
#   axis 1 (time chunk): sequential through h_scr  -> "arbitrary"
#
# Per grid step:
#   1. gi = x_chunk @ W_ih + folded biases  (one MXU-friendly chunk matmul
#      into VMEM scratch -- no HBM round trip for gi)
#   2. serial loop over the chunk: gh = h @ W_hh (bf16 MXU, f32 acc) + gates.
# ----------------------------------------------------------------------------
def gru_layer_kernel(lens_ref, x_ref, wih_ref, bgi_ref, whh_ref, bhn_ref,
                     out_ref, hf_ref, gi_scr, h_scr,
                     *, chunk, hidden, hidden_pad, batch_pad):
    H, Hp, Bp = hidden, hidden_pad, batch_pad
    d = pl.program_id(0)                # direction: 0 = forward, 1 = backward
    c = pl.program_id(1)                # chunk index in processing order
    nc = pl.num_programs(1)
    c_stor = c + d * (nc - 1 - 2 * c)   # chunk index in storage (forward) order

    @pl.when(c == 0)
    def _():
        # h0 is always zero (module is called with hidden=None).
        h_scr[...] = jnp.zeros_like(h_scr)

    # ---- fused input projection for the whole chunk (parallel over rows) ----
    # x_ref: (chunk*Bp, Din) bf16; wih: (Din, Gp) bf16; accumulate in f32.
    gi_scr[...] = jnp.dot(x_ref[...], wih_ref[0],
                          preferred_element_type=jnp.float32) + bgi_ref[0]

    whh = whh_ref[0]                    # (Hp, Gp) bf16
    bhn = bhn_ref[0]                    # (1, Gp)  f32, b_hh(n) at cols [2H:3H)
    lens = lens_ref[...]                # (Bp, 1)  int32
    if Hp > H:
        zpad = jnp.zeros((Bp, Hp - H), jnp.float32)

    h = h_scr[...]                      # (Bp, Hp) f32, cols [H:) stay zero
    # Static unroll over the chunk (serial dependence through h).  Per-step
    # live state is ~2 vregs, so pressure stays far below the 64-vreg file at
    # chunk<=32; switch to lax.fori_loop(..., unroll=4) if a bundle dump ever
    # shows spill traffic at larger chunks.
    for j in range(chunk):
        jj = j + d * (chunk - 1 - 2 * j)      # storage-order step inside chunk
        row = pl.multiple_of(jj * Bp, Bp)
        gi = gi_scr[pl.ds(row, Bp), :]        # (Bp, Gp) f32
        gh = jnp.dot(h.astype(jnp.bfloat16), whh,
                     preferred_element_type=jnp.float32) + bhn
        s = jax.nn.sigmoid(gi + gh)           # r at cols [0:H), z at [H:2H)
        r = s[:, 0:H]
        z = s[:, H:2 * H]
        n = jnp.tanh(gi[:, 2 * H:3 * H] + r * gh[:, 2 * H:3 * H])
        h_prev = h[:, 0:H]
        h_new = n + z * (h_prev - n)          # == (1 - z) * n + z * h
        # pack_padded_sequence semantics: t >= length[b] carries h, emits 0.
        valid = lens > (c_stor * chunk + jj)  # (Bp, 1) bool
        h_keep = jnp.where(valid, h_new, h_prev)
        if Hp > H:
            h = jnp.concatenate([h_keep, zpad], axis=-1)
        else:
            h = h_keep
        out_ref[pl.ds(row, Bp), :] = jnp.where(valid, h, 0.0).astype(out_ref.dtype)

    h_scr[...] = h

    @pl.when(c == nc - 1)
    def _():
        hf_ref[0] = h


def run_gru_layer(lens_col, x2d, w_ih, b_gi, w_hh, b_hn, *,
                  t_pad, bp, chunk, hidden, hidden_pad, gate_pad, num_dirs):
    """x2d: (Tpad*Bp, Din) bf16 layer input (storage order, shared by both dirs).
       Returns out2d (Tpad*Bp, ND*Hp) bf16 and h_final (ND, Bp, Hp) f32."""
    nc = t_pad // chunk
    din = x2d.shape[1]
    Hp, Gp = hidden_pad, gate_pad

    kernel = functools.partial(
        gru_layer_kernel, chunk=chunk, hidden=hidden, hidden_pad=Hp,
        batch_pad=bp)

    out2d, h_fin = pl.pallas_call(
        kernel,
        out_shape=(
            jax.ShapeDtypeStruct((t_pad * bp, num_dirs * Hp), jnp.bfloat16),
            jax.ShapeDtypeStruct((num_dirs, bp, Hp), jnp.float32),
        ),
        grid_spec=pltpu.PrefetchScalarGridSpec(
            num_scalar_prefetch=0,
            grid=(num_dirs, nc),
            in_specs=[
                pl.BlockSpec((bp, 1), lambda d, c: (0, 0)),              # lengths
                pl.BlockSpec((chunk * bp, din),                          # x chunk
                             lambda d, c: (c + d * (nc - 1 - 2 * c), 0)),
                pl.BlockSpec((1, din, Gp), lambda d, c: (d, 0, 0)),      # W_ih
                pl.BlockSpec((1, 1, Gp), lambda d, c: (d, 0, 0)),        # folded b
                pl.BlockSpec((1, Hp, Gp), lambda d, c: (d, 0, 0)),       # W_hh
                pl.BlockSpec((1, 1, Gp), lambda d, c: (d, 0, 0)),        # b_hh(n)
            ],
            out_specs=[
                pl.BlockSpec((chunk * bp, Hp),                           # outputs
                             lambda d, c: (c + d * (nc - 1 - 2 * c), d)),
                pl.BlockSpec((1, bp, Hp), lambda d, c: (d, 0, 0)),       # final h
            ],
            scratch_shapes=[
                pltpu.VMEM((chunk * bp, Gp), jnp.float32),   # gi for one chunk
                pltpu.VMEM((bp, Hp), jnp.float32),           # recurrent h carry
            ],
        ),
        compiler_params=pltpu.CompilerParams(
            # direction axis independent ("parallel"; candidate for
            # CORE_PARALLEL on v7x's two TCs), time chunks sequential.
            dimension_semantics=("parallel", "arbitrary")),
    )(lens_col, x2d, w_ih, b_gi, w_hh, b_hn)
    return out2d, h_fin


# ----------------------------------------------------------------------------
# EncoderRNN forward (embedding lookup + multilayer bidirectional GRU)
# ----------------------------------------------------------------------------
def encoder_rnn_forward(params, input_seqs, input_lengths, *, hidden_size,
                        n_layers, bidirectional, time_chunk=32):
    H = hidden_size
    Hp = _round_up(H, LANE)
    Gp = _round_up(3 * H, LANE)
    ND = 2 if bidirectional else 1

    # frozen embedding lookup (gather) -- plain-JAX glue
    emb = jnp.take(params["embedding"], input_seqs, axis=0)       # (T, B, E)
    T, B, E = emb.shape
    Bp = _round_up(B, SUBLANE)
    Ep = _round_up(E, LANE)

    chunk = max(1, min(time_chunk, T))
    if (chunk * Bp) % 16:            # keep bf16 sublane tiling (16) happy
        chunk += 1
    nc = -(-T // chunk)
    Tpad = nc * chunk

    # layer-0 input, padded & flattened to (Tpad*Bp, Ep) in bf16 (MXU-native)
    x0 = jnp.zeros((Tpad, Bp, Ep), jnp.bfloat16)
    x0 = x0.at[:T, :B, :E].set(emb.astype(jnp.bfloat16))
    x = x0.reshape(Tpad * Bp, Ep)

    # per-row sequence lengths (replaces the old (ND, Tpad, Bp, 1) mask stream)
    lens_col = jnp.zeros((Bp, 1), jnp.int32).at[:B, 0].set(
        input_lengths.astype(jnp.int32))

    finals = []
    out2d = None
    for layer in range(n_layers):
        lw = params["gru"][layer]
        out2d, h_fin = run_gru_layer(
            lens_col, x, lw["w_ih"], lw["b_gi"], lw["w_hh"], lw["b_hn"],
            t_pad=Tpad, bp=Bp, chunk=chunk, hidden=H, hidden_pad=Hp,
            gate_pad=Gp, num_dirs=ND)
        for dd in range(ND):
            finals.append(h_fin[dd])
        # next layer consumes the bf16 (Tpad*Bp, ND*Hp) output directly:
        # no flip / concat / dtype pass in between.
        x = out2d
        # TODO(synk): inter-layer dropout (p=0.1) is training-only in PyTorch;
        # eval-mode forward applies no dropout, so it is omitted here.

    out3d = out2d.reshape(Tpad, Bp, ND * Hp)
    fwd = out3d[:T, :B, 0:H].astype(jnp.float32)
    if bidirectional:
        bwd = out3d[:T, :B, Hp:Hp + H].astype(jnp.float32)
        output = fwd + bwd                         # final bidirectional sum
    else:
        output = fwd
    hidden = jnp.stack(finals, axis=0)[:, :B, :H]  # (n_layers*ND, B, H) f32
    return output, hidden


# ----------------------------------------------------------------------------
# Parameters: PyTorch-style logical weights packed into the compact,
# lane-aligned kernel layout (gates contiguous, weights in bf16).
# ----------------------------------------------------------------------------
def make_params(key, vocab_size, hidden_size, n_layers, bidirectional):
    E = hidden_size + 100
    H = hidden_size
    Hp = _round_up(H, LANE)
    Gp = _round_up(3 * H, LANE)
    Ep = _round_up(E, LANE)
    ND = 2 if bidirectional else 1
    k = 1.0 / math.sqrt(H)
    keys = jax.random.split(key, 1 + 4 * n_layers * ND)
    ki = iter(keys)

    embedding = jax.random.normal(next(ki), (vocab_size, E), jnp.float32)
    params = {"embedding": embedding}

    gru, gru_ref = [], []
    for layer in range(n_layers):
        d_in_log = E if layer == 0 else H * ND
        d_in_pad = Ep if layer == 0 else Hp * ND
        w_ih_d, b_gi_d, w_hh_d, b_hn_d, ref_d = [], [], [], [], []
        for _ in range(ND):
            # logical params (stored transposed vs PyTorch: (D_in, 3H) / (H, 3H))
            w_ih = jax.random.uniform(next(ki), (d_in_log, 3 * H), jnp.float32, -k, k)
            w_hh = jax.random.uniform(next(ki), (H, 3 * H), jnp.float32, -k, k)
            b_ih = jax.random.uniform(next(ki), (3 * H,), jnp.float32, -k, k)
            b_hh = jax.random.uniform(next(ki), (3 * H,), jnp.float32, -k, k)
            ref_d.append({"w_ih": w_ih, "w_hh": w_hh, "b_ih": b_ih, "b_hh": b_hh})

            # ---- pack into the compact padded layout ----
            wip = jnp.zeros((d_in_pad, Gp), jnp.float32)
            if layer == 0:
                wip = wip.at[:E, :3 * H].set(w_ih)
            else:
                # previous layer's output: dir di occupies columns [di*Hp, di*Hp+H)
                for di in range(ND):
                    wip = wip.at[di * Hp:di * Hp + H, :3 * H].set(
                        w_ih[di * H:(di + 1) * H, :])
            # fold b_ih (all gates) + b_hh (r, z gates) into the gi bias;
            # b_hh(n) must stay inside r*(.) and is applied in-kernel.
            b_fold = jnp.concatenate([
                b_ih[0:2 * H] + b_hh[0:2 * H],
                b_ih[2 * H:3 * H],
            ])
            b_gi_p = jnp.zeros((1, Gp), jnp.float32).at[0, :3 * H].set(b_fold)
            w_hh_p = jnp.zeros((Hp, Gp), jnp.float32).at[:H, :3 * H].set(w_hh)
            b_hn_p = jnp.zeros((1, Gp), jnp.float32).at[0, 2 * H:3 * H].set(
                b_hh[2 * H:3 * H])

            w_ih_d.append(wip.astype(jnp.bfloat16))
            b_gi_d.append(b_gi_p)
            w_hh_d.append(w_hh_p.astype(jnp.bfloat16))
            b_hn_d.append(b_hn_p)

        gru.append({
            "w_ih": jnp.stack(w_ih_d, axis=0),    # (ND, D_in_pad, Gp) bf16
            "b_gi": jnp.stack(b_gi_d, axis=0),    # (ND, 1, Gp)        f32
            "w_hh": jnp.stack(w_hh_d, axis=0),    # (ND, Hp, Gp)       bf16
            "b_hn": jnp.stack(b_hn_d, axis=0),    # (ND, 1, Gp)        f32
        })
        gru_ref.append(ref_d)
    params["gru"] = gru
    return params, gru_ref


# ----------------------------------------------------------------------------
# Pure-JAX step-by-step f32 reference (unpadded) for a correctness check.
# ----------------------------------------------------------------------------
def encoder_rnn_reference(ref_params, embedding, input_seqs, input_lengths, *,
                          hidden_size, n_layers, bidirectional):
    H = hidden_size
    emb = jnp.take(embedding, input_seqs, axis=0)
    T, B, _ = emb.shape
    num_dirs = 2 if bidirectional else 1
    lens = input_lengths.astype(jnp.int32)

    def cell(x, h, p):
        gi = x @ p["w_ih"] + p["b_ih"]
        gh = h @ p["w_hh"] + p["b_hh"]
        r = jax.nn.sigmoid(gi[:, :H] + gh[:, :H])
        z = jax.nn.sigmoid(gi[:, H:2 * H] + gh[:, H:2 * H])
        n = jnp.tanh(gi[:, 2 * H:] + r * gh[:, 2 * H:])
        return (1.0 - z) * n + z * h

    layer_in = emb
    finals = []
    for layer in range(n_layers):
        outs = []
        for d in range(num_dirs):
            p = ref_params[layer][d]
            h = jnp.zeros((B, H), jnp.float32)
            out = jnp.zeros((T, B, H), jnp.float32)
            order = range(T) if d == 0 else range(T - 1, -1, -1)
            for t in order:
                h_new = cell(layer_in[t], h, p)
                valid = (t < lens)[:, None]
                h = jnp.where(valid, h_new, h)
                out = out.at[t].set(jnp.where(valid, h, 0.0))
            outs.append(out)
            finals.append(h)
        layer_in = jnp.concatenate(outs, axis=-1) if num_dirs == 2 else outs[0]
    output = layer_in
    if bidirectional:
        output = output[:, :, :H] + output[:, :, H:]
    return output, jnp.stack(finals, axis=0)


if __name__ == "__main__":
    vocab_size = 20
    hidden_size = 32
    n_layers = 2
    bidirectional = True
    T, B = 8, 2

    key = jax.random.PRNGKey(0)
    kp, ks = jax.random.split(key)
    params, ref_params = make_params(kp, vocab_size, hidden_size, n_layers,
                                     bidirectional)

    input_seqs = jax.random.randint(ks, (T, B), 0, vocab_size, dtype=jnp.int32)
    # pack_padded_sequence requires lengths sorted in decreasing order
    input_lengths = jnp.array([8, 5], dtype=jnp.int32)

    fwd = jax.jit(functools.partial(
        encoder_rnn_forward, hidden_size=hidden_size, n_layers=n_layers,
        bidirectional=bidirectional))
    output, hidden = fwd(params, input_seqs, input_lengths)
    jax.block_until_ready((output, hidden))

    assert output.shape == (T, B, hidden_size)
    assert hidden.shape == (n_layers * 2, B, hidden_size)

    # Sanity-check against the pure-f32 reference.  Tolerance covers the
    # deliberate bf16 MXU-operand / weight / inter-layer-stream rounding
    # accumulated over T serial steps (typical max error ~1e-2 at these sizes).
    ref_out, ref_hid = encoder_rnn_reference(
        ref_params, params["embedding"], input_seqs, input_lengths,
        hidden_size=hidden_size, n_layers=n_layers, bidirectional=bidirectional)
    err_o = float(jnp.max(jnp.abs(output - ref_out)))
    err_h = float(jnp.max(jnp.abs(hidden - ref_hid)))
    assert err_o < 5e-2 and err_h < 5e-2, (err_o, err_h)

    print("KERNEL_OK")
</pallas_src>

<mosaic_0001>
module attributes {stable_mosaic.version = 11 : i64} {
  func.func @gru_layer_kernel(%arg0: i32, %arg1: i32, %arg2: memref<8x1xi32, #tpu.memory_space<vmem>>, %arg3: memref<64x256xbf16, #tpu.memory_space<vmem>>, %arg4: memref<1x256x128xbf16, #tpu.memory_space<vmem>>, %arg5: memref<1x1x128xf32, #tpu.memory_space<vmem>>, %arg6: memref<1x128x128xbf16, #tpu.memory_space<vmem>>, %arg7: memref<1x1x128xf32, #tpu.memory_space<vmem>>, %arg8: memref<64x128xbf16, #tpu.memory_space<vmem>>, %arg9: memref<1x8x128xf32, #tpu.memory_space<vmem>>, %arg10: memref<64x128xf32, #tpu.memory_space<vmem>>, %arg11: memref<8x128xf32, #tpu.memory_space<vmem>>) attributes {dimension_semantics = [#tpu.dimension_semantics<parallel>, #tpu.dimension_semantics<arbitrary>], iteration_bounds = array<i64: 2, 1>, scalar_prefetch = 0 : i64, scratch_operands = 2 : i64, tpu.core_type = #tpu.core_type<tc>, window_params = [{pipeline_mode = #tpu.pipeline_mode<synchronous>, transform_indices = @transform_0, window_bounds = array<i64: 8, 1>}, {transform_indices = @transform_1, window_bounds = array<i64: 64, 256>}, {transform_indices = @transform_2, window_bounds = array<i64: 1, 256, 128>}, {transform_indices = @transform_3, window_bounds = array<i64: 1, 1, 128>}, {transform_indices = @transform_4, window_bounds = array<i64: 1, 128, 128>}, {transform_indices = @transform_5, window_bounds = array<i64: 1, 1, 128>}, {transform_indices = @transform_6, window_bounds = array<i64: 64, 128>}, {transform_indices = @transform_7, window_bounds = array<i64: 1, 8, 128>}]} {
    %c2_i32 = arith.constant 2 : i32
    %0 = arith.muli %c2_i32, %arg1 : i32
    %c0_i32 = arith.constant 0 : i32
    %1 = arith.subi %c0_i32, %0 : i32
    %2 = arith.muli %arg0, %1 : i32
    %3 = arith.addi %arg1, %2 : i32
    %c0_i32_0 = arith.constant 0 : i32
    %4 = arith.cmpi eq, %arg1, %c0_i32_0 : i32
    %5 = arith.extui %4 : i1 to i32
    %c0_i32_1 = arith.constant 0 : i32
    %6 = arith.cmpi ne, %5, %c0_i32_1 : i32
    scf.if %6 {
      %cst_87 = arith.constant 0.000000e+00 : f32
      %363 = vector.broadcast %cst_87 : f32 to vector<8x128xf32>
      %c0_88 = arith.constant 0 : index
      %c0_89 = arith.constant 0 : index
      %364 = vector.load %arg11[%c0_88, %c0_89] : memref<8x128xf32, #tpu.memory_space<vmem>>, vector<8x128xf32>
      tpu.vector_store %arg11[%c0_88, %c0_89], %363 {strides = array<i32>} : memref<8x128xf32, #tpu.memory_space<vmem>>, vector<8x128xf32>,
    } else {
    }
    %c0 = arith.constant 0 : index
    %c0_2 = arith.constant 0 : index
    %7 = vector.load %arg3[%c0, %c0_2] : memref<64x256xbf16, #tpu.memory_space<vmem>>, vector<64x256xbf16>
    %c0_3 = arith.constant 0 : index
    %c0_4 = arith.constant 0 : index
    %c0_5 = arith.constant 0 : index
    %8 = vector.load %arg4[%c0_3, %c0_4, %c0_5] : memref<1x256x128xbf16, #tpu.memory_space<vmem>>, vector<1x256x128xbf16>
    %9 = vector.shape_cast %8 : vector<1x256x128xbf16> to vector<256x128xbf16>
    %cst = arith.constant dense<0.000000e+00> : vector<64x128xf32>
    %10 = tpu.matmul %7, %9, %cst {dimension_numbers = #tpu.dot_dimension_numbers<[1], [0], [0], [1], [0, 0, 1, 1], [], []>} : vector<64x256xbf16>, vector<256x128xbf16>, vector<64x128xf32> -> vector<64x128xf32>
    %c0_6 = arith.constant 0 : index
    %c0_7 = arith.constant 0 : index
    %c0_8 = arith.constant 0 : index
    %11 = vector.load %arg5[%c0_6, %c0_7, %c0_8] : memref<1x1x128xf32, #tpu.memory_space<vmem>>, vector<1x1x128xf32>
    %12 = vector.shape_cast %11 : vector<1x1x128xf32> to vector<1x128xf32>
    %13 = vector.broadcast %12 : vector<1x128xf32> to vector<64x128xf32>
    %14 = arith.addf %10, %13 : vector<64x128xf32>
    %c0_9 = arith.constant 0 : index
    %c0_10 = arith.constant 0 : index
    %15 = vector.load %arg10[%c0_9, %c0_10] : memref<64x128xf32, #tpu.memory_space<vmem>>, vector<64x128xf32>
    tpu.vector_store %arg10[%c0_9, %c0_10], %14 {strides = array<i32>} : memref<64x128xf32, #tpu.memory_space<vmem>>, vector<64x128xf32>,
    %c0_11 = arith.constant 0 : index
    %c0_12 = arith.constant 0 : index
    %c0_13 = arith.constant 0 : index
    %16 = vector.load %arg6[%c0_11, %c0_12, %c0_13] : memref<1x128x128xbf16, #tpu.memory_space<vmem>>, vector<1x128x128xbf16>
    %17 = vector.shape_cast %16 : vector<1x128x128xbf16> to vector<128x128xbf16>
    %c0_14 = arith.constant 0 : index
    %c0_15 = arith.constant 0 : index
    %c0_16 = arith.constant 0 : index
    %18 = vector.load %arg7[%c0_14, %c0_15, %c0_16] : memref<1x1x128xf32, #tpu.memory_space<vmem>>, vector<1x1x128xf32>
    %19 = vector.shape_cast %18 : vector<1x1x128xf32> to vector<1x128xf32>
    %c0_17 = arith.constant 0 : index
    %c0_18 = arith.constant 0 : index
    %20 = vector.load %arg2[%c0_17, %c0_18] : memref<8x1xi32, #tpu.memory_space<vmem>>, vector<8x1xi32>
    %cst_19 = arith.constant 0.000000e+00 : f32
    %21 = vector.broadcast %cst_19 : f32 to vector<8x96xf32>
    %c0_20 = arith.constant 0 : index
    %c0_21 = arith.constant 0 : index
    %22 = vector.load %arg11[%c0_20, %c0_21] : memref<8x128xf32, #tpu.memory_space<vmem>>, vector<8x128xf32>
    %c7_i32 = arith.constant 7 : i32
    %23 = arith.muli %arg0, %c7_i32 : i32
    %c0_i32_22 = arith.constant 0 : i32
    %24 = arith.addi %c0_i32_22, %23 : i32
    %c8_i32 = arith.constant 8 : i32
    %25 = arith.muli %24, %c8_i32 : i32
    %26 = tpu.assume_multiple %25, 8 : i32
    %27 = arith.index_cast %26 : i32 to index
    %c0_23 = arith.constant 0 : index
    %28 = vector.load %arg10[%27, %c0_23] : memref<64x128xf32, #tpu.memory_space<vmem>>, vector<8x128xf32>
    %29 = arith.truncf %22 : vector<8x128xf32> to vector<8x128xbf16>
    %cst_24 = arith.constant dense<0.000000e+00> : vector<8x128xf32>
    %30 = tpu.matmul %29, %17, %cst_24 {dimension_numbers = #tpu.dot_dimension_numbers<[1], [0], [0], [1], [0, 0, 1, 1], [], []>} : vector<8x128xbf16>, vector<128x128xbf16>, vector<8x128xf32> -> vector<8x128xf32>
    %31 = vector.broadcast %19 : vector<1x128xf32> to vector<8x128xf32>
    %32 = arith.addf %30, %31 : vector<8x128xf32>
    %33 = arith.addf %28, %32 : vector<8x128xf32>
    %34 = arith.negf %33 : vector<8x128xf32>
    %35 = math.exp %34 : vector<8x128xf32>
    %cst_25 = arith.constant 1.000000e+00 : f32
    %36 = vector.broadcast %cst_25 : f32 to vector<8x128xf32>
    %37 = arith.addf %36, %35 : vector<8x128xf32>
    %38 = arith.divf %36, %37 : vector<8x128xf32>
    %39 = vector.extract_strided_slice %38 {offsets = [0, 0], sizes = [8, 32], strides = [1, 1]} : vector<8x128xf32> to vector<8x32xf32>
    %40 = vector.extract_strided_slice %38 {offsets = [0, 32], sizes = [8, 32], strides = [1, 1]} : vector<8x128xf32> to vector<8x32xf32>
    %41 = vector.extract_strided_slice %28 {offsets = [0, 64], sizes = [8, 32], strides = [1, 1]} : vector<8x128xf32> to vector<8x32xf32>
    %42 = vector.extract_strided_slice %32 {offsets = [0, 64], sizes = [8, 32], strides = [1, 1]} : vector<8x128xf32> to vector<8x32xf32>
    %43 = arith.mulf %39, %42 : vector<8x32xf32>
    %44 = arith.addf %41, %43 : vector<8x32xf32>
    %45 = math.tanh %44 : vector<8x32xf32>
    %46 = vector.extract_strided_slice %22 {offsets = [0, 0], sizes = [8, 32], strides = [1, 1]} : vector<8x128xf32> to vector<8x32xf32>
    %47 = arith.subf %46, %45 : vector<8x32xf32>
    %48 = arith.mulf %40, %47 : vector<8x32xf32>
    %49 = arith.addf %45, %48 : vector<8x32xf32>
    %c8_i32_26 = arith.constant 8 : i32
    %50 = arith.muli %3, %c8_i32_26 : i32
    %51 = arith.addi %50, %24 : i32
    %52 = vector.broadcast %51 : i32 to vector<8x1xi32>
    %53 = arith.cmpi sgt, %20, %52 : vector<8x1xi32>
    %54 = vector.shape_cast %53 : vector<8x1xi1> to vector<8x1xi1>
    %55 = vector.broadcast %54 : vector<8x1xi1> to vector<8x32xi1>
    %56 = arith.select %55, %49, %46 : vector<8x32xi1>, vector<8x32xf32>
    %57 = tpu.concatenate %56, %21 in 1 : vector<8x32xf32>, vector<8x96xf32> -> vector<8x128xf32>
    %cst_27 = arith.constant 0.000000e+00 : f32
    %58 = vector.shape_cast %53 : vector<8x1xi1> to vector<8x1xi1>
    %59 = vector.broadcast %58 : vector<8x1xi1> to vector<8x128xi1>
    %60 = vector.broadcast %cst_27 : f32 to vector<8x128xf32>
    %61 = arith.select %59, %57, %60 : vector<8x128xi1>, vector<8x128xf32>
    %62 = arith.truncf %61 : vector<8x128xf32> to vector<8x128xbf16>
    %63 = arith.index_cast %26 : i32 to index
    %c0_28 = arith.constant 0 : index
    %64 = vector.load %arg8[%63, %c0_28] : memref<64x128xbf16, #tpu.memory_space<vmem>>, vector<8x128xbf16>
    tpu.vector_store %arg8[%63, %c0_28], %62 {strides = array<i32>} : memref<64x128xbf16, #tpu.memory_space<vmem>>, vector<8x128xbf16>,
    %c5_i32 = arith.constant 5 : i32
    %65 = arith.muli %arg0, %c5_i32 : i32
    %c1_i32 = arith.constant 1 : i32
    %66 = arith.addi %c1_i32, %65 : i32
    %c8_i32_29 = arith.constant 8 : i32
    %67 = arith.muli %66, %c8_i32_29 : i32
    %68 = tpu.assume_multiple %67, 8 : i32
    %69 = arith.index_cast %68 : i32 to index
    %c0_30 = arith.constant 0 : index
    %70 = vector.load %arg10[%69, %c0_30] : memref<64x128xf32, #tpu.memory_space<vmem>>, vector<8x128xf32>
    %71 = arith.truncf %57 : vector<8x128xf32> to vector<8x128xbf16>
    %cst_31 = arith.constant dense<0.000000e+00> : vector<8x128xf32>
    %72 = tpu.matmul %71, %17, %cst_31 {dimension_numbers = #tpu.dot_dimension_numbers<[1], [0], [0], [1], [0, 0, 1, 1], [], []>} : vector<8x128xbf16>, vector<128x128xbf16>, vector<8x128xf32> -> vector<8x128xf32>
    %73 = vector.broadcast %19 : vector<1x128xf32> to vector<8x128xf32>
    %74 = arith.addf %72, %73 : vector<8x128xf32>
    %75 = arith.addf %70, %74 : vector<8x128xf32>
    %76 = arith.negf %75 : vector<8x128xf32>
    %77 = math.exp %76 : vector<8x128xf32>
    %cst_32 = arith.constant 1.000000e+00 : f32
    %78 = vector.broadcast %cst_32 : f32 to vector<8x128xf32>
    %79 = arith.addf %78, %77 : vector<8x128xf32>
    %80 = arith.divf %78, %79 : vector<8x128xf32>
    %81 = vector.extract_strided_slice %80 {offsets = [0, 0], sizes = [8, 32], strides = [1, 1]} : vector<8x128xf32> to vector<8x32xf32>
    %82 = vector.extract_strided_slice %80 {offsets = [0, 32], sizes = [8, 32], strides = [1, 1]} : vector<8x128xf32> to vector<8x32xf32>
    %83 = vector.extract_strided_slice %70 {offsets = [0, 64], sizes = [8, 32], strides = [1, 1]} : vector<8x128xf32> to vector<8x32xf32>
    %84 = vector.extract_strided_slice %74 {offsets = [0, 64], sizes = [8, 32], strides = [1, 1]} : vector<8x128xf32> to vector<8x32xf32>
    %85 = arith.mulf %81, %84 : vector<8x32xf32>
    %86 = arith.addf %83, %85 : vector<8x32xf32>
    %87 = math.tanh %86 : vector<8x32xf32>
    %88 = vector.extract_strided_slice %57 {offsets = [0, 0], sizes = [8, 32], strides = [1, 1]} : vector<8x128xf32> to vector<8x32xf32>
    %89 = arith.subf %88, %87 : vector<8x32xf32>
    %90 = arith.mulf %82, %89 : vector<8x32xf32>
    %91 = arith.addf %87, %90 : vector<8x32xf32>
    %c8_i32_33 = arith.constant 8 : i32
    %92 = arith.muli %3, %c8_i32_33 : i32
    %93 = arith.addi %92, %66 : i32
    %94 = vector.broadcast %93 : i32 to vector<8x1xi32>
    %95 = arith.cmpi sgt, %20, %94 : vector<8x1xi32>
    %96 = vector.shape_cast %95 : vector<8x1xi1> to vector<8x1xi1>
    %97 = vector.broadcast %96 : vector<8x1xi1> to vector<8x32xi1>
    %98 = arith.select %97, %91, %88 : vector<8x32xi1>, vector<8x32xf32>
    %99 = tpu.concatenate %98, %21 in 1 : vector<8x32xf32>, vector<8x96xf32> -> vector<8x128xf32>
    %cst_34 = arith.constant 0.000000e+00 : f32
    %100 = vector.shape_cast %95 : vector<8x1xi1> to vector<8x1xi1>
    %101 = vector.broadcast %100 : vector<8x1xi1> to vector<8x128xi1>
    %102 = vector.broadcast %cst_34 : f32 to vector<8x128xf32>
    %103 = arith.select %101, %99, %102 : vector<8x128xi1>, vector<8x128xf32>
    %104 = arith.truncf %103 : vector<8x128xf32> to vector<8x128xbf16>
    %105 = arith.index_cast %68 : i32 to index
    %c0_35 = arith.constant 0 : index
    %106 = vector.load %arg8[%105, %c0_35] : memref<64x128xbf16, #tpu.memory_space<vmem>>, vector<8x128xbf16>
    tpu.vector_store %arg8[%105, %c0_35], %104 {strides = array<i32>} : memref<64x128xbf16, #tpu.memory_space<vmem>>, vector<8x128xbf16>,
    %c3_i32 = arith.constant 3 : i32
    %107 = arith.muli %arg0, %c3_i32 : i32
    %c2_i32_36 = arith.constant 2 : i32
    %108 = arith.addi %c2_i32_36, %107 : i32
    %c8_i32_37 = arith.constant 8 : i32
    %109 = arith.muli %108, %c8_i32_37 : i32
    %110 = tpu.assume_multiple %109, 8 : i32
    %111 = arith.index_cast %110 : i32 to index
    %c0_38 = arith.constant 0 : index
    %112 = vector.load %arg10[%111, %c0_38] : memref<64x128xf32, #tpu.memory_space<vmem>>, vector<8x128xf32>
    %113 = arith.truncf %99 : vector<8x128xf32> to vector<8x128xbf16>
    %cst_39 = arith.constant dense<0.000000e+00> : vector<8x128xf32>
    %114 = tpu.matmul %113, %17, %cst_39 {dimension_numbers = #tpu.dot_dimension_numbers<[1], [0], [0], [1], [0, 0, 1, 1], [], []>} : vector<8x128xbf16>, vector<128x128xbf16>, vector<8x128xf32> -> vector<8x128xf32>
    %115 = vector.broadcast %19 : vector<1x128xf32> to vector<8x128xf32>
    %116 = arith.addf %114, %115 : vector<8x128xf32>
    %117 = arith.addf %112, %116 : vector<8x128xf32>
    %118 = arith.negf %117 : vector<8x128xf32>
    %119 = math.exp %118 : vector<8x128xf32>
    %cst_40 = arith.constant 1.000000e+00 : f32
    %120 = vector.broadcast %cst_40 : f32 to vector<8x128xf32>
    %121 = arith.addf %120, %119 : vector<8x128xf32>
    %122 = arith.divf %120, %121 : vector<8x128xf32>
    %123 = vector.extract_strided_slice %122 {offsets = [0, 0], sizes = [8, 32], strides = [1, 1]} : vector<8x128xf32> to vector<8x32xf32>
    %124 = vector.extract_strided_slice %122 {offsets = [0, 32], sizes = [8, 32], strides = [1, 1]} : vector<8x128xf32> to vector<8x32xf32>
    %125 = vector.extract_strided_slice %112 {offsets = [0, 64], sizes = [8, 32], strides = [1, 1]} : vector<8x128xf32> to vector<8x32xf32>
    %126 = vector.extract_strided_slice %116 {offsets = [0, 64], sizes = [8, 32], strides = [1, 1]} : vector<8x128xf32> to vector<8x32xf32>
    %127 = arith.mulf %123, %126 : vector<8x32xf32>
    %128 = arith.addf %125, %127 : vector<8x32xf32>
    %129 = math.tanh %128 : vector<8x32xf32>
    %130 = vector.extract_strided_slice %99 {offsets = [0, 0], sizes = [8, 32], strides = [1, 1]} : vector<8x128xf32> to vector<8x32xf32>
    %131 = arith.subf %130, %129 : vector<8x32xf32>
    %132 = arith.mulf %124, %131 : vector<8x32xf32>
    %133 = arith.addf %129, %132 : vector<8x32xf32>
    %c8_i32_41 = arith.constant 8 : i32
    %134 = arith.muli %3, %c8_i32_41 : i32
    %135 = arith.addi %134, %108 : i32
    %136 = vector.broadcast %135 : i32 to vector<8x1xi32>
    %137 = arith.cmpi sgt, %20, %136 : vector<8x1xi32>
    %138 = vector.shape_cast %137 : vector<8x1xi1> to vector<8x1xi1>
    %139 = vector.broadcast %138 : vector<8x1xi1> to vector<8x32xi1>
    %140 = arith.select %139, %133, %130 : vector<8x32xi1>, vector<8x32xf32>
    %141 = tpu.concatenate %140, %21 in 1 : vector<8x32xf32>, vector<8x96xf32> -> vector<8x128xf32>
    %cst_42 = arith.constant 0.000000e+00 : f32
    %142 = vector.shape_cast %137 : vector<8x1xi1> to vector<8x1xi1>
    %143 = vector.broadcast %142 : vector<8x1xi1> to vector<8x128xi1>
    %144 = vector.broadcast %cst_42 : f32 to vector<8x128xf32>
    %145 = arith.select %143, %141, %144 : vector<8x128xi1>, vector<8x128xf32>
    %146 = arith.truncf %145 : vector<8x128xf32> to vector<8x128xbf16>
    %147 = arith.index_cast %110 : i32 to index
    %c0_43 = arith.constant 0 : index
    %148 = vector.load %arg8[%147, %c0_43] : memref<64x128xbf16, #tpu.memory_space<vmem>>, vector<8x128xbf16>
    tpu.vector_store %arg8[%147, %c0_43], %146 {strides = array<i32>} : memref<64x128xbf16, #tpu.memory_space<vmem>>, vector<8x128xbf16>,
    %c1_i32_44 = arith.constant 1 : i32
    %149 = arith.muli %arg0, %c1_i32_44 : i32
    %c3_i32_45 = arith.constant 3 : i32
    %150 = arith.addi %c3_i32_45, %149 : i32
    %c8_i32_46 = arith.constant 8 : i32
    %151 = arith.muli %150, %c8_i32_46 : i32
    %152 = tpu.assume_multiple %151, 8 : i32
    %153 = arith.index_cast %152 : i32 to index
    %c0_47 = arith.constant 0 : index
    %154 = vector.load %arg10[%153, %c0_47] : memref<64x128xf32, #tpu.memory_space<vmem>>, vector<8x128xf32>
    %155 = arith.truncf %141 : vector<8x128xf32> to vector<8x128xbf16>
    %cst_48 = arith.constant dense<0.000000e+00> : vector<8x128xf32>
    %156 = tpu.matmul %155, %17, %cst_48 {dimension_numbers = #tpu.dot_dimension_numbers<[1], [0], [0], [1], [0, 0, 1, 1], [], []>} : vector<8x128xbf16>, vector<128x128xbf16>, vector<8x128xf32> -> vector<8x128xf32>
    %157 = vector.broadcast %19 : vector<1x128xf32> to vector<8x128xf32>
    %158 = arith.addf %156, %157 : vector<8x128xf32>
    %159 = arith.addf %154, %158 : vector<8x128xf32>
    %160 = arith.negf %159 : vector<8x128xf32>
    %161 = math.exp %160 : vector<8x128xf32>
    %cst_49 = arith.constant 1.000000e+00 : f32
    %162 = vector.broadcast %cst_49 : f32 to vector<8x128xf32>
    %163 = arith.addf %162, %161 : vector<8x128xf32>
    %164 = arith.divf %162, %163 : vector<8x128xf32>
    %165 = vector.extract_strided_slice %164 {offsets = [0, 0], sizes = [8, 32], strides = [1, 1]} : vector<8x128xf32> to vector<8x32xf32>
    %166 = vector.extract_strided_slice %164 {offsets = [0, 32], sizes = [8, 32], strides = [1, 1]} : vector<8x128xf32> to vector<8x32xf32>
    %167 = vector.extract_strided_slice %154 {offsets = [0, 64], sizes = [8, 32], strides = [1, 1]} : vector<8x128xf32> to vector<8x32xf32>
    %168 = vector.extract_strided_slice %158 {offsets = [0, 64], sizes = [8, 32], strides = [1, 1]} : vector<8x128xf32> to vector<8x32xf32>
    %169 = arith.mulf %165, %168 : vector<8x32xf32>
    %170 = arith.addf %167, %169 : vector<8x32xf32>
    %171 = math.tanh %170 : vector<8x32xf32>
    %172 = vector.extract_strided_slice %141 {offsets = [0, 0], sizes = [8, 32], strides = [1, 1]} : vector<8x128xf32> to vector<8x32xf32>
    %173 = arith.subf %172, %171 : vector<8x32xf32>
    %174 = arith.mulf %166, %173 : vector<8x32xf32>
    %175 = arith.addf %171, %174 : vector<8x32xf32>
    %c8_i32_50 = arith.constant 8 : i32
    %176 = arith.muli %3, %c8_i32_50 : i32
    %177 = arith.addi %176, %150 : i32
    %178 = vector.broadcast %177 : i32 to vector<8x1xi32>
    %179 = arith.cmpi sgt, %20, %178 : vector<8x1xi32>
    %180 = vector.shape_cast %179 : vector<8x1xi1> to vector<8x1xi1>
    %181 = vector.broadcast %180 : vector<8x1xi1> to vector<8x32xi1>
    %182 = arith.select %181, %175, %172 : vector<8x32xi1>, vector<8x32xf32>
    %183 = tpu.concatenate %182, %21 in 1 : vector<8x32xf32>, vector<8x96xf32> -> vector<8x128xf32>
    %cst_51 = arith.constant 0.000000e+00 : f32
    %184 = vector.shape_cast %179 : vector<8x1xi1> to vector<8x1xi1>
    %185 = vector.broadcast %184 : vector<8x1xi1> to vector<8x128xi1>
    %186 = vector.broadcast %cst_51 : f32 to vector<8x128xf32>
    %187 = arith.select %185, %183, %186 : vector<8x128xi1>, vector<8x128xf32>
    %188 = arith.truncf %187 : vector<8x128xf32> to vector<8x128xbf16>
    %189 = arith.index_cast %152 : i32 to index
    %c0_52 = arith.constant 0 : index
    %190 = vector.load %arg8[%189, %c0_52] : memref<64x128xbf16, #tpu.memory_space<vmem>>, vector<8x128xbf16>
    tpu.vector_store %arg8[%189, %c0_52], %188 {strides = array<i32>} : memref<64x128xbf16, #tpu.memory_space<vmem>>, vector<8x128xbf16>,
    %c-1_i32 = arith.constant -1 : i32
    %191 = arith.muli %arg0, %c-1_i32 : i32
    %c4_i32 = arith.constant 4 : i32
    %192 = arith.addi %c4_i32, %191 : i32
    %c8_i32_53 = arith.constant 8 : i32
    %193 = arith.muli %192, %c8_i32_53 : i32
    %194 = tpu.assume_multiple %193, 8 : i32
    %195 = arith.index_cast %194 : i32 to index
    %c0_54 = arith.constant 0 : index
    %196 = vector.load %arg10[%195, %c0_54] : memref<64x128xf32, #tpu.memory_space<vmem>>, vector<8x128xf32>
    %197 = arith.truncf %183 : vector<8x128xf32> to vector<8x128xbf16>
    %cst_55 = arith.constant dense<0.000000e+00> : vector<8x128xf32>
    %198 = tpu.matmul %197, %17, %cst_55 {dimension_numbers = #tpu.dot_dimension_numbers<[1], [0], [0], [1], [0, 0, 1, 1], [], []>} : vector<8x128xbf16>, vector<128x128xbf16>, vector<8x128xf32> -> vector<8x128xf32>
    %199 = vector.broadcast %19 : vector<1x128xf32> to vector<8x128xf32>
    %200 = arith.addf %198, %199 : vector<8x128xf32>
    %201 = arith.addf %196, %200 : vector<8x128xf32>
    %202 = arith.negf %201 : vector<8x128xf32>
    %203 = math.exp %202 : vector<8x128xf32>
    %cst_56 = arith.constant 1.000000e+00 : f32
    %204 = vector.broadcast %cst_56 : f32 to vector<8x128xf32>
    %205 = arith.addf %204, %203 : vector<8x128xf32>
    %206 = arith.divf %204, %205 : vector<8x128xf32>
    %207 = vector.extract_strided_slice %206 {offsets = [0, 0], sizes = [8, 32], strides = [1, 1]} : vector<8x128xf32> to vector<8x32xf32>
    %208 = vector.extract_strided_slice %206 {offsets = [0, 32], sizes = [8, 32], strides = [1, 1]} : vector<8x128xf32> to vector<8x32xf32>
    %209 = vector.extract_strided_slice %196 {offsets = [0, 64], sizes = [8, 32], strides = [1, 1]} : vector<8x128xf32> to vector<8x32xf32>
    %210 = vector.extract_strided_slice %200 {offsets = [0, 64], sizes = [8, 32], strides = [1, 1]} : vector<8x128xf32> to vector<8x32xf32>
    %211 = arith.mulf %207, %210 : vector<8x32xf32>
    %212 = arith.addf %209, %211 : vector<8x32xf32>
    %213 = math.tanh %212 : vector<8x32xf32>
    %214 = vector.extract_strided_slice %183 {offsets = [0, 0], sizes = [8, 32], strides = [1, 1]} : vector<8x128xf32> to vector<8x32xf32>
    %215 = arith.subf %214, %213 : vector<8x32xf32>
    %216 = arith.mulf %208, %215 : vector<8x32xf32>
    %217 = arith.addf %213, %216 : vector<8x32xf32>
    %c8_i32_57 = arith.constant 8 : i32
    %218 = arith.muli %3, %c8_i32_57 : i32
    %219 = arith.addi %218, %192 : i32
    %220 = vector.broadcast %219 : i32 to vector<8x1xi32>
    %221 = arith.cmpi sgt, %20, %220 : vector<8x1xi32>
    %222 = vector.shape_cast %221 : vector<8x1xi1> to vector<8x1xi1>
    %223 = vector.broadcast %222 : vector<8x1xi1> to vector<8x32xi1>
    %224 = arith.select %223, %217, %214 : vector<8x32xi1>, vector<8x32xf32>
    %225 = tpu.concatenate %224, %21 in 1 : vector<8x32xf32>, vector<8x96xf32> -> vector<8x128xf32>
    %cst_58 = arith.constant 0.000000e+00 : f32
    %226 = vector.shape_cast %221 : vector<8x1xi1> to vector<8x1xi1>
    %227 = vector.broadcast %226 : vector<8x1xi1> to vector<8x128xi1>
    %228 = vector.broadcast %cst_58 : f32 to vector<8x128xf32>
    %229 = arith.select %227, %225, %228 : vector<8x128xi1>, vector<8x128xf32>
    %230 = arith.truncf %229 : vector<8x128xf32> to vector<8x128xbf16>
    %231 = arith.index_cast %194 : i32 to index
    %c0_59 = arith.constant 0 : index
    %232 = vector.load %arg8[%231, %c0_59] : memref<64x128xbf16, #tpu.memory_space<vmem>>, vector<8x128xbf16>
    tpu.vector_store %arg8[%231, %c0_59], %230 {strides = array<i32>} : memref<64x128xbf16, #tpu.memory_space<vmem>>, vector<8x128xbf16>,
    %c-3_i32 = arith.constant -3 : i32
    %233 = arith.muli %arg0, %c-3_i32 : i32
    %c5_i32_60 = arith.constant 5 : i32
    %234 = arith.addi %c5_i32_60, %233 : i32
    %c8_i32_61 = arith.constant 8 : i32
    %235 = arith.muli %234, %c8_i32_61 : i32
    %236 = tpu.assume_multiple %235, 8 : i32
    %237 = arith.index_cast %236 : i32 to index
    %c0_62 = arith.constant 0 : index
    %238 = vector.load %arg10[%237, %c0_62] : memref<64x128xf32, #tpu.memory_space<vmem>>, vector<8x128xf32>
    %239 = arith.truncf %225 : vector<8x128xf32> to vector<8x128xbf16>
    %cst_63 = arith.constant dense<0.000000e+00> : vector<8x128xf32>
    %240 = tpu.matmul %239, %17, %cst_63 {dimension_numbers = #tpu.dot_dimension_numbers<[1], [0], [0], [1], [0, 0, 1, 1], [], []>} : vector<8x128xbf16>, vector<128x128xbf16>, vector<8x128xf32> -> vector<8x128xf32>
    %241 = vector.broadcast %19 : vector<1x128xf32> to vector<8x128xf32>
    %242 = arith.addf %240, %241 : vector<8x128xf32>
    %243 = arith.addf %238, %242 : vector<8x128xf32>
    %244 = arith.negf %243 : vector<8x128xf32>
    %245 = math.exp %244 : vector<8x128xf32>
    %cst_64 = arith.constant 1.000000e+00 : f32
    %246 = vector.broadcast %cst_64 : f32 to vector<8x128xf32>
    %247 = arith.addf %246, %245 : vector<8x128xf32>
    %248 = arith.divf %246, %247 : vector<8x128xf32>
    %249 = vector.extract_strided_slice %248 {offsets = [0, 0], sizes = [8, 32], strides = [1, 1]} : vector<8x128xf32> to vector<8x32xf32>
    %250 = vector.extract_strided_slice %248 {offsets = [0, 32], sizes = [8, 32], strides = [1, 1]} : vector<8x128xf32> to vector<8x32xf32>
    %251 = vector.extract_strided_slice %238 {offsets = [0, 64], sizes = [8, 32], strides = [1, 1]} : vector<8x128xf32> to vector<8x32xf32>
    %252 = vector.extract_strided_slice %242 {offsets = [0, 64], sizes = [8, 32], strides = [1, 1]} : vector<8x128xf32> to vector<8x32xf32>
    %253 = arith.mulf %249, %252 : vector<8x32xf32>
    %254 = arith.addf %251, %253 : vector<8x32xf32>
    %255 = math.tanh %254 : vector<8x32xf32>
    %256 = vector.extract_strided_slice %225 {offsets = [0, 0], sizes = [8, 32], strides = [1, 1]} : vector<8x128xf32> to vector<8x32xf32>
    %257 = arith.subf %256, %255 : vector<8x32xf32>
    %258 = arith.mulf %250, %257 : vector<8x32xf32>
    %259 = arith.addf %255, %258 : vector<8x32xf32>
    %c8_i32_65 = arith.constant 8 : i32
    %260 = arith.muli %3, %c8_i32_65 : i32
    %261 = arith.addi %260, %234 : i32
    %262 = vector.broadcast %261 : i32 to vector<8x1xi32>
    %263 = arith.cmpi sgt, %20, %262 : vector<8x1xi32>
    %264 = vector.shape_cast %263 : vector<8x1xi1> to vector<8x1xi1>
    %265 = vector.broadcast %264 : vector<8x1xi1> to vector<8x32xi1>
    %266 = arith.select %265, %259, %256 : vector<8x32xi1>, vector<8x32xf32>
    %267 = tpu.concatenate %266, %21 in 1 : vector<8x32xf32>, vector<8x96xf32> -> vector<8x128xf32>
    %cst_66 = arith.constant 0.000000e+00 : f32
    %268 = vector.shape_cast %263 : vector<8x1xi1> to vector<8x1xi1>
    %269 = vector.broadcast %268 : vector<8x1xi1> to vector<8x128xi1>
    %270 = vector.broadcast %cst_66 : f32 to vector<8x128xf32>
    %271 = arith.select %269, %267, %270 : vector<8x128xi1>, vector<8x128xf32>
    %272 = arith.truncf %271 : vector<8x128xf32> to vector<8x128xbf16>
    %273 = arith.index_cast %236 : i32 to index
    %c0_67 = arith.constant 0 : index
    %274 = vector.load %arg8[%273, %c0_67] : memref<64x128xbf16, #tpu.memory_space<vmem>>, vector<8x128xbf16>
    tpu.vector_store %arg8[%273, %c0_67], %272 {strides = array<i32>} : memref<64x128xbf16, #tpu.memory_space<vmem>>, vector<8x128xbf16>,
    %c-5_i32 = arith.constant -5 : i32
    %275 = arith.muli %arg0, %c-5_i32 : i32
    %c6_i32 = arith.constant 6 : i32
    %276 = arith.addi %c6_i32, %275 : i32
    %c8_i32_68 = arith.constant 8 : i32
    %277 = arith.muli %276, %c8_i32_68 : i32
    %278 = tpu.assume_multiple %277, 8 : i32
    %279 = arith.index_cast %278 : i32 to index
    %c0_69 = arith.constant 0 : index
    %280 = vector.load %arg10[%279, %c0_69] : memref<64x128xf32, #tpu.memory_space<vmem>>, vector<8x128xf32>
    %281 = arith.truncf %267 : vector<8x128xf32> to vector<8x128xbf16>
    %cst_70 = arith.constant dense<0.000000e+00> : vector<8x128xf32>
    %282 = tpu.matmul %281, %17, %cst_70 {dimension_numbers = #tpu.dot_dimension_numbers<[1], [0], [0], [1], [0, 0, 1, 1], [], []>} : vector<8x128xbf16>, vector<128x128xbf16>, vector<8x128xf32> -> vector<8x128xf32>
    %283 = vector.broadcast %19 : vector<1x128xf32> to vector<8x128xf32>
    %284 = arith.addf %282, %283 : vector<8x128xf32>
    %285 = arith.addf %280, %284 : vector<8x128xf32>
    %286 = arith.negf %285 : vector<8x128xf32>
    %287 = math.exp %286 : vector<8x128xf32>
    %cst_71 = arith.constant 1.000000e+00 : f32
    %288 = vector.broadcast %cst_71 : f32 to vector<8x128xf32>
    %289 = arith.addf %288, %287 : vector<8x128xf32>
    %290 = arith.divf %288, %289 : vector<8x128xf32>
    %291 = vector.extract_strided_slice %290 {offsets = [0, 0], sizes = [8, 32], strides = [1, 1]} : vector<8x128xf32> to vector<8x32xf32>
    %292 = vector.extract_strided_slice %290 {offsets = [0, 32], sizes = [8, 32], strides = [1, 1]} : vector<8x128xf32> to vector<8x32xf32>
    %293 = vector.extract_strided_slice %280 {offsets = [0, 64], sizes = [8, 32], strides = [1, 1]} : vector<8x128xf32> to vector<8x32xf32>
    %294 = vector.extract_strided_slice %284 {offsets = [0, 64], sizes = [8, 32], strides = [1, 1]} : vector<8x128xf32> to vector<8x32xf32>
    %295 = arith.mulf %291, %294 : vector<8x32xf32>
    %296 = arith.addf %293, %295 : vector<8x32xf32>
    %297 = math.tanh %296 : vector<8x32xf32>
    %298 = vector.extract_strided_slice %267 {offsets = [0, 0], sizes = [8, 32], strides = [1, 1]} : vector<8x128xf32> to vector<8x32xf32>
    %299 = arith.subf %298, %297 : vector<8x32xf32>
    %300 = arith.mulf %292, %299 : vector<8x32xf32>
    %301 = arith.addf %297, %300 : vector<8x32xf32>
    %c8_i32_72 = arith.constant 8 : i32
    %302 = arith.muli %3, %c8_i32_72 : i32
    %303 = arith.addi %302, %276 : i32
    %304 = vector.broadcast %303 : i32 to vector<8x1xi32>
    %305 = arith.cmpi sgt, %20, %304 : vector<8x1xi32>
    %306 = vector.shape_cast %305 : vector<8x1xi1> to vector<8x1xi1>
    %307 = vector.broadcast %306 : vector<8x1xi1> to vector<8x32xi1>
    %308 = arith.select %307, %301, %298 : vector<8x32xi1>, vector<8x32xf32>
    %309 = tpu.concatenate %308, %21 in 1 : vector<8x32xf32>, vector<8x96xf32> -> vector<8x128xf32>
    %cst_73 = arith.constant 0.000000e+00 : f32
    %310 = vector.shape_cast %305 : vector<8x1xi1> to vector<8x1xi1>
    %311 = vector.broadcast %310 : vector<8x1xi1> to vector<8x128xi1>
    %312 = vector.broadcast %cst_73 : f32 to vector<8x128xf32>
    %313 = arith.select %311, %309, %312 : vector<8x128xi1>, vector<8x128xf32>
    %314 = arith.truncf %313 : vector<8x128xf32> to vector<8x128xbf16>
    %315 = arith.index_cast %278 : i32 to index
    %c0_74 = arith.constant 0 : index
    %316 = vector.load %arg8[%315, %c0_74] : memref<64x128xbf16, #tpu.memory_space<vmem>>, vector<8x128xbf16>
    tpu.vector_store %arg8[%315, %c0_74], %314 {strides = array<i32>} : memref<64x128xbf16, #tpu.memory_space<vmem>>, vector<8x128xbf16>,
    %c-7_i32 = arith.constant -7 : i32
    %317 = arith.muli %arg0, %c-7_i32 : i32
    %c7_i32_75 = arith.constant 7 : i32
    %318 = arith.addi %c7_i32_75, %317 : i32
    %c8_i32_76 = arith.constant 8 : i32
    %319 = arith.muli %318, %c8_i32_76 : i32
    %320 = tpu.assume_multiple %319, 8 : i32
    %321 = arith.index_cast %320 : i32 to index
    %c0_77 = arith.constant 0 : index
    %322 = vector.load %arg10[%321, %c0_77] : memref<64x128xf32, #tpu.memory_space<vmem>>, vector<8x128xf32>
    %323 = arith.truncf %309 : vector<8x128xf32> to vector<8x128xbf16>
    %cst_78 = arith.constant dense<0.000000e+00> : vector<8x128xf32>
    %324 = tpu.matmul %323, %17, %cst_78 {dimension_numbers = #tpu.dot_dimension_numbers<[1], [0], [0], [1], [0, 0, 1, 1], [], []>} : vector<8x128xbf16>, vector<128x128xbf16>, vector<8x128xf32> -> vector<8x128xf32>
    %325 = vector.broadcast %19 : vector<1x128xf32> to vector<8x128xf32>
    %326 = arith.addf %324, %325 : vector<8x128xf32>
    %327 = arith.addf %322, %326 : vector<8x128xf32>
    %328 = arith.negf %327 : vector<8x128xf32>
    %329 = math.exp %328 : vector<8x128xf32>
    %cst_79 = arith.constant 1.000000e+00 : f32
    %330 = vector.broadcast %cst_79 : f32 to vector<8x128xf32>
    %331 = arith.addf %330, %329 : vector<8x128xf32>
    %332 = arith.divf %330, %331 : vector<8x128xf32>
    %333 = vector.extract_strided_slice %332 {offsets = [0, 0], sizes = [8, 32], strides = [1, 1]} : vector<8x128xf32> to vector<8x32xf32>
    %334 = vector.extract_strided_slice %332 {offsets = [0, 32], sizes = [8, 32], strides = [1, 1]} : vector<8x128xf32> to vector<8x32xf32>
    %335 = vector.extract_strided_slice %322 {offsets = [0, 64], sizes = [8, 32], strides = [1, 1]} : vector<8x128xf32> to vector<8x32xf32>
    %336 = vector.extract_strided_slice %326 {offsets = [0, 64], sizes = [8, 32], strides = [1, 1]} : vector<8x128xf32> to vector<8x32xf32>
    %337 = arith.mulf %333, %336 : vector<8x32xf32>
    %338 = arith.addf %335, %337 : vector<8x32xf32>
    %339 = math.tanh %338 : vector<8x32xf32>
    %340 = vector.extract_strided_slice %309 {offsets = [0, 0], sizes = [8, 32], strides = [1, 1]} : vector<8x128xf32> to vector<8x32xf32>
    %341 = arith.subf %340, %339 : vector<8x32xf32>
    %342 = arith.mulf %334, %341 : vector<8x32xf32>
    %343 = arith.addf %339, %342 : vector<8x32xf32>
    %c8_i32_80 = arith.constant 8 : i32
    %344 = arith.muli %3, %c8_i32_80 : i32
    %345 = arith.addi %344, %318 : i32
    %346 = vector.broadcast %345 : i32 to vector<8x1xi32>
    %347 = arith.cmpi sgt, %20, %346 : vector<8x1xi32>
    %348 = vector.shape_cast %347 : vector<8x1xi1> to vector<8x1xi1>
    %349 = vector.broadcast %348 : vector<8x1xi1> to vector<8x32xi1>
    %350 = arith.select %349, %343, %340 : vector<8x32xi1>, vector<8x32xf32>
    %351 = tpu.concatenate %350, %21 in 1 : vector<8x32xf32>, vector<8x96xf32> -> vector<8x128xf32>
    %cst_81 = arith.constant 0.000000e+00 : f32
    %352 = vector.shape_cast %347 : vector<8x1xi1> to vector<8x1xi1>
    %353 = vector.broadcast %352 : vector<8x1xi1> to vector<8x128xi1>
    %354 = vector.broadcast %cst_81 : f32 to vector<8x128xf32>
    %355 = arith.select %353, %351, %354 : vector<8x128xi1>, vector<8x128xf32>
    %356 = arith.truncf %355 : vector<8x128xf32> to vector<8x128xbf16>
    %357 = arith.index_cast %320 : i32 to index
    %c0_82 = arith.constant 0 : index
    %358 = vector.load %arg8[%357, %c0_82] : memref<64x128xbf16, #tpu.memory_space<vmem>>, vector<8x128xbf16>
    tpu.vector_store %arg8[%357, %c0_82], %356 {strides = array<i32>} : memref<64x128xbf16, #tpu.memory_space<vmem>>, vector<8x128xbf16>,
    %c0_83 = arith.constant 0 : index
    %c0_84 = arith.constant 0 : index
    %359 = vector.load %arg11[%c0_83, %c0_84] : memref<8x128xf32, #tpu.memory_space<vmem>>, vector<8x128xf32>
    tpu.vector_store %arg11[%c0_83, %c0_84], %351 {strides = array<i32>} : memref<8x128xf32, #tpu.memory_space<vmem>>, vector<8x128xf32>,
    %c0_i32_85 = arith.constant 0 : i32
    %360 = arith.cmpi eq, %arg1, %c0_i32_85 : i32
    %361 = arith.extui %360 : i1 to i32
    %c0_i32_86 = arith.constant 0 : i32
    %362 = arith.cmpi ne, %361, %c0_i32_86 : i32
    scf.if %362 {
      %c0_87 = arith.constant 0 : index
      %c0_88 = arith.constant 0 : index
      %c0_89 = arith.constant 0 : index
      %363 = vector.load %arg9[%c0_87, %c0_88, %c0_89] : memref<1x8x128xf32, #tpu.memory_space<vmem>>, vector<1x8x128xf32>
      %364 = vector.shape_cast %363 : vector<1x8x128xf32> to vector<8x128xf32>
      %365 = vector.shape_cast %351 : vector<8x128xf32> to vector<1x8x128xf32>
      tpu.vector_store %arg9[%c0_87, %c0_88, %c0_89], %365 {strides = array<i32>} : memref<1x8x128xf32, #tpu.memory_space<vmem>>, vector<1x8x128xf32>,
    } else {
    }
    return
  }
  func.func @transform_0(%arg0: i32, %arg1: i32) -> (i32, i32) {
    %c0_i32 = arith.constant 0 : i32
    %c0_i32_0 = arith.constant 0 : i32
    %c0_i32_1 = arith.constant 0 : i32
    return %c0_i32, %c0_i32_0 : i32, i32
  }
  func.func @transform_1(%arg0: i32, %arg1: i32) -> (i32, i32) {
    %c2_i32 = arith.constant 2 : i32
    %0 = arith.muli %c2_i32, %arg1 : i32
    %c0_i32 = arith.constant 0 : i32
    %1 = arith.subi %c0_i32, %0 : i32
    %2 = arith.muli %arg0, %1 : i32
    %3 = arith.addi %arg1, %2 : i32
    %c0_i32_0 = arith.constant 0 : i32
    %c0_i32_1 = arith.constant 0 : i32
    return %3, %c0_i32_0 : i32, i32
  }
  func.func @transform_2(%arg0: i32, %arg1: i32) -> (i32, i32, i32) {
    %c0_i32 = arith.constant 0 : i32
    %c0_i32_0 = arith.constant 0 : i32
    %c0_i32_1 = arith.constant 0 : i32
    return %arg0, %c0_i32, %c0_i32_0 : i32, i32, i32
  }
  func.func @transform_3(%arg0: i32, %arg1: i32) -> (i32, i32, i32) {
    %c0_i32 = arith.constant 0 : i32
    %c0_i32_0 = arith.constant 0 : i32
    %c0_i32_1 = arith.constant 0 : i32
    return %arg0, %c0_i32, %c0_i32_0 : i32, i32, i32
  }
  func.func @transform_4(%arg0: i32, %arg1: i32) -> (i32, i32, i32) {
    %c0_i32 = arith.constant 0 : i32
    %c0_i32_0 = arith.constant 0 : i32
    %c0_i32_1 = arith.constant 0 : i32
    return %arg0, %c0_i32, %c0_i32_0 : i32, i32, i32
  }
  func.func @transform_5(%arg0: i32, %arg1: i32) -> (i32, i32, i32) {
    %c0_i32 = arith.constant 0 : i32
    %c0_i32_0 = arith.constant 0 : i32
    %c0_i32_1 = arith.constant 0 : i32
    return %arg0, %c0_i32, %c0_i32_0 : i32, i32, i32
  }
  func.func @transform_6(%arg0: i32, %arg1: i32) -> (i32, i32) {
    %c2_i32 = arith.constant 2 : i32
    %0 = arith.muli %c2_i32, %arg1 : i32
    %c0_i32 = arith.constant 0 : i32
    %1 = arith.subi %c0_i32, %0 : i32
    %2 = arith.muli %arg0, %1 : i32
    %3 = arith.addi %arg1, %2 : i32
    %c0_i32_0 = arith.constant 0 : i32
    return %3, %arg0 : i32, i32
  }
  func.func @transform_7(%arg0: i32, %arg1: i32) -> (i32, i32, i32) {
    %c0_i32 = arith.constant 0 : i32
    %c0_i32_0 = arith.constant 0 : i32
    %c0_i32_1 = arith.constant 0 : i32
    return %arg0, %c0_i32, %c0_i32_0 : i32, i32, i32
  }
}

module attributes {stable_mosaic.version = 11 : i64} {
  func.func @gru_layer_kernel(%arg0: i32, %arg1: i32, %arg2: memref<8x1xi32, #tpu.memory_space<vmem>>, %arg3: memref<64x256xbf16, #tpu.memory_space<vmem>>, %arg4: memref<1x256x128xbf16, #tpu.memory_space<vmem>>, %arg5: memref<1x1x128xf32, #tpu.memory_space<vmem>>, %arg6: memref<1x128x128xbf16, #tpu.memory_space<vmem>>, %arg7: memref<1x1x128xf32, #tpu.memory_space<vmem>>, %arg8: memref<64x128xbf16, #tpu.memory_space<vmem>>, %arg9: memref<1x8x128xf32, #tpu.memory_space<vmem>>, %arg10: memref<64x128xf32, #tpu.memory_space<vmem>>, %arg11: memref<8x128xf32, #tpu.memory_space<vmem>>) attributes {dimension_semantics = [#tpu.dimension_semantics<parallel>, #tpu.dimension_semantics<arbitrary>], iteration_bounds = array<i64: 2, 1>, scalar_prefetch = 0 : i64, scratch_operands = 2 : i64, tpu.core_type = #tpu.core_type<tc>, window_params = [{pipeline_mode = #tpu.pipeline_mode<synchronous>, transform_indices = @transform_0, window_bounds = array<i64: 8, 1>}, {transform_indices = @transform_1, window_bounds = array<i64: 64, 256>}, {transform_indices = @transform_2, window_bounds = array<i64: 1, 256, 128>}, {transform_indices = @transform_3, window_bounds = array<i64: 1, 1, 128>}, {transform_indices = @transform_4, window_bounds = array<i64: 1, 128, 128>}, {transform_indices = @transform_5, window_bounds = array<i64: 1, 1, 128>}, {transform_indices = @transform_6, window_bounds = array<i64: 64, 128>}, {transform_indices = @transform_7, window_bounds = array<i64: 1, 8, 128>}]} {
    %c2_i32 = arith.constant 2 : i32
    %0 = arith.muli %c2_i32, %arg1 : i32
    %c0_i32 = arith.constant 0 : i32
    %1 = arith.subi %c0_i32, %0 : i32
    %2 = arith.muli %arg0, %1 : i32
    %3 = arith.addi %arg1, %2 : i32
    %c0_i32_0 = arith.constant 0 : i32
    %4 = arith.cmpi eq, %arg1, %c0_i32_0 : i32
    %5 = arith.extui %4 : i1 to i32
    %c0_i32_1 = arith.constant 0 : i32
    %6 = arith.cmpi ne, %5, %c0_i32_1 : i32
    scf.if %6 {
      %cst_87 = arith.constant 0.000000e+00 : f32
      %363 = vector.broadcast %cst_87 : f32 to vector<8x128xf32>
      %c0_88 = arith.constant 0 : index
      %c0_89 = arith.constant 0 : index
      %364 = vector.load %arg11[%c0_88, %c0_89] : memref<8x128xf32, #tpu.memory_space<vmem>>, vector<8x128xf32>
      tpu.vector_store %arg11[%c0_88, %c0_89], %363 {strides = array<i32>} : memref<8x128xf32, #tpu.memory_space<vmem>>, vector<8x128xf32>,
    } else {
    }
    %c0 = arith.constant 0 : index
    %c0_2 = arith.constant 0 : index
    %7 = vector.load %arg3[%c0, %c0_2] : memref<64x256xbf16, #tpu.memory_space<vmem>>, vector<64x256xbf16>
    %c0_3 = arith.constant 0 : index
    %c0_4 = arith.constant 0 : index
    %c0_5 = arith.constant 0 : index
    %8 = vector.load %arg4[%c0_3, %c0_4, %c0_5] : memref<1x256x128xbf16, #tpu.memory_space<vmem>>, vector<1x256x128xbf16>
    %9 = vector.shape_cast %8 : vector<1x256x128xbf16> to vector<256x128xbf16>
    %cst = arith.constant dense<0.000000e+00> : vector<64x128xf32>
    %10 = tpu.matmul %7, %9, %cst {dimension_numbers = #tpu.dot_dimension_numbers<[1], [0], [0], [1], [0, 0, 1, 1], [], []>} : vector<64x256xbf16>, vector<256x128xbf16>, vector<64x128xf32> -> vector<64x128xf32>
    %c0_6 = arith.constant 0 : index
    %c0_7 = arith.constant 0 : index
    %c0_8 = arith.constant 0 : index
    %11 = vector.load %arg5[%c0_6, %c0_7, %c0_8] : memref<1x1x128xf32, #tpu.memory_space<vmem>>, vector<1x1x128xf32>
    %12 = vector.shape_cast %11 : vector<1x1x128xf32> to vector<1x128xf32>
    %13 = vector.broadcast %12 : vector<1x128xf32> to vector<64x128xf32>
    %14 = arith.addf %10, %13 : vector<64x128xf32>
    %c0_9 = arith.constant 0 : index
    %c0_10 = arith.constant 0 : index
    %15 = vector.load %arg10[%c0_9, %c0_10] : memref<64x128xf32, #tpu.memory_space<vmem>>, vector<64x128xf32>
    tpu.vector_store %arg10[%c0_9, %c0_10], %14 {strides = array<i32>} : memref<64x128xf32, #tpu.memory_space<vmem>>, vector<64x128xf32>,
    %c0_11 = arith.constant 0 : index
    %c0_12 = arith.constant 0 : index
    %c0_13 = arith.constant 0 : index
    %16 = vector.load %arg6[%c0_11, %c0_12, %c0_13] : memref<1x128x128xbf16, #tpu.memory_space<vmem>>, vector<1x128x128xbf16>
    %17 = vector.shape_cast %16 : vector<1x128x128xbf16> to vector<128x128xbf16>
    %c0_14 = arith.constant 0 : index
    %c0_15 = arith.constant 0 : index
    %c0_16 = arith.constant 0 : index
    %18 = vector.load %arg7[%c0_14, %c0_15, %c0_16] : memref<1x1x128xf32, #tpu.memory_space<vmem>>, vector<1x1x128xf32>
    %19 = vector.shape_cast %18 : vector<1x1x128xf32> to vector<1x128xf32>
    %c0_17 = arith.constant 0 : index
    %c0_18 = arith.constant 0 : index
    %20 = vector.load %arg2[%c0_17, %c0_18] : memref<8x1xi32, #tpu.memory_space<vmem>>, vector<8x1xi32>
    %cst_19 = arith.constant 0.000000e+00 : f32
    %21 = vector.broadcast %cst_19 : f32 to vector<8x96xf32>
    %c0_20 = arith.constant 0 : index
    %c0_21 = arith.constant 0 : index
    %22 = vector.load %arg11[%c0_20, %c0_21] : memref<8x128xf32, #tpu.memory_space<vmem>>, vector<8x128xf32>
    %c7_i32 = arith.constant 7 : i32
    %23 = arith.muli %arg0, %c7_i32 : i32
    %c0_i32_22 = arith.constant 0 : i32
    %24 = arith.addi %c0_i32_22, %23 : i32
    %c8_i32 = arith.constant 8 : i32
    %25 = arith.muli %24, %c8_i32 : i32
    %26 = tpu.assume_multiple %25, 8 : i32
    %27 = arith.index_cast %26 : i32 to index
    %c0_23 = arith.constant 0 : index
    %28 = vector.load %arg10[%27, %c0_23] : memref<64x128xf32, #tpu.memory_space<vmem>>, vector<8x128xf32>
    %29 = arith.truncf %22 : vector<8x128xf32> to vector<8x128xbf16>
    %cst_24 = arith.constant dense<0.000000e+00> : vector<8x128xf32>
    %30 = tpu.matmul %29, %17, %cst_24 {dimension_numbers = #tpu.dot_dimension_numbers<[1], [0], [0], [1], [0, 0, 1, 1], [], []>} : vector<8x128xbf16>, vector<128x128xbf16>, vector<8x128xf32> -> vector<8x128xf32>
    %31 = vector.broadcast %19 : vector<1x128xf32> to vector<8x128xf32>
    %32 = arith.addf %30, %31 : vector<8x128xf32>
    %33 = arith.addf %28, %32 : vector<8x128xf32>
    %34 = arith.negf %33 : vector<8x128xf32>
    %35 = math.exp %34 : vector<8x128xf32>
    %cst_25 = arith.constant 1.000000e+00 : f32
    %36 = vector.broadcast %cst_25 : f32 to vector<8x128xf32>
    %37 = arith.addf %36, %35 : vector<8x128xf32>
    %38 = arith.divf %36, %37 : vector<8x128xf32>
    %39 = vector.extract_strided_slice %38 {offsets = [0, 0], sizes = [8, 32], strides = [1, 1]} : vector<8x128xf32> to vector<8x32xf32>
    %40 = vector.extract_strided_slice %38 {offsets = [0, 32], sizes = [8, 32], strides = [1, 1]} : vector<8x128xf32> to vector<8x32xf32>
    %41 = vector.extract_strided_slice %28 {offsets = [0, 64], sizes = [8, 32], strides = [1, 1]} : vector<8x128xf32> to vector<8x32xf32>
    %42 = vector.extract_strided_slice %32 {offsets = [0, 64], sizes = [8, 32], strides = [1, 1]} : vector<8x128xf32> to vector<8x32xf32>
    %43 = arith.mulf %39, %42 : vector<8x32xf32>
    %44 = arith.addf %41, %43 : vector<8x32xf32>
    %45 = math.tanh %44 : vector<8x32xf32>
    %46 = vector.extract_strided_slice %22 {offsets = [0, 0], sizes = [8, 32], strides = [1, 1]} : vector<8x128xf32> to vector<8x32xf32>
    %47 = arith.subf %46, %45 : vector<8x32xf32>
    %48 = arith.mulf %40, %47 : vector<8x32xf32>
    %49 = arith.addf %45, %48 : vector<8x32xf32>
    %c8_i32_26 = arith.constant 8 : i32
    %50 = arith.muli %3, %c8_i32_26 : i32
    %51 = arith.addi %50, %24 : i32
    %52 = vector.broadcast %51 : i32 to vector<8x1xi32>
    %53 = arith.cmpi sgt, %20, %52 : vector<8x1xi32>
    %54 = vector.shape_cast %53 : vector<8x1xi1> to vector<8x1xi1>
    %55 = vector.broadcast %54 : vector<8x1xi1> to vector<8x32xi1>
    %56 = arith.select %55, %49, %46 : vector<8x32xi1>, vector<8x32xf32>
    %57 = tpu.concatenate %56, %21 in 1 : vector<8x32xf32>, vector<8x96xf32> -> vector<8x128xf32>
    %cst_27 = arith.constant 0.000000e+00 : f32
    %58 = vector.shape_cast %53 : vector<8x1xi1> to vector<8x1xi1>
    %59 = vector.broadcast %58 : vector<8x1xi1> to vector<8x128xi1>
    %60 = vector.broadcast %cst_27 : f32 to vector<8x128xf32>
    %61 = arith.select %59, %57, %60 : vector<8x128xi1>, vector<8x128xf32>
    %62 = arith.truncf %61 : vector<8x128xf32> to vector<8x128xbf16>
    %63 = arith.index_cast %26 : i32 to index
    %c0_28 = arith.constant 0 : index
    %64 = vector.load %arg8[%63, %c0_28] : memref<64x128xbf16, #tpu.memory_space<vmem>>, vector<8x128xbf16>
    tpu.vector_store %arg8[%63, %c0_28], %62 {strides = array<i32>} : memref<64x128xbf16, #tpu.memory_space<vmem>>, vector<8x128xbf16>,
    %c5_i32 = arith.constant 5 : i32
    %65 = arith.muli %arg0, %c5_i32 : i32
    %c1_i32 = arith.constant 1 : i32
    %66 = arith.addi %c1_i32, %65 : i32
    %c8_i32_29 = arith.constant 8 : i32
    %67 = arith.muli %66, %c8_i32_29 : i32
    %68 = tpu.assume_multiple %67, 8 : i32
    %69 = arith.index_cast %68 : i32 to index
    %c0_30 = arith.constant 0 : index
    %70 = vector.load %arg10[%69, %c0_30] : memref<64x128xf32, #tpu.memory_space<vmem>>, vector<8x128xf32>
    %71 = arith.truncf %57 : vector<8x128xf32> to vector<8x128xbf16>
    %cst_31 = arith.constant dense<0.000000e+00> : vector<8x128xf32>
    %72 = tpu.matmul %71, %17, %cst_31 {dimension_numbers = #tpu.dot_dimension_numbers<[1], [0], [0], [1], [0, 0, 1, 1], [], []>} : vector<8x128xbf16>, vector<128x128xbf16>, vector<8x128xf32> -> vector<8x128xf32>
    %73 = vector.broadcast %19 : vector<1x128xf32> to vector<8x128xf32>
    %74 = arith.addf %72, %73 : vector<8x128xf32>
    %75 = arith.addf %70, %74 : vector<8x128xf32>
    %76 = arith.negf %75 : vector<8x128xf32>
    %77 = math.exp %76 : vector<8x128xf32>
    %cst_32 = arith.constant 1.000000e+00 : f32
    %78 = vector.broadcast %cst_32 : f32 to vector<8x128xf32>
    %79 = arith.addf %78, %77 : vector<8x128xf32>
    %80 = arith.divf %78, %79 : vector<8x128xf32>
    %81 = vector.extract_strided_slice %80 {offsets = [0, 0], sizes = [8, 32], strides = [1, 1]} : vector<8x128xf32> to vector<8x32xf32>
    %82 = vector.extract_strided_slice %80 {offsets = [0, 32], sizes = [8, 32], strides = [1, 1]} : vector<8x128xf32> to vector<8x32xf32>
    %83 = vector.extract_strided_slice %70 {offsets = [0, 64], sizes = [8, 32], strides = [1, 1]} : vector<8x128xf32> to vector<8x32xf32>
    %84 = vector.extract_strided_slice %74 {offsets = [0, 64], sizes = [8, 32], strides = [1, 1]} : vector<8x128xf32> to vector<8x32xf32>
    %85 = arith.mulf %81, %84 : vector<8x32xf32>
    %86 = arith.addf %83, %85 : vector<8x32xf32>
    %87 = math.tanh %86 : vector<8x32xf32>
    %88 = vector.extract_strided_slice %57 {offsets = [0, 0], sizes = [8, 32], strides = [1, 1]} : vector<8x128xf32> to vector<8x32xf32>
    %89 = arith.subf %88, %87 : vector<8x32xf32>
    %90 = arith.mulf %82, %89 : vector<8x32xf32>
    %91 = arith.addf %87, %90 : vector<8x32xf32>
    %c8_i32_33 = arith.constant 8 : i32
    %92 = arith.muli %3, %c8_i32_33 : i32
    %93 = arith.addi %92, %66 : i32
    %94 = vector.broadcast %93 : i32 to vector<8x1xi32>
    %95 = arith.cmpi sgt, %20, %94 : vector<8x1xi32>
    %96 = vector.shape_cast %95 : vector<8x1xi1> to vector<8x1xi1>
    %97 = vector.broadcast %96 : vector<8x1xi1> to vector<8x32xi1>
    %98 = arith.select %97, %91, %88 : vector<8x32xi1>, vector<8x32xf32>
    %99 = tpu.concatenate %98, %21 in 1 : vector<8x32xf32>, vector<8x96xf32> -> vector<8x128xf32>
    %cst_34 = arith.constant 0.000000e+00 : f32
    %100 = vector.shape_cast %95 : vector<8x1xi1> to vector<8x1xi1>
    %101 = vector.broadcast %100 : vector<8x1xi1> to vector<8x128xi1>
    %102 = vector.broadcast %cst_34 : f32 to vector<8x128xf32>
    %103 = arith.select %101, %99, %102 : vector<8x128xi1>, vector<8x128xf32>
    %104 = arith.truncf %103 : vector<8x128xf32> to vector<8x128xbf16>
    %105 = arith.index_cast %68 : i32 to index
    %c0_35 = arith.constant 0 : index
    %106 = vector.load %arg8[%105, %c0_35] : memref<64x128xbf16, #tpu.memory_space<vmem>>, vector<8x128xbf16>
    tpu.vector_store %arg8[%105, %c0_35], %104 {strides = array<i32>} : memref<64x128xbf16, #tpu.memory_space<vmem>>, vector<8x128xbf16>,
    %c3_i32 = arith.constant 3 : i32
    %107 = arith.muli %arg0, %c3_i32 : i32
    %c2_i32_36 = arith.constant 2 : i32
    %108 = arith.addi %c2_i32_36, %107 : i32
    %c8_i32_37 = arith.constant 8 : i32
    %109 = arith.muli %108, %c8_i32_37 : i32
    %110 = tpu.assume_multiple %109, 8 : i32
    %111 = arith.index_cast %110 : i32 to index
    %c0_38 = arith.constant 0 : index
    %112 = vector.load %arg10[%111, %c0_38] : memref<64x128xf32, #tpu.memory_space<vmem>>, vector<8x128xf32>
    %113 = arith.truncf %99 : vector<8x128xf32> to vector<8x128xbf16>
    %cst_39 = arith.constant dense<0.000000e+00> : vector<8x128xf32>
    %114 = tpu.matmul %113, %17, %cst_39 {dimension_numbers = #tpu.dot_dimension_numbers<[1], [0], [0], [1], [0, 0, 1, 1], [], []>} : vector<8x128xbf16>, vector<128x128xbf16>, vector<8x128xf32> -> vector<8x128xf32>
    %115 = vector.broadcast %19 : vector<1x128xf32> to vector<8x128xf32>
    %116 = arith.addf %114, %115 : vector<8x128xf32>
    %117 = arith.addf %112, %116 : vector<8x128xf32>
    %118 = arith.negf %117 : vector<8x128xf32>
    %119 = math.exp %118 : vector<8x128xf32>
    %cst_40 = arith.constant 1.000000e+00 : f32
    %120 = vector.broadcast %cst_40 : f32 to vector<8x128xf32>
    %121 = arith.addf %120, %119 : vector<8x128xf32>
    %122 = arith.divf %120, %121 : vector<8x128xf32>
    %123 = vector.extract_strided_slice %122 {offsets = [0, 0], sizes = [8, 32], strides = [1, 1]} : vector<8x128xf32> to vector<8x32xf32>
    %124 = vector.extract_strided_slice %122 {offsets = [0, 32], sizes = [8, 32], strides = [1, 1]} : vector<8x128xf32> to vector<8x32xf32>
    %125 = vector.extract_strided_slice %112 {offsets = [0, 64], sizes = [8, 32], strides = [1, 1]} : vector<8x128xf32> to vector<8x32xf32>
    %126 = vector.extract_strided_slice %116 {offsets = [0, 64], sizes = [8, 32], strides = [1, 1]} : vector<8x128xf32> to vector<8x32xf32>
    %127 = arith.mulf %123, %126 : vector<8x32xf32>
    %128 = arith.addf %125, %127 : vector<8x32xf32>
    %129 = math.tanh %128 : vector<8x32xf32>
    %130 = vector.extract_strided_slice %99 {offsets = [0, 0], sizes = [8, 32], strides = [1, 1]} : vector<8x128xf32> to vector<8x32xf32>
    %131 = arith.subf %130, %129 : vector<8x32xf32>
    %132 = arith.mulf %124, %131 : vector<8x32xf32>
    %133 = arith.addf %129, %132 : vector<8x32xf32>
    %c8_i32_41 = arith.constant 8 : i32
    %134 = arith.muli %3, %c8_i32_41 : i32
    %135 = arith.addi %134, %108 : i32
    %136 = vector.broadcast %135 : i32 to vector<8x1xi32>
    %137 = arith.cmpi sgt, %20, %136 : vector<8x1xi32>
    %138 = vector.shape_cast %137 : vector<8x1xi1> to vector<8x1xi1>
    %139 = vector.broadcast %138 : vector<8x1xi1> to vector<8x32xi1>
    %140 = arith.select %139, %133, %130 : vector<8x32xi1>, vector<8x32xf32>
    %141 = tpu.concatenate %140, %21 in 1 : vector<8x32xf32>, vector<8x96xf32> -> vector<8x128xf32>
    %cst_42 = arith.constant 0.000000e+00 : f32
    %142 = vector.shape_cast %137 : vector<8x1xi1> to vector<8x1xi1>
    %143 = vector.broadcast %142 : vector<8x1xi1> to vector<8x128xi1>
    %144 = vector.broadcast %cst_42 : f32 to vector<8x128xf32>
    %145 = arith.select %143, %141, %144 : vector<8x128xi1>, vector<8x128xf32>
    %146 = arith.truncf %145 : vector<8x128xf32> to vector<8x128xbf16>
    %147 = arith.index_cast %110 : i32 to index
    %c0_43 = arith.constant 0 : index
    %148 = vector.load %arg8[%147, %c0_43] : memref<64x128xbf16, #tpu.memory_space<vmem>>, vector<8x128xbf16>
    tpu.vector_store %arg8[%147, %c0_43], %146 {strides = array<i32>} : memref<64x128xbf16, #tpu.memory_space<vmem>>, vector<8x128xbf16>,
    %c1_i32_44 = arith.constant 1 : i32
    %149 = arith.muli %arg0, %c1_i32_44 : i32
    %c3_i32_45 = arith.constant 3 : i32
    %150 = arith.addi %c3_i32_45, %149 : i32
    %c8_i32_46 = arith.constant 8 : i32
    %151 = arith.muli %150, %c8_i32_46 : i32
    %152 = tpu.assume_multiple %151, 8 : i32
    %153 = arith.index_cast %152 : i32 to index
    %c0_47 = arith.constant 0 : index
    %154 = vector.load %arg10[%153, %c0_47] : memref<64x128xf32, #tpu.memory_space<vmem>>, vector<8x128xf32>
    %155 = arith.truncf %141 : vector<8x128xf32> to vector<8x128xbf16>
    %cst_48 = arith.constant dense<0.000000e+00> : vector<8x128xf32>
    %156 = tpu.matmul %155, %17, %cst_48 {dimension_numbers = #tpu.dot_dimension_numbers<[1], [0], [0], [1], [0, 0, 1, 1], [], []>} : vector<8x128xbf16>, vector<128x128xbf16>, vector<8x128xf32> -> vector<8x128xf32>
    %157 = vector.broadcast %19 : vector<1x128xf32> to vector<8x128xf32>
    %158 = arith.addf %156, %157 : vector<8x128xf32>
    %159 = arith.addf %154, %158 : vector<8x128xf32>
    %160 = arith.negf %159 : vector<8x128xf32>
    %161 = math.exp %160 : vector<8x128xf32>
    %cst_49 = arith.constant 1.000000e+00 : f32
    %162 = vector.broadcast %cst_49 : f32 to vector<8x128xf32>
    %163 = arith.addf %162, %161 : vector<8x128xf32>
    %164 = arith.divf %162, %163 : vector<8x128xf32>
    %165 = vector.extract_strided_slice %164 {offsets = [0, 0], sizes = [8, 32], strides = [1, 1]} : vector<8x128xf32> to vector<8x32xf32>
    %166 = vector.extract_strided_slice %164 {offsets = [0, 32], sizes = [8, 32], strides = [1, 1]} : vector<8x128xf32> to vector<8x32xf32>
    %167 = vector.extract_strided_slice %154 {offsets = [0, 64], sizes = [8, 32], strides = [1, 1]} : vector<8x128xf32> to vector<8x32xf32>
    %168 = vector.extract_strided_slice %158 {offsets = [0, 64], sizes = [8, 32], strides = [1, 1]} : vector<8x128xf32> to vector<8x32xf32>
    %169 = arith.mulf %165, %168 : vector<8x32xf32>
    %170 = arith.addf %167, %169 : vector<8x32xf32>
    %171 = math.tanh %170 : vector<8x32xf32>
    %172 = vector.extract_strided_slice %141 {offsets = [0, 0], sizes = [8, 32], strides = [1, 1]} : vector<8x128xf32> to vector<8x32xf32>
    %173 = arith.subf %172, %171 : vector<8x32xf32>
    %174 = arith.mulf %166, %173 : vector<8x32xf32>
    %175 = arith.addf %171, %174 : vector<8x32xf32>
    %c8_i32_50 = arith.constant 8 : i32
    %176 = arith.muli %3, %c8_i32_50 : i32
    %177 = arith.addi %176, %150 : i32
    %178 = vector.broadcast %177 : i32 to vector<8x1xi32>
    %179 = arith.cmpi sgt, %20, %178 : vector<8x1xi32>
    %180 = vector.shape_cast %179 : vector<8x1xi1> to vector<8x1xi1>
    %181 = vector.broadcast %180 : vector<8x1xi1> to vector<8x32xi1>
    %182 = arith.select %181, %175, %172 : vector<8x32xi1>, vector<8x32xf32>
    %183 = tpu.concatenate %182, %21 in 1 : vector<8x32xf32>, vector<8x96xf32> -> vector<8x128xf32>
    %cst_51 = arith.constant 0.000000e+00 : f32
    %184 = vector.shape_cast %179 : vector<8x1xi1> to vector<8x1xi1>
    %185 = vector.broadcast %184 : vector<8x1xi1> to vector<8x128xi1>
    %186 = vector.broadcast %cst_51 : f32 to vector<8x128xf32>
    %187 = arith.select %185, %183, %186 : vector<8x128xi1>, vector<8x128xf32>
    %188 = arith.truncf %187 : vector<8x128xf32> to vector<8x128xbf16>
    %189 = arith.index_cast %152 : i32 to index
    %c0_52 = arith.constant 0 : index
    %190 = vector.load %arg8[%189, %c0_52] : memref<64x128xbf16, #tpu.memory_space<vmem>>, vector<8x128xbf16>
    tpu.vector_store %arg8[%189, %c0_52], %188 {strides = array<i32>} : memref<64x128xbf16, #tpu.memory_space<vmem>>, vector<8x128xbf16>,
    %c-1_i32 = arith.constant -1 : i32
    %191 = arith.muli %arg0, %c-1_i32 : i32
    %c4_i32 = arith.constant 4 : i32
    %192 = arith.addi %c4_i32, %191 : i32
    %c8_i32_53 = arith.constant 8 : i32
    %193 = arith.muli %192, %c8_i32_53 : i32
    %194 = tpu.assume_multiple %193, 8 : i32
    %195 = arith.index_cast %194 : i32 to index
    %c0_54 = arith.constant 0 : index
    %196 = vector.load %arg10[%195, %c0_54] : memref<64x128xf32, #tpu.memory_space<vmem>>, vector<8x128xf32>
    %197 = arith.truncf %183 : vector<8x128xf32> to vector<8x128xbf16>
    %cst_55 = arith.constant dense<0.000000e+00> : vector<8x128xf32>
    %198 = tpu.matmul %197, %17, %cst_55 {dimension_numbers = #tpu.dot_dimension_numbers<[1], [0], [0], [1], [0, 0, 1, 1], [], []>} : vector<8x128xbf16>, vector<128x128xbf16>, vector<8x128xf32> -> vector<8x128xf32>
    %199 = vector.broadcast %19 : vector<1x128xf32> to vector<8x128xf32>
    %200 = arith.addf %198, %199 : vector<8x128xf32>
    %201 = arith.addf %196, %200 : vector<8x128xf32>
    %202 = arith.negf %201 : vector<8x128xf32>
    %203 = math.exp %202 : vector<8x128xf32>
    %cst_56 = arith.constant 1.000000e+00 : f32
    %204 = vector.broadcast %cst_56 : f32 to vector<8x128xf32>
    %205 = arith.addf %204, %203 : vector<8x128xf32>
    %206 = arith.divf %204, %205 : vector<8x128xf32>
    %207 = vector.extract_strided_slice %206 {offsets = [0, 0], sizes = [8, 32], strides = [1, 1]} : vector<8x128xf32> to vector<8x32xf32>
    %208 = vector.extract_strided_slice %206 {offsets = [0, 32], sizes = [8, 32], strides = [1, 1]} : vector<8x128xf32> to vector<8x32xf32>
    %209 = vector.extract_strided_slice %196 {offsets = [0, 64], sizes = [8, 32], strides = [1, 1]} : vector<8x128xf32> to vector<8x32xf32>
    %210 = vector.extract_strided_slice %200 {offsets = [0, 64], sizes = [8, 32], strides = [1, 1]} : vector<8x128xf32> to vector<8x32xf32>
    %211 = arith.mulf %207, %210 : vector<8x32xf32>
    %212 = arith.addf %209, %211 : vector<8x32xf32>
    %213 = math.tanh %212 : vector<8x32xf32>
    %214 = vector.extract_strided_slice %183 {offsets = [0, 0], sizes = [8, 32], strides = [1, 1]} : vector<8x128xf32> to vector<8x32xf32>
    %215 = arith.subf %214, %213 : vector<8x32xf32>
    %216 = arith.mulf %208, %215 : vector<8x32xf32>
    %217 = arith.addf %213, %216 : vector<8x32xf32>
    %c8_i32_57 = arith.constant 8 : i32
    %218 = arith.muli %3, %c8_i32_57 : i32
    %219 = arith.addi %218, %192 : i32
    %220 = vector.broadcast %219 : i32 to vector<8x1xi32>
    %221 = arith.cmpi sgt, %20, %220 : vector<8x1xi32>
    %222 = vector.shape_cast %221 : vector<8x1xi1> to vector<8x1xi1>
    %223 = vector.broadcast %222 : vector<8x1xi1> to vector<8x32xi1>
    %224 = arith.select %223, %217, %214 : vector<8x32xi1>, vector<8x32xf32>
    %225 = tpu.concatenate %224, %21 in 1 : vector<8x32xf32>, vector<8x96xf32> -> vector<8x128xf32>
    %cst_58 = arith.constant 0.000000e+00 : f32
    %226 = vector.shape_cast %221 : vector<8x1xi1> to vector<8x1xi1>
    %227 = vector.broadcast %226 : vector<8x1xi1> to vector<8x128xi1>
    %228 = vector.broadcast %cst_58 : f32 to vector<8x128xf32>
    %229 = arith.select %227, %225, %228 : vector<8x128xi1>, vector<8x128xf32>
    %230 = arith.truncf %229 : vector<8x128xf32> to vector<8x128xbf16>
    %231 = arith.index_cast %194 : i32 to index
    %c0_59 = arith.constant 0 : index
    %232 = vector.load %arg8[%231, %c0_59] : memref<64x128xbf16, #tpu.memory_space<vmem>>, vector<8x128xbf16>
    tpu.vector_store %arg8[%231, %c0_59], %230 {strides = array<i32>} : memref<64x128xbf16, #tpu.memory_space<vmem>>, vector<8x128xbf16>,
    %c-3_i32 = arith.constant -3 : i32
    %233 = arith.muli %arg0, %c-3_i32 : i32
    %c5_i32_60 = arith.constant 5 : i32
    %234 = arith.addi %c5_i32_60, %233 : i32
    %c8_i32_61 = arith.constant 8 : i32
    %235 = arith.muli %234, %c8_i32_61 : i32
    %236 = tpu.assume_multiple %235, 8 : i32
    %237 = arith.index_cast %236 : i32 to index
    %c0_62 = arith.constant 0 : index
    %238 = vector.load %arg10[%237, %c0_62] : memref<64x128xf32, #tpu.memory_space<vmem>>, vector<8x128xf32>
    %239 = arith.truncf %225 : vector<8x128xf32> to vector<8x128xbf16>
    %cst_63 = arith.constant dense<0.000000e+00> : vector<8x128xf32>
    %240 = tpu.matmul %239, %17, %cst_63 {dimension_numbers = #tpu.dot_dimension_numbers<[1], [0], [0], [1], [0, 0, 1, 1], [], []>} : vector<8x128xbf16>, vector<128x128xbf16>, vector<8x128xf32> -> vector<8x128xf32>
    %241 = vector.broadcast %19 : vector<1x128xf32> to vector<8x128xf32>
    %242 = arith.addf %240, %241 : vector<8x128xf32>
    %243 = arith.addf %238, %242 : vector<8x128xf32>
    %244 = arith.negf %243 : vector<8x128xf32>
    %245 = math.exp %244 : vector<8x128xf32>
    %cst_64 = arith.constant 1.000000e+00 : f32
    %246 = vector.broadcast %cst_64 : f32 to vector<8x128xf32>
    %247 = arith.addf %246, %245 : vector<8x128xf32>
    %248 = arith.divf %246, %247 : vector<8x128xf32>
    %249 = vector.extract_strided_slice %248 {offsets = [0, 0], sizes = [8, 32], strides = [1, 1]} : vector<8x128xf32> to vector<8x32xf32>
    %250 = vector.extract_strided_slice %248 {offsets = [0, 32], sizes = [8, 32], strides = [1, 1]} : vector<8x128xf32> to vector<8x32xf32>
    %251 = vector.extract_strided_slice %238 {offsets = [0, 64], sizes = [8, 32], strides = [1, 1]} : vector<8x128xf32> to vector<8x32xf32>
    %252 = vector.extract_strided_slice %242 {offsets = [0, 64], sizes = [8, 32], strides = [1, 1]} : vector<8x128xf32> to vector<8x32xf32>
    %253 = arith.mulf %249, %252 : vector<8x32xf32>
    %254 = arith.addf %251, %253 : vector<8x32xf32>
    %255 = math.tanh %254 : vector<8x32xf32>
    %256 = vector.extract_strided_slice %225 {offsets = [0, 0], sizes = [8, 32], strides = [1, 1]} : vector<8x128xf32> to vector<8x32xf32>
    %257 = arith.subf %256, %255 : vector<8x32xf32>
    %258 = arith.mulf %250, %257 : vector<8x32xf32>
    %259 = arith.addf %255, %258 : vector<8x32xf32>
    %c8_i32_65 = arith.constant 8 : i32
    %260 = arith.muli %3, %c8_i32_65 : i32
    %261 = arith.addi %260, %234 : i32
    %262 = vector.broadcast %261 : i32 to vector<8x1xi32>
    %263 = arith.cmpi sgt, %20, %262 : vector<8x1xi32>
    %264 = vector.shape_cast %263 : vector<8x1xi1> to vector<8x1xi1>
    %265 = vector.broadcast %264 : vector<8x1xi1> to vector<8x32xi1>
    %266 = arith.select %265, %259, %256 : vector<8x32xi1>, vector<8x32xf32>
    %267 = tpu.concatenate %266, %21 in 1 : vector<8x32xf32>, vector<8x96xf32> -> vector<8x128xf32>
    %cst_66 = arith.constant 0.000000e+00 : f32
    %268 = vector.shape_cast %263 : vector<8x1xi1> to vector<8x1xi1>
    %269 = vector.broadcast %268 : vector<8x1xi1> to vector<8x128xi1>
    %270 = vector.broadcast %cst_66 : f32 to vector<8x128xf32>
    %271 = arith.select %269, %267, %270 : vector<8x128xi1>, vector<8x128xf32>
    %272 = arith.truncf %271 : vector<8x128xf32> to vector<8x128xbf16>
    %273 = arith.index_cast %236 : i32 to index
    %c0_67 = arith.constant 0 : index
    %274 = vector.load %arg8[%273, %c0_67] : memref<64x128xbf16, #tpu.memory_space<vmem>>, vector<8x128xbf16>
    tpu.vector_store %arg8[%273, %c0_67], %272 {strides = array<i32>} : memref<64x128xbf16, #tpu.memory_space<vmem>>, vector<8x128xbf16>,
    %c-5_i32 = arith.constant -5 : i32
    %275 = arith.muli %arg0, %c-5_i32 : i32
    %c6_i32 = arith.constant 6 : i32
    %276 = arith.addi %c6_i32, %275 : i32
    %c8_i32_68 = arith.constant 8 : i32
    %277 = arith.muli %276, %c8_i32_68 : i32
    %278 = tpu.assume_multiple %277, 8 : i32
    %279 = arith.index_cast %278 : i32 to index
    %c0_69 = arith.constant 0 : index
    %280 = vector.load %arg10[%279, %c0_69] : memref<64x128xf32, #tpu.memory_space<vmem>>, vector<8x128xf32>
    %281 = arith.truncf %267 : vector<8x128xf32> to vector<8x128xbf16>
    %cst_70 = arith.constant dense<0.000000e+00> : vector<8x128xf32>
    %282 = tpu.matmul %281, %17, %cst_70 {dimension_numbers = #tpu.dot_dimension_numbers<[1], [0], [0], [1], [0, 0, 1, 1], [], []>} : vector<8x128xbf16>, vector<128x128xbf16>, vector<8x128xf32> -> vector<8x128xf32>
    %283 = vector.broadcast %19 : vector<1x128xf32> to vector<8x128xf32>
    %284 = arith.addf %282, %283 : vector<8x128xf32>
    %285 = arith.addf %280, %284 : vector<8x128xf32>
    %286 = arith.negf %285 : vector<8x128xf32>
    %287 = math.exp %286 : vector<8x128xf32>
    %cst_71 = arith.constant 1.000000e+00 : f32
    %288 = vector.broadcast %cst_71 : f32 to vector<8x128xf32>
    %289 = arith.addf %288, %287 : vector<8x128xf32>
    %290 = arith.divf %288, %289 : vector<8x128xf32>
    %291 = vector.extract_strided_slice %290 {offsets = [0, 0], sizes = [8, 32], strides = [1, 1]} : vector<8x128xf32> to vector<8x32xf32>
    %292 = vector.extract_strided_slice %290 {offsets = [0, 32], sizes = [8, 32], strides = [1, 1]} : vector<8x128xf32> to vector<8x32xf32>
    %293 = vector.extract_strided_slice %280 {offsets = [0, 64], sizes = [8, 32], strides = [1, 1]} : vector<8x128xf32> to vector<8x32xf32>
    %294 = vector.extract_strided_slice %284 {offsets = [0, 64], sizes = [8, 32], strides = [1, 1]} : vector<8x128xf32> to vector<8x32xf32>
    %295 = arith.mulf %291, %294 : vector<8x32xf32>
    %296 = arith.addf %293, %295 : vector<8x32xf32>
    %297 = math.tanh %296 : vector<8x32xf32>
    %298 = vector.extract_strided_slice %267 {offsets = [0, 0], sizes = [8, 32], strides = [1, 1]} : vector<8x128xf32> to vector<8x32xf32>
    %299 = arith.subf %298, %297 : vector<8x32xf32>
    %300 = arith.mulf %292, %299 : vector<8x32xf32>
    %301 = arith.addf %297, %300 : vector<8x32xf32>
    %c8_i32_72 = arith.constant 8 : i32
    %302 = arith.muli %3, %c8_i32_72 : i32
    %303 = arith.addi %302, %276 : i32
    %304 = vector.broadcast %303 : i32 to vector<8x1xi32>
    %305 = arith.cmpi sgt, %20, %304 : vector<8x1xi32>
    %306 = vector.shape_cast %305 : vector<8x1xi1> to vector<8x1xi1>
    %307 = vector.broadcast %306 : vector<8x1xi1> to vector<8x32xi1>
    %308 = arith.select %307, %301, %298 : vector<8x32xi1>, vector<8x32xf32>
    %309 = tpu.concatenate %308, %21 in 1 : vector<8x32xf32>, vector<8x96xf32> -> vector<8x128xf32>
    %cst_73 = arith.constant 0.000000e+00 : f32
    %310 = vector.shape_cast %305 : vector<8x1xi1> to vector<8x1xi1>
    %311 = vector.broadcast %310 : vector<8x1xi1> to vector<8x128xi1>
    %312 = vector.broadcast %cst_73 : f32 to vector<8x128xf32>
    %313 = arith.select %311, %309, %312 : vector<8x128xi1>, vector<8x128xf32>
    %314 = arith.truncf %313 : vector<8x128xf32> to vector<8x128xbf16>
    %315 = arith.index_cast %278 : i32 to index
    %c0_74 = arith.constant 0 : index
    %316 = vector.load %arg8[%315, %c0_74] : memref<64x128xbf16, #tpu.memory_space<vmem>>, vector<8x128xbf16>
    tpu.vector_store %arg8[%315, %c0_74], %314 {strides = array<i32>} : memref<64x128xbf16, #tpu.memory_space<vmem>>, vector<8x128xbf16>,
    %c-7_i32 = arith.constant -7 : i32
    %317 = arith.muli %arg0, %c-7_i32 : i32
    %c7_i32_75 = arith.constant 7 : i32
    %318 = arith.addi %c7_i32_75, %317 : i32
    %c8_i32_76 = arith.constant 8 : i32
    %319 = arith.muli %318, %c8_i32_76 : i32
    %320 = tpu.assume_multiple %319, 8 : i32
    %321 = arith.index_cast %320 : i32 to index
    %c0_77 = arith.constant 0 : index
    %322 = vector.load %arg10[%321, %c0_77] : memref<64x128xf32, #tpu.memory_space<vmem>>, vector<8x128xf32>
    %323 = arith.truncf %309 : vector<8x128xf32> to vector<8x128xbf16>
    %cst_78 = arith.constant dense<0.000000e+00> : vector<8x128xf32>
    %324 = tpu.matmul %323, %17, %cst_78 {dimension_numbers = #tpu.dot_dimension_numbers<[1], [0], [0], [1], [0, 0, 1, 1], [], []>} : vector<8x128xbf16>, vector<128x128xbf16>, vector<8x128xf32> -> vector<8x128xf32>
    %325 = vector.broadcast %19 : vector<1x128xf32> to vector<8x128xf32>
    %326 = arith.addf %324, %325 : vector<8x128xf32>
    %327 = arith.addf %322, %326 : vector<8x128xf32>
    %328 = arith.negf %327 : vector<8x128xf32>
    %329 = math.exp %328 : vector<8x128xf32>
    %cst_79 = arith.constant 1.000000e+00 : f32
    %330 = vector.broadcast %cst_79 : f32 to vector<8x128xf32>
    %331 = arith.addf %330, %329 : vector<8x128xf32>
    %332 = arith.divf %330, %331 : vector<8x128xf32>
    %333 = vector.extract_strided_slice %332 {offsets = [0, 0], sizes = [8, 32], strides = [1, 1]} : vector<8x128xf32> to vector<8x32xf32>
    %334 = vector.extract_strided_slice %332 {offsets = [0, 32], sizes = [8, 32], strides = [1, 1]} : vector<8x128xf32> to vector<8x32xf32>
    %335 = vector.extract_strided_slice %322 {offsets = [0, 64], sizes = [8, 32], strides = [1, 1]} : vector<8x128xf32> to vector<8x32xf32>
    %336 = vector.extract_strided_slice %326 {offsets = [0, 64], sizes = [8, 32], strides = [1, 1]} : vector<8x128xf32> to vector<8x32xf32>
    %337 = arith.mulf %333, %336 : vector<8x32xf32>
    %338 = arith.addf %335, %337 : vector<8x32xf32>
    %339 = math.tanh %338 : vector<8x32xf32>
    %340 = vector.extract_strided_slice %309 {offsets = [0, 0], sizes = [8, 32], strides = [1, 1]} : vector<8x128xf32> to vector<8x32xf32>
    %341 = arith.subf %340, %339 : vector<8x32xf32>
    %342 = arith.mulf %334, %341 : vector<8x32xf32>
    %343 = arith.addf %339, %342 : vector<8x32xf32>
    %c8_i32_80 = arith.constant 8 : i32
    %344 = arith.muli %3, %c8_i32_80 : i32
    %345 = arith.addi %344, %318 : i32
    %346 = vector.broadcast %345 : i32 to vector<8x1xi32>
    %347 = arith.cmpi sgt, %20, %346 : vector<8x1xi32>
    %348 = vector.shape_cast %347 : vector<8x1xi1> to vector<8x1xi1>
    %349 = vector.broadcast %348 : vector<8x1xi1> to vector<8x32xi1>
    %350 = arith.select %349, %343, %340 : vector<8x32xi1>, vector<8x32xf32>
    %351 = tpu.concatenate %350, %21 in 1 : vector<8x32xf32>, vector<8x96xf32> -> vector<8x128xf32>
    %cst_81 = arith.constant 0.000000e+00 : f32
    %352 = vector.shape_cast %347 : vector<8x1xi1> to vector<8x1xi1>
    %353 = vector.broadcast %352 : vector<8x1xi1> to vector<8x128xi1>
    %354 = vector.broadcast %cst_81 : f32 to vector<8x128xf32>
    %355 = arith.select %353, %351, %354 : vector<8x128xi1>, vector<8x128xf32>
    %356 = arith.truncf %355 : vector<8x128xf32> to vector<8x128xbf16>
    %357 = arith.index_cast %320 : i32 to index
    %c0_82 = arith.constant 0 : index
    %358 = vector.load %arg8[%357, %c0_82] : memref<64x128xbf16, #tpu.memory_space<vmem>>, vector<8x128xbf16>
    tpu.vector_store %arg8[%357, %c0_82], %356 {strides = array<i32>} : memref<64x128xbf16, #tpu.memory_space<vmem>>, vector<8x128xbf16>,
    %c0_83 = arith.constant 0 : index
    %c0_84 = arith.constant 0 : index
    %359 = vector.load %arg11[%c0_83, %c0_84] : memref<8x128xf32, #tpu.memory_space<vmem>>, vector<8x128xf32>
    tpu.vector_store %arg11[%c0_83, %c0_84], %351 {strides = array<i32>} : memref<8x128xf32, #tpu.memory_space<vmem>>, vector<8x128xf32>,
    %c0_i32_85 = arith.constant 0 : i32
    %360 = arith.cmpi eq, %arg1, %c0_i32_85 : i32
    %361 = arith.extui %360 : i1 to i32
    %c0_i32_86 = arith.constant 0 : i32
    %362 = arith.cmpi ne, %361, %c0_i32_86 : i32
    scf.if %362 {
      %c0_87 = arith.constant 0 : index
      %c0_88 = arith.constant 0 : index
      %c0_89 = arith.constant 0 : index
      %363 = vector.load %arg9[%c0_87, %c0_88, %c0_89] : memref<1x8x128xf32, #tpu.memory_space<vmem>>, vector<1x8x128xf32>
      %364 = vector.shape_cast %363 : vector<1x8x128xf32> to vector<8x128xf32>
      %365 = vector.shape_cast %351 : vector<8x128xf32> to vector<1x8x128xf32>
      tpu.vector_store %arg9[%c0_87, %c0_88, %c0_89], %365 {strides = array<i32>} : memref<1x8x128xf32, #tpu.memory_space<vmem>>, vector<1x8x128xf32>,
    } else {
    }
    return
  }
  func.func @transform_0(%arg0: i32, %arg1: i32) -> (i32, i32) {
    %c0_i32 = arith.constant 0 : i32
    %c0_i32_0 = arith.constant 0 : i32
    %c0_i32_1 = arith.constant 0 : i32
    return %c0_i32, %c0_i32_0 : i32, i32
  }
  func.func @transform_1(%arg0: i32, %arg1: i32) -> (i32, i32) {
    %c2_i32 = arith.constant 2 : i32
    %0 = arith.muli %c2_i32, %arg1 : i32
    %c0_i32 = arith.constant 0 : i32
    %1 = arith.subi %c0_i32, %0 : i32
    %2 = arith.muli %arg0, %1 : i32
    %3 = arith.addi %arg1, %2 : i32
    %c0_i32_0 = arith.constant 0 : i32
    %c0_i32_1 = arith.constant 0 : i32
    return %3, %c0_i32_0 : i32, i32
  }
  func.func @transform_2(%arg0: i32, %arg1: i32) -> (i32, i32, i32) {
    %c0_i32 = arith.constant 0 : i32
    %c0_i32_0 = arith.constant 0 : i32
    %c0_i32_1 = arith.constant 0 : i32
    return %arg0, %c0_i32, %c0_i32_0 : i32, i32, i32
  }
  func.func @transform_3(%arg0: i32, %arg1: i32) -> (i32, i32, i32) {
    %c0_i32 = arith.constant 0 : i32
    %c0_i32_0 = arith.constant 0 : i32
    %c0_i32_1 = arith.constant 0 : i32
    return %arg0, %c0_i32, %c0_i32_0 : i32, i32, i32
  }
  func.func @transform_4(%arg0: i32, %arg1: i32) -> (i32, i32, i32) {
    %c0_i32 = arith.constant 0 : i32
    %c0_i32_0 = arith.constant 0 : i32
    %c0_i32_1 = arith.constant 0 : i32
    return %arg0, %c0_i32, %c0_i32_0 : i32, i32, i32
  }
  func.func @transform_5(%arg0: i32, %arg1: i32) -> (i32, i32, i32) {
    %c0_i32 = arith.constant 0 : i32
    %c0_i32_0 = arith.constant 0 : i32
    %c0_i32_1 = arith.constant 0 : i32
    return %arg0, %c0_i32, %c0_i32_0 : i32, i32, i32
  }
  func.func @transform_6(%arg0: i32, %arg1: i32) -> (i32, i32) {
    %c2_i32 = arith.constant 2 : i32
    %0 = arith.muli %c2_i32, %arg1 : i32
    %c0_i32 = arith.constant 0 : i32
    %1 = arith.subi %c0_i32, %0 : i32
    %2 = arith.muli %arg0, %1 : i32
    %3 = arith.addi %arg1, %2 : i32
    %c0_i32_0 = arith.constant 0 : i32
    return %3, %arg0 : i32, i32
  }
  func.func @transform_7(%arg0: i32, %arg1: i32) -> (i32, i32, i32) {
    %c0_i32 = arith.constant 0 : i32
    %c0_i32_0 = arith.constant 0 : i32
    %c0_i32_1 = arith.constant 0 : i32
    return %arg0, %c0_i32, %c0_i32_0 : i32, i32, i32
  }
}

</mosaic_0001>

<bundles_post_ra>
// kernel: encoder_rnn_forward.2
= control target key start
LH: loop header
LB: loop body
LE: loop exit
PB: predicated region body
PF: predicated region fallthrough
CT: control target
= control target key end

     0   :  { %13 = vsyncpa [#allocation5], 0  ;;  %s2724_s0 = inlined_call_operand.vmem [shape: s32[8,1], index: 0, kind: input, shape index: {}]   ;;  %s2725_s1 = inlined_call_operand.vmem [shape: bf16[64,256], index: 1, kind: input, shape index: {}]   ;;  %s2726_s2 = inlined_call_operand.vmem [shape: bf16[2,256,128], index: 2, kind: input, shape index: {}]   ;;  %s2727_s3 = inlined_call_operand.vmem [shape: f32[2,1,128], index: 3, kind: input, shape index: {}]   ;;  %s2728_s4 = inlined_call_operand.hbm [shape: bf16[2,128,128], index: 4, kind: input, shape index: {}]   ;;  %s2729_s5 = inlined_call_operand.vmem [shape: f32[2,1,128], index: 5, kind: input, shape index: {}]   ;;  %s2730_s6 = inlined_call_operand.vmem [shape: bf16[64,256], index: 6, kind: output, shape index: {0}]   ;;  %s2731_s7 = inlined_call_operand.vmem [shape: f32[2,8,128], index: 7, kind: output, shape index: {1}]  }
   0x1   :  { %15 = vsyncpa [#allocation5 + $0x1], 0  ;;  %s2255_s24 = smov 0   ;;  %s2257_s25 = smov 0  }
   0x2   :  { %s2259_s26 = smov 0   ;;  %s2261_s27 = smov 0  }
   0x3   :  { %s2263_s28 = smov 0   ;;  %s2265_s29 = smov 0  }
   0x4 LB: > { %s1757_s30 = sadd.s32 4294967295, %s2206_s29   ;;  %s33_s8 = sadd.s32 1, %s2202_s28  ;;  %s2206_s29 = sphi %s2265_s29, %s21_s29   ;;  %s2202_s28 = sphi %s2263_s28, %s2741_s28   ;;  %s2198_s27 = sphi %s2261_s27, %s2740_s27   ;;  %s2194_s26 = sphi %s2259_s26, %s2739_s26   ;;  %s2190_s25 = sphi %s2257_s25, %s2738_s25   ;;  %s2186_s24 = sphi %s2255_s24, %s2737_s24  }
   0x5   : > { %p35_p0 = scmp.ge.s32.totalorder %s33_s8, 2  ;;  %s147_s9 = sadd.s32 1, %s2194_s26 }
   0x6   : > { %p154_p1 = scmp.ne.s32.totalorder %s2194_s26, %s2190_s25  ;;  %p155_p2 = scmp.eq.s32.totalorder %s2206_s29, 0 }
   0x7   : > { %s2743_s8 = smov (%p35_p0, %s33_s8), 0  ;;  %p160_p4 = scmp.ne.s32.totalorder %s2190_s25, %s2186_s24 }
   0x8   : > { %p2291_p3 = por %p155_p2, %p154_p1  ;;  %s144_s11 = ssub.s32 %s2202_s28, %s2743_s8 }
   0x9   : > { %p161_p5 = scmp.eq.s32.totalorder %s1757_s30, 0  ;;  %p145_p6 = scmp.eq.s32.totalorder %s144_s11, 0 }
   0xa   : > { %p220_p7 = scmp.eq.s32.totalorder %s1757_s30, 1  ;;  %p2016_p10 = scmp.lt.s32.totalorder %s2206_s29, 2 }
   0xb   : > { %p2298_p8 = por %p161_p5, %p160_p4  ;;  %s307_s15 = sand.u32 1, %s2194_s26  }
   0xc   : > { %s2303_s13 = scalar_select %p145_p6, %s2194_s26, %s147_s9  }
   0xd   : > { %p2305_p9 = por %p220_p7, %p154_p1  ;;  %s1959_s16 = sshll.u32 %s2202_s28, 6 }
   0xe   : > { %s1762_s17 = sshll.u32 %s307_s15, 6  ;;  %s316_s20 = scalar_lea.hbm %s2728_s4, %s1959_s16 }
   0xf   : > { %s317_s21 = sshll.u32 %s316_s20, 4  ;;  %s311_s22 = scalar_lea.vmem [#allocation4], %s1762_s17  ;;  %s318_s21 = int_to_ptr.hbm [resolvable:$true] %s317_s21 }
  0x10   : > { %s319_s23 = sshll.u32 %s311_s22, 4  ;;  %p2013_p11 = pnand %p2016_p10, %p2291_p3  ;;  %s320_s23 = int_to_ptr.vmem [resolvable:$true] %s319_s23 }
  0x11   : > { %p1765_p12 = scmp.ge.s32.totalorder %s2206_s29, 1  ;;  %p333_p13 = scmp.lt.s32.totalorder %s2206_s29, 3 }
  0x12   : > { %s308_s24 = scalar_lea.sflag [#allocation5], %s307_s15  ;;  %s2208_s30 = smov 64  }
  0x13   : > { %s2209_s9 = smov 4   ;;  %p334_p0 = pnand %p1765_p12, %p333_p13 }
  0x14   : > { %2015 = dma.hbm_to_vmem [thread:$0]  (!%p2013_p11), %s318_s21, 1024, %s320_s23, %s308_s24, %s2208_s30, %s2208_s30, %s2209_s9  }
  0x15   : > { %337 = sbr.rel (%p334_p0) target bundleno = 6440 (0x1928), region = 44  ;;  %s2320_s11 = sand.u32 (!%p334_p0), 1, %s2190_s25  }
  0x16   : > { %s1766_s16 = sshll.u32 (!%p334_p0), %s2320_s11, 6  ;;  %s340_s17 = scalar_lea.sflag (!%p334_p0), [#allocation5], %s2320_s11 }
  0x17   : > { %s2324_s18 = scalar_lea.vmem (!%p334_p0), [#allocation4], %s1766_s16 }
  0x1a   : > { %2181 = dma.done.wait (%p2298_p8), %s340_s17, 1024  }
  0x1b   : > { %2183 = vsyncadd (%p2298_p8), %s340_s17, 4294966272  ;;  %p414_p1 = scmp.lt.s32.totalorder %s2198_s27, 1  ;;  %v2342_v1 = vld [vmem:[%s2324_s18 + $0x38] sm:$0xff]  ;;  %v2348_v4 = vld [vmem:[%s2324_s18 + $0x30] sm:$0xff]  ;;  %v2210_v30 = vmov 0.0|0.0   ;;  %s2211_s16 = smov 64  }
  0x1c   : > { %764 = vmatpush.bf16.msra.mxu2 %v2342_v1  ;;  %856 = vmatpush.bf16.msra.mxu3 %v2342_v1  ;;  %v2355_v7 = vld [vmem:[%s2324_s18 + $0x28] sm:$0xff]  ;;  %v2366_v10 = vld [vmem:[%s2324_s18 + $0x20] sm:$0xff]  ;;  %v2373_v13 = vld [vmem:[%s2324_s18 + $0x18] sm:$0xff]  ;;  %s708_s19 = smul.u32 7, %s2198_s27  ;;  %vm841_vm6 = vcmask 261120  }
  0x1d   : > { %s2332_s10 = scalar_select %p414_p1, %s2198_s27, 1  ;;  %v2380_v16 = vld [vmem:[%s2324_s18 + $0x10] sm:$0xff]  ;;  %v2387_v19 = vld [vmem:[%s2324_s18 + $0x8] sm:$0xff]  ;;  %v2394_v22 = vld [vmem:[%s2324_s18] sm:$0xff] }
  0x1e   : > { %v1773_v23 = vld [vmem:[%s2725_s1] sm:$0xf]  ;;  %v1962_v24 = vld [vmem:[%s2725_s1 + $0x4] sm:$0xf0]  ;;  %v1961_v26 = vld [vmem:[%s2725_s1 + $0x4] sm:$0xf] }
  0x1f   : > { %s1960_s15 = sshll.u32 %s2332_s10, 7  ;;  %s421_s23 = scalar_lea.vmem %s2727_s3, %s2332_s10  ;;  %v1775_v27 = vld [vmem:[%s2725_s1 + $0x8] sm:$0xf0]  ;;  %v1774_v28 = vor.u32 %v1962_v24, %v1773_v23  ;;  %v1781_v31 = vld [vmem:[%s2725_s1 + $0x10] sm:$0xf]  ;;  %vm2529_vm7 = vmpackc.low %vm841_vm6, %vm841_vm6 }
  0x20   : > { %s2338_s21 = scalar_lea.vmem %s2726_s2, %s1960_s15  ;;  %765 = vmatpush.bf16.msra.mxu2 %v2348_v4  ;;  %857 = vmatpush.bf16.msra.mxu3 %v2348_v4  ;;  %v1778_v29 = vor.u32 %v1961_v26, %v1775_v27  ;;  %s2418_s12 = scalar_lea.vmem %s2729_s5, %s2332_s10  ;;  %v1964_v32 = vld [vmem:[%s2725_s1 + $0x14] sm:$0xf0]  ;;  %v1963_v33 = vld [vmem:[%s2725_s1 + $0x14] sm:$0xf]  ;;  %v1783_v34 = vld [vmem:[%s2725_s1 + $0x18] sm:$0xf0] }
  0x21   : > { %v1976_v0 = vld [vmem:[%s2338_s21 + $0x38] sm:$0xff]  ;;  %v1975_v3 = vld [vmem:[%s2338_s21 + $0x30] sm:$0xff]  ;;  %v1974_v6 = vld [vmem:[%s2338_s21 + $0x28] sm:$0xff]  ;;  %v1782_v35 = vor.u32 %v1964_v32, %v1781_v31  ;;  %v1786_v36 = vor.u32 %v1963_v33, %v1783_v34  ;;  %s2213_s15 = smov 32  }
  0x22   : > { %v1984_v2 = vld [vmem:[%s2338_s21 + $0x78] sm:$0xff]  ;;  %623 = vmatpush.bf16.msra.mxu0 %v1976_v0  ;;  %v1983_v5 = vld [vmem:[%s2338_s21 + $0x70] sm:$0xff]  ;;  %v1982_v8 = vld [vmem:[%s2338_s21 + $0x68] sm:$0xff] }
  0x23   : > { %652 = vmatpush.bf16.msra.mxu1 %v1984_v2  ;;  %v1973_v9 = vld [vmem:[%s2338_s21 + $0x20] sm:$0xff]  ;;  %v1972_v12 = vld [vmem:[%s2338_s21 + $0x18] sm:$0xff]  ;;  %v1971_v15 = vld [vmem:[%s2338_s21 + $0x10] sm:$0xff] }
  0x24   : > { %766 = vmatpush.bf16.msra.mxu2 %v2355_v7  ;;  %v1981_v11 = vld [vmem:[%s2338_s21 + $0x60] sm:$0xff]  ;;  %858 = vmatpush.bf16.msra.mxu3 %v2355_v7  ;;  %v1980_v14 = vld [vmem:[%s2338_s21 + $0x58] sm:$0xff]  ;;  %v1979_v17 = vld [vmem:[%s2338_s21 + $0x50] sm:$0xff] }
  0x25   : > { %v1970_v18 = vld [vmem:[%s2338_s21 + $0x8] sm:$0xff]  ;;  %v1969_v21 = vld [vmem:[%s2338_s21] sm:$0xff]  ;;  %v1797_v43 = vld [vmem:[%s2725_s1 + $0x30] sm:$0xf] }
  0x26   : > { %624 = vmatpush.bf16.msra.mxu0 %v1975_v3  ;;  %v1978_v20 = vld [vmem:[%s2338_s21 + $0x48] sm:$0xff]  ;;  %v1977_v25 = vld [vmem:[%s2338_s21 + $0x40] sm:$0xff]  ;;  %v1968_v44 = vld [vmem:[%s2725_s1 + $0x34] sm:$0xf0]  ;;  %s1767_s21 = sshll.u32 %s2320_s11, 5  ;;  %s2005_s11 = smul.u32 40, %s2198_s27 }
  0x27   : > { %653 = vmatpush.bf16.msra.mxu1 %v1983_v5  ;;  %v1789_v37 = vld [vmem:[%s2725_s1 + $0x20] sm:$0xf]  ;;  %v1966_v38 = vld [vmem:[%s2725_s1 + $0x24] sm:$0xf0]  ;;  %v1965_v39 = vld [vmem:[%s2725_s1 + $0x24] sm:$0xf]  ;;  %v1798_v47 = vor.u32 %v1968_v44, %v1797_v43 }
  0x28   : > { %767 = vmatpush.bf16.msra.mxu2 %v2366_v10  ;;  %859 = vmatpush.bf16.msra.mxu3 %v2366_v10  ;;  %v1791_v40 = vld [vmem:[%s2725_s1 + $0x28] sm:$0xf0]  ;;  %v1790_v41 = vor.u32 %v1966_v38, %v1789_v37  ;;  %v1967_v45 = vld [vmem:[%s2725_s1 + $0x34] sm:$0xf]  ;;  %v1799_v46 = vld [vmem:[%s2725_s1 + $0x38] sm:$0xf0] }
  0x29   : > { %v1794_v42 = vor.u32 %v1965_v39, %v1791_v40  ;;  %v1802_v48 = vor.u32 %v1967_v45, %v1799_v46  ;;  %v2075_v49 = vld [vmem:[%s421_s23] ss:$0 sm:$0xff]  ;;  %s709_s23 = smul.u32 56, %s2198_s27  ;;  %s2534_s30 = scalar_lea.vmem [#allocation6], %s1767_s21 }
  0x2a   : > { %625 = vmatpush.bf16.msra.mxu0 %v1974_v6  ;;  %v2500_v54 = vld [vmem:[%s2418_s12] ss:$0 sm:$0xff]  ;;  %s1994_s20 = sadd.s32 8, %s2005_s11 }
  0x2b   : > { %654 = vmatpush.bf16.msra.mxu1 %v1982_v8  ;;  %s710_s17 = scalar_lea.vmem [#allocation2], %s709_s23  ;;  %s845_s22 = sshra.s32 %s709_s23, 3 }
  0x2c   : > { %768 = vmatpush.bf16.msra.mxu2 %v2373_v13  ;;  %860 = vmatpush.bf16.msra.mxu3 %v2373_v13  ;;  %s1900_s24 = sshll.u32 %s845_s22, 2  ;;  %s1638_s23 = scalar_lea.vmem [#allocation2], %s2005_s11 }
  0x2d   : > { %s848_s9 = scalar_lea.vmem %s2534_s30, %s1900_s24 [#allocation6]  ;;  %s935_s18 = sshra.s32 %s1994_s20, 3 }
  0x2e   : > { %626 = vmatpush.bf16.msra.mxu0 %v1973_v9  ;;  %s1908_s21 = sshll.u32 %s935_s18, 2  ;;  %s2006_s24 = smul.u32 24, %s2198_s27 }
  0x2f   : > { %655 = vmatpush.bf16.msra.mxu1 %v1981_v11  ;;  %s938_s22 = scalar_lea.vmem %s2534_s30, %s1908_s21 [#allocation6]  ;;  %s940_s11 = smul.u32 3, %s2198_s27 }
  0x30   : > { %769 = vmatpush.bf16.msra.mxu2 %v2380_v16  ;;  %861 = vmatpush.bf16.msra.mxu3 %v2380_v16  ;;  %s1997_s21 = sshll.u32 %s2198_s27, 3 }
  0x32   : > { %627 = vmatpush.bf16.msra.mxu0 %v1972_v12 }
  0x33   : > { %656 = vmatpush.bf16.msra.mxu1 %v1980_v14 }
  0x34   : > { %770 = vmatpush.bf16.msra.mxu2 %v2387_v19  ;;  %862 = vmatpush.bf16.msra.mxu3 %v2387_v19 }
  0x36   : > { %628 = vmatpush.bf16.msra.mxu0 %v1971_v15 }
  0x37   : > { %657 = vmatpush.bf16.msra.mxu1 %v1979_v17 }
  0x38   : > { %771 = vmatpush.bf16.msra.mxu2 %v2394_v22  ;;  %863 = vmatpush.bf16.msra.mxu3 %v2394_v22 }
  0x3a   : > { %629 = vmatpush.bf16.msra.mxu0 %v1970_v18 }
  0x3b   : > { %658 = vmatpush.bf16.msra.mxu1 %v1978_v20  ;;  %772 = vmatmul.bf16.vlgmr.msra.gmra.mxu2 %v2210_v30 }
  0x3c   : > { %946 = vmatpush.bf16.msrb.mxu2 %v2342_v1  ;;  %1035 = vmatpush.bf16.msrb.mxu3 %v2342_v1 }
  0x3e   : > { %630 = vmatpush.bf16.msra.mxu0 %v1969_v21 }
  0x3f   : > { %659 = vmatpush.bf16.msra.mxu1 %v1977_v25 }
  0x40   : > { %947 = vmatpush.bf16.msrb.mxu2 %v2348_v4  ;;  %1036 = vmatpush.bf16.msrb.mxu3 %v2348_v4 }
  0x41   : > { %631 = vmatmul.bf16.vlgmr.msra.gmra.mxu0 %v1774_v28 }
  0x42   : > { %660 = vmatmul.bf16.vlgmr.msra.gmra.mxu1 %v1778_v29  ;;  %1124 = vmatpush.bf16.msrb.mxu0 %v2342_v1 }
  0x43   : > { %1214 = vmatpush.bf16.msrb.mxu1 %v2342_v1 }
  0x44   : > { %948 = vmatpush.bf16.msrb.mxu2 %v2355_v7  ;;  %1037 = vmatpush.bf16.msrb.mxu3 %v2355_v7 }
  0x46   : > { %1125 = vmatpush.bf16.msrb.mxu0 %v2348_v4 }
  0x47   : > { %1215 = vmatpush.bf16.msrb.mxu1 %v2348_v4 }
  0x48   : > { %949 = vmatpush.bf16.msrb.mxu2 %v2366_v10  ;;  %1038 = vmatpush.bf16.msrb.mxu3 %v2366_v10 }
  0x4a   : > { %1126 = vmatpush.bf16.msrb.mxu0 %v2355_v7 }
  0x4b   : > { %1216 = vmatpush.bf16.msrb.mxu1 %v2355_v7 }
  0x4c   : > { %950 = vmatpush.bf16.msrb.mxu2 %v2373_v13  ;;  %1039 = vmatpush.bf16.msrb.mxu3 %v2373_v13 }
  0x4e   : > { %1127 = vmatpush.bf16.msrb.mxu0 %v2366_v10 }
  0x4f   : > { %1217 = vmatpush.bf16.msrb.mxu1 %v2366_v10 }
  0x50   : > { %951 = vmatpush.bf16.msrb.mxu2 %v2380_v16  ;;  %1040 = vmatpush.bf16.msrb.mxu3 %v2380_v16 }
  0x51   : > { %636 = vmatmul.bf16.gmra.mxu0 %v1782_v35 }
  0x52   : > { %665 = vmatmul.bf16.gmra.mxu1 %v1786_v36  ;;  %1128 = vmatpush.bf16.msrb.mxu0 %v2373_v13 }
  0x53   : > { %1218 = vmatpush.bf16.msrb.mxu1 %v2373_v13 }
  0x54   : > { %952 = vmatpush.bf16.msrb.mxu2 %v2387_v19  ;;  %1041 = vmatpush.bf16.msrb.mxu3 %v2387_v19 }
  0x56   : > { %1129 = vmatpush.bf16.msrb.mxu0 %v2380_v16 }
  0x57   : > { %1219 = vmatpush.bf16.msrb.mxu1 %v2380_v16 }
  0x58   : > { %953 = vmatpush.bf16.msrb.mxu2 %v2394_v22  ;;  %1042 = vmatpush.bf16.msrb.mxu3 %v2394_v22 }
  0x5a   : > { %1130 = vmatpush.bf16.msrb.mxu0 %v2387_v19 }
  0x5b   : > { %1220 = vmatpush.bf16.msrb.mxu1 %v2387_v19 }
  0x5c   : > { %1304 = vmatpush.bf16.msra.mxu2 %v2342_v1 }
  0x5e   : > { %1131 = vmatpush.bf16.msrb.mxu0 %v2394_v22 }
  0x5f   : > { %1221 = vmatpush.bf16.msrb.mxu1 %v2394_v22 }
  0x60   : > { %1305 = vmatpush.bf16.msra.mxu2 %v2348_v4 }
  0x61   : > { %641 = vmatmul.bf16.gmra.mxu0 %v1790_v41 }
  0x62   : > { %670 = vmatmul.bf16.gmra.mxu1 %v1794_v42 }
  0x64   : > { %1306 = vmatpush.bf16.msra.mxu2 %v2355_v7 }
  0x68   : > { %1307 = vmatpush.bf16.msra.mxu2 %v2366_v10 }
  0x6c   : > { %1308 = vmatpush.bf16.msra.mxu2 %v2373_v13 }
  0x70   : > { %1309 = vmatpush.bf16.msra.mxu2 %v2380_v16 }
  0x71   : > { %646 = vmatmul.bf16.gmra.mxu0 %v1798_v47 }
  0x72   : > { %675 = vmatmul.bf16.gmra.mxu1 %v1802_v48 }
  0x74   : > { %1310 = vmatpush.bf16.msra.mxu2 %v2387_v19 }
  0x78   : > { %1311 = vmatpush.bf16.msra.mxu2 %v2394_v22 }
  0xbe   : > { %v632_v50 = vpop.f32.mrf.mxu0  ;;  %v773_v55 = vpop.f32.mrf.mxu2 }
  0xbf   : > { %v633_v51 = vadd.f32 %v2075_v49, %v632_v50  ;;  %v661_v52 = vpop.f32.mrf.mxu1  ;;  %v774_v56 = vadd.f32 %v2500_v54, %v773_v55  ;;  %v2212_v50 = vmov 0.0  }
  0xc1   : > { %v662_v53 = vadd.f32 %v661_v52, %v633_v51  ;;  %798 = vrot.lane.b32.xlu0 %v774_v56, %s2211_s16 }
  0xc3   : > { %681 = vst [vmem:[#allocation2] sm:$0xff] %v662_v53  ;;  %v2214_v53 = vmov 0  }
  0xc4   : > { %2072 = vset.pattern.permute.xlu2 %v2214_v53  ;;  %2073 = vset.pattern.permute.xlu1 %v2214_v53 }
  0xc5   : > { %2074 = vset.pattern.permute.xlu0 %v2214_v53 }
  0xc6   : > { %v634_v57 = vpop.f32.mrf.mxu0  ;;  %v775_v61 = vpop.f32.mrf.mxu2 }
  0xc7   : > { %v635_v58 = vadd.f32 %v2075_v49, %v634_v57  ;;  %v663_v59 = vpop.f32.mrf.mxu1  ;;  %v2518_v57 = vld [vmem:[%s2724_s0] sm:$0xff] }
  0xc9   : > { %v664_v60 = vadd.f32 %v663_v59, %v635_v58  ;;  %v825_v58 = vstv %s708_s19 }
  0xca   : > { %vm826_vm4 = vcmp.gt.s32.totalorder %v2518_v57, %v825_v58 }
  0xcb   : > { %682 = vst [vmem:[#allocation2 + $0x8] sm:$0xff] %v664_v60  ;;  %v827_v59 = vsel %vm826_vm4, 1, %v2214_v53 }
  0xce   : > { %v637_v62 = vpop.f32.mrf.mxu0 }
  0xcf   : > { %v638_v63 = vadd.f32 %v2075_v49, %v637_v62  ;;  %v666_v0 = vpop.f32.mrf.mxu1 }
  0xd1   : > { %v667_v2 = vadd.f32 %v666_v0, %v638_v63 }
  0xd3   : > { %683 = vst [vmem:[#allocation2 + $0x10] sm:$0xff] %v667_v2 }
  0xd6   : > { %v639_v3 = vpop.f32.mrf.mxu0 }
  0xd7   : > { %v640_v5 = vadd.f32 %v2075_v49, %v639_v3  ;;  %v668_v6 = vpop.f32.mrf.mxu1 }
  0xd9   : > { %v669_v8 = vadd.f32 %v668_v6, %v640_v5 }
  0xdb   : > { %684 = vst [vmem:[#allocation2 + $0x18] sm:$0xff] %v669_v8 }
  0xde   : > { %v642_v9 = vpop.f32.mrf.mxu0 }
  0xdf   : > { %v643_v11 = vadd.f32 %v2075_v49, %v642_v9  ;;  %v671_v12 = vpop.f32.mrf.mxu1 }
  0xe1   : > { %v672_v14 = vadd.f32 %v671_v12, %v643_v11 }
  0xe3   : > { %685 = vst [vmem:[#allocation2 + $0x20] sm:$0xff] %v672_v14 }
  0xe6   : > { %v644_v15 = vpop.f32.mrf.mxu0 }
  0xe7   : > { %v645_v17 = vadd.f32 %v2075_v49, %v644_v15  ;;  %v673_v18 = vpop.f32.mrf.mxu1 }
  0xe9   : > { %v674_v20 = vadd.f32 %v673_v18, %v645_v17 }
  0xeb   : > { %686 = vst [vmem:[#allocation2 + $0x28] sm:$0xff] %v674_v20 }
  0xee   : > { %v647_v21 = vpop.f32.mrf.mxu0 }
  0xef   : > { %v648_v23 = vadd.f32 %v2075_v49, %v647_v21  ;;  %v676_v24 = vpop.f32.mrf.mxu1 }
  0xf1   : > { %v677_v25 = vadd.f32 %v676_v24, %v648_v23 }
  0xf3   : > { %687 = vst [vmem:[#allocation2 + $0x30] sm:$0xff] %v677_v25 }
  0xf6   : > { %v649_v26 = vpop.f32.mrf.mxu0 }
  0xf7   : > { %v650_v27 = vadd.f32 %v2075_v49, %v649_v26  ;;  %v678_v28 = vpop.f32.mrf.mxu1 }
  0xf9   : > { %v679_v29 = vadd.f32 %v678_v28, %v650_v27 }
  0xfb   : > { %688 = vst [vmem:[#allocation2 + $0x38] sm:$0xff] %v679_v29 }
 0x102   : > { %v711_v30 = vld [vmem:[%s710_s17] sm:$0xff]  ;;  %s850_s17 = smul.u32 5, %s2198_s27 }
 0x103   : > { %v777_v31 = vadd.f32 %v774_v56, %v711_v30 }
 0x104   : > { %s851_s19 = sadd.s32 1, %s850_s17  ;;  %s1996_s17 = sadd.s32 16, %s2006_s24 }
 0x105   : > { %v1899_v32 = vmul.f32 -1.442695, %v777_v31 }
 0x107   : > { %2077 = vpow2.f32 %v1899_v32  ;;  %v916_v32 = vstv %s851_s19  ;;  %s1025_s19 = sshra.s32 %s1996_s17, 3 }
 0x108   : > { %vm917_vm12 = vcmp.gt.s32.totalorder %v2518_v57, %v916_v32  ;;  %s1916_s20 = sshll.u32 %s1025_s19, 2  ;;  %s1119_s19 = ssub.s32 4, %s2198_s27 }
 0x109   : > { %s1028_s18 = scalar_lea.vmem %s2534_s30, %s1916_s20 [#allocation6]  ;;  %s2612_s20 = sshll.u32 %s1119_s19, 3 }
 0x10d   : > { %v2078_v33 = vpop.eup %2077 }
 0x10e   : > { %v781_v34 = vadd.f32 1.0, %v2078_v33  ;;  %v918_v33 = vsel %vm917_vm12, 1, %v2214_v53 }
 0x110   : > { %2079 = vrcp.f32 %v781_v34  ;;  %v793_v40 = vand.u32 2147483648, %v781_v34  ;;  %vm787_vm1 = vweird.f32 %v781_v34  ;;  %v791_v41 = vand.u32 2147483647, %v781_v34 }
 0x112   : > { %v794_v43 = vor.u32 1.1754944e-38, %v793_v40  ;;  %vm792_vm3 = vcmp.eq.f32.partialorder %v791_v41, 8.507059e+37 }
 0x116   : > { %v2080_v35 = vpop.eup %2079 }
 0x117   : > { %v783_v36 = vmul.f32 %v2080_v35, %v781_v34  ;;  %vm788_vm0 = vweird.f32 %v2080_v35 }
 0x118   : > { %vm789_vm2 = vmor %vm787_vm1, %vm788_vm0 }
 0x119   : > { %v784_v37 = vsub.f32 1.0, %v783_v36 }
 0x11b   : > { %v785_v38 = vmul.f32 %v2080_v35, %v784_v37 }
 0x11d   : > { %v786_v39 = vadd.f32 %v2080_v35, %v785_v38 }
 0x11f   : > { %v790_v42 = vsel %vm789_vm2, %v2080_v35, %v786_v39 }
 0x120   : > { %v795_v45 = vsel %vm792_vm3, %v794_v43, %v790_v42 }
 0x133   : > { %v799_v44 = vpop.permute.xlu0 %798 }
 0x134   : > { %v801_v46 = vmul.f32 %v799_v44, %v795_v45 }
 0x136   : > { %803 = vrot.lane.b32.xlu0 %v801_v46, %s2211_s16 }
 0x13e   : > { %833 = vrot.lane.b32.xlu0 %v2212_v50, %s2211_s16 }
 0x1a8   : > { %v804_v47 = vpop.permute.xlu0 %803 }
 0x1a9   : > { %v806_v48 = vadd.f32 %v804_v47, %v711_v30 }
 0x1ab   : > { %2081 = vtanh.f32 %v806_v48 }
 0x1b0   : > { %v834_v61 = vpop.permute.xlu0 %833 }
 0x1b1   : > { %v2082_v49 = vpop.eup %2081 }
 0x1b2   : > { %809 = vrot.lane.b32.xlu1 %v2082_v49, %s2211_s16 }
 0x224   : > { %v810_v51 = vpop.permute.xlu1 %809 }
 0x225   : > { %v812_v52 = vsub.f32 0.0, %v810_v51 }
 0x227   : > { %814 = vrot.lane.b32.xlu1 %v812_v52, %s2213_s15 }
 0x299   : > { %v815_v55 = vpop.permute.xlu1 %814 }
 0x29a   : > { %v817_v56 = vmul.f32 %v815_v55, %v795_v45 }
 0x29c   : > { %819 = vrot.lane.b32.xlu2 %v817_v56, %s2213_s15 }
 0x2a4   : > { %829 = vperm.xlu2 %2072, %v827_v59  }
 0x2f6   : > { %v820_v60 = vpop.permute.xlu2 %819 }
 0x2f7   : > { %v822_v62 = vadd.f32 %v2082_v49, %v820_v60 }
 0x2fe   : > { %v830_v63 = vpop.permute.xlu2 %829 }
 0x2ff   : > { %vm831_vm5 = vcmp.eq.s32.totalorder %v830_v63, 1 }
 0x300   : > { %v836_v0 = vsel %vm831_vm5, %v822_v62, %v834_v61 }
 0x301   : > { %838 = vrot.lane.b32.xlu1 %v836_v0, %s2211_s16 }
 0x373   : > { %v839_v2 = vpop.permute.xlu1 %838 }
 0x374   : > { %v842_v5 = vsel %vm841_vm6, %v839_v2, 0.0  ;;  %v1905_v6 = vpack.c.bf16 %v839_v2, %v839_v2 }
 0x375   : > { %v843_v8 = vsel %vm831_vm5, %v842_v5, 0.0 }
 0x376   : > { %v844_v9 = vpack.c.bf16 %v843_v8, %v843_v8  ;;  %1906 = vmatmul.msk.bf16.vlgmr.msra.gmra.mxu3 %vm2529_vm7, %v1905_v6 }
 0x377   : > { %1394 = vmatpush.bf16.msra.mxu3 %v2342_v1 }
 0x378   : > { %849 = vst [vmem:[%s848_s9] sm:$0xf] %v844_v9  ;;  %s1644_s9 = scalar_lea.vmem [#allocation2], %s2006_s24  ;;  %s1030_s24 = sadd.s32 3, %s2198_s27 }
 0x379   : > { %v1911_v49 = vld [vmem:[%s1644_s9 + $0x10] sm:$0xff]  ;;  %s1998_s9 = sadd.s32 24, %s1997_s21 }
 0x37b   : > { %1395 = vmatpush.bf16.msra.mxu3 %v2348_v4  ;;  %v1903_v4 = vld [vmem:[%s1638_s23 + $0x8] sm:$0xff]  ;;  %s941_s23 = sadd.s32 2, %s940_s11  ;;  %s1114_s11 = sshra.s32 %s1998_s9, 3 }
 0x37c   : > { %s2007_s9 = smul.u32 4294967272, %s2198_s27 }
 0x37f   : > { %1396 = vmatpush.bf16.msra.mxu3 %v2355_v7 }
 0x383   : > { %1397 = vmatpush.bf16.msra.mxu3 %v2366_v10 }
 0x387   : > { %1398 = vmatpush.bf16.msra.mxu3 %v2373_v13 }
 0x38b   : > { %1399 = vmatpush.bf16.msra.mxu3 %v2380_v16 }
 0x38f   : > { %1400 = vmatpush.bf16.msra.mxu3 %v2387_v19 }
 0x393   : > { %1401 = vmatpush.bf16.msra.mxu3 %v2394_v22 }
 0x3f9   : > { %v865_v11 = vpop.f32.mrf.mxu3 }
 0x3fa   : > { %v866_v12 = vadd.f32 %v2500_v54, %v865_v11 }
 0x3fc   : > { %890 = vrot.lane.b32.xlu2 %v866_v12, %s2211_s16  ;;  %v869_v7 = vadd.f32 %v1903_v4, %v866_v12 }
 0x3fe   : > { %v1907_v10 = vmul.f32 -1.442695, %v869_v7 }
 0x400   : > { %2083 = vpow2.f32 %v1907_v10 }
 0x401   : > { %v867_v1 = vpop.f32.mrf.mxu3 }
 0x402   : > { %v1006_v1 = vstv %s941_s23  ;;  %s1924_s23 = sshll.u32 %s1114_s11, 2  ;;  %s1659_s11 = scalar_lea.vmem [#allocation2], %s2007_s9 }
 0x403   : > { %vm1007_vm2 = vcmp.gt.s32.totalorder %v2518_v57, %v1006_v1  ;;  %s1117_s17 = scalar_lea.vmem %s2534_s30, %s1924_s23 [#allocation6]  ;;  %s1208_s23 = smul.u32 4294967293, %s2198_s27 }
 0x406   : > { %v2084_v13 = vpop.eup %2083 }
 0x407   : > { %v873_v14 = vadd.f32 1.0, %v2084_v13 }
 0x409   : > { %2085 = vrcp.f32 %v873_v14  ;;  %v885_v18 = vand.u32 2147483648, %v873_v14  ;;  %vm879_vm9 = vweird.f32 %v873_v14  ;;  %v883_v20 = vand.u32 2147483647, %v873_v14 }
 0x40b   : > { %v886_v23 = vor.u32 1.1754944e-38, %v885_v18  ;;  %vm884_vm11 = vcmp.eq.f32.partialorder %v883_v20, 8.507059e+37 }
 0x40f   : > { %v2086_v16 = vpop.eup %2085 }
 0x410   : > { %v875_v19 = vmul.f32 %v2086_v16, %v873_v14  ;;  %vm880_vm8 = vweird.f32 %v2086_v16 }
 0x411   : > { %vm881_vm10 = vmor %vm879_vm9, %vm880_vm8 }
 0x412   : > { %v876_v15 = vsub.f32 1.0, %v875_v19 }
 0x414   : > { %v877_v22 = vmul.f32 %v2086_v16, %v876_v15 }
 0x416   : > { %v878_v17 = vadd.f32 %v2086_v16, %v877_v22 }
 0x418   : > { %v882_v21 = vsel %vm881_vm10, %v2086_v16, %v878_v17 }
 0x419   : > { %v887_v25 = vsel %vm884_vm11, %v886_v23, %v882_v21 }
 0x456   : > { %v891_v24 = vpop.permute.xlu2 %890 }
 0x457   : > { %v893_v26 = vmul.f32 %v891_v24, %v887_v25 }
 0x459   : > { %895 = vrot.lane.b32.xlu0 %v893_v26, %s2211_s16 }
 0x4cb   : > { %v896_v27 = vpop.permute.xlu0 %895 }
 0x4cc   : > { %v898_v28 = vadd.f32 %v1903_v4, %v896_v27  ;;  %v1008_v4 = vsel %vm1007_vm2, 1, %v2214_v53 }
 0x4ce   : > { %2087 = vtanh.f32 %v898_v28 }
 0x4d4   : > { %v2088_v29 = vpop.eup %2087 }
 0x4d5   : > { %901 = vrot.lane.b32.xlu1 %v2088_v29, %s2211_s16 }
 0x4dd   : > { %920 = vperm.xlu1 %2073, %v918_v33  }
 0x547   : > { %v902_v30 = vpop.permute.xlu1 %901 }
 0x548   : > { %v904_v31 = vsub.f32 %v842_v5, %v902_v30 }
 0x54a   : > { %906 = vrot.lane.b32.xlu2 %v904_v31, %s2213_s15 }
 0x54f   : > { %v921_v36 = vpop.permute.xlu1 %920 }
 0x550   : > { %vm922_vm13 = vcmp.eq.s32.totalorder %v921_v36, 1 }
 0x552   : > { %924 = vrot.lane.b32.xlu2 %v842_v5, %s2211_s16 }
 0x5a4   : > { %v907_v34 = vpop.permute.xlu2 %906 }
 0x5a5   : > { %v909_v35 = vmul.f32 %v907_v34, %v887_v25 }
 0x5a7   : > { %911 = vrot.lane.b32.xlu0 %v909_v35, %s2213_s15 }
 0x5ac   : > { %v925_v39 = vpop.permute.xlu2 %924 }
 0x619   : > { %v912_v37 = vpop.permute.xlu0 %911 }
 0x61a   : > { %v914_v38 = vadd.f32 %v2088_v29, %v912_v37 }
 0x61c   : > { %v927_v40 = vsel %vm922_vm13, %v914_v38, %v925_v39 }
 0x61d   : > { %929 = vrot.lane.b32.xlu0 %v927_v40, %s2211_s16 }
 0x68f   : > { %v930_v41 = vpop.permute.xlu0 %929 }
 0x690   : > { %v932_v42 = vsel %vm841_vm6, %v930_v41, 0.0  ;;  %v1913_v43 = vpack.c.bf16 %v930_v41, %v930_v41 }
 0x691   : > { %v933_v44 = vsel %vm922_vm13, %v932_v42, 0.0 }
 0x692   : > { %v934_v45 = vpack.c.bf16 %v933_v44, %v933_v44  ;;  %1914 = vmatmul.msk.bf16.vlgmr.msrb.gmra.mxu2 %vm2529_vm7, %v1913_v43 }
 0x694   : > { %939 = vst [vmem:[%s938_s22] sm:$0xf] %v934_v45  ;;  %s1649_s22 = scalar_lea.vmem [#allocation2], %s1997_s21  ;;  %s1203_s21 = sshra.s32 %s2612_s20, 3 }
 0x695   : > { %v1919_v28 = vld [vmem:[%s1649_s22 + $0x18] sm:$0xff]  ;;  %s1930_s22 = sshll.u32 %s1203_s21, 2 }
 0x715   : > { %v955_v46 = vpop.f32.mrf.mxu2 }
 0x716   : > { %v956_v47 = vadd.f32 %v2500_v54, %v955_v46 }
 0x718   : > { %980 = vrot.lane.b32.xlu1 %v956_v47, %s2211_s16  ;;  %v959_v50 = vadd.f32 %v1911_v49, %v956_v47 }
 0x71a   : > { %v1915_v51 = vmul.f32 -1.442695, %v959_v50 }
 0x71c   : > { %2089 = vpow2.f32 %v1915_v51 }
 0x71d   : > { %v957_v48 = vpop.f32.mrf.mxu2 }
 0x71e   : > { %v1095_v48 = vstv %s1030_s24  ;;  %s1206_s24 = scalar_lea.vmem %s2534_s30, %s1930_s22 [#allocation6]  ;;  %s2008_s22 = smul.u32 4294967256, %s2198_s27 }
 0x71f   : > { %vm1096_vm10 = vcmp.gt.s32.totalorder %v2518_v57, %v1095_v48 }
 0x722   : > { %v2090_v52 = vpop.eup %2089 }
 0x723   : > { %v963_v55 = vadd.f32 1.0, %v2090_v52 }
 0x725   : > { %2091 = vrcp.f32 %v963_v55  ;;  %v975_v62 = vand.u32 2147483648, %v963_v55  ;;  %vm969_vm15 = vweird.f32 %v963_v55  ;;  %v973_v63 = vand.u32 2147483647, %v963_v55 }
 0x727   : > { %v976_v2 = vor.u32 1.1754944e-38, %v975_v62  ;;  %vm974_vm1 = vcmp.eq.f32.partialorder %v973_v63, 8.507059e+37 }
 0x72b   : > { %v2092_v56 = vpop.eup %2091 }
 0x72c   : > { %v965_v58 = vmul.f32 %v2092_v56, %v963_v55  ;;  %vm970_vm14 = vweird.f32 %v2092_v56 }
 0x72d   : > { %vm971_vm0 = vmor %vm969_vm15, %vm970_vm14 }
 0x72e   : > { %v966_v59 = vsub.f32 1.0, %v965_v58 }
 0x730   : > { %v967_v60 = vmul.f32 %v2092_v56, %v966_v59 }
 0x732   : > { %v968_v61 = vadd.f32 %v2092_v56, %v967_v60 }
 0x734   : > { %v972_v0 = vsel %vm971_vm0, %v2092_v56, %v968_v61 }
 0x735   : > { %v977_v6 = vsel %vm974_vm1, %v976_v2, %v972_v0 }
 0x78a   : > { %v981_v5 = vpop.permute.xlu1 %980 }
 0x78b   : > { %v983_v8 = vmul.f32 %v981_v5, %v977_v6 }
 0x78d   : > { %985 = vrot.lane.b32.xlu2 %v983_v8, %s2211_s16 }
 0x7e7   : > { %v986_v9 = vpop.permute.xlu2 %985 }
 0x7e8   : > { %v988_v11 = vadd.f32 %v1911_v49, %v986_v9  ;;  %v1097_v49 = vsel %vm1096_vm10, 1, %v2214_v53 }
 0x7ea   : > { %2093 = vtanh.f32 %v988_v11 }
 0x7f0   : > { %v2094_v12 = vpop.eup %2093 }
 0x7f1   : > { %991 = vrot.lane.b32.xlu0 %v2094_v12, %s2211_s16 }
 0x7f9   : > { %1010 = vperm.xlu0 %2074, %v1008_v4  }
 0x863   : > { %v992_v7 = vpop.permute.xlu0 %991 }
 0x864   : > { %v994_v10 = vsub.f32 %v932_v42, %v992_v7 }
 0x866   : > { %996 = vrot.lane.b32.xlu1 %v994_v10, %s2213_s15 }
 0x86b   : > { %v1011_v16 = vpop.permute.xlu0 %1010 }
 0x86c   : > { %vm1012_vm3 = vcmp.eq.s32.totalorder %v1011_v16, 1 }
 0x86e   : > { %1014 = vrot.lane.b32.xlu1 %v932_v42, %s2211_s16 }
 0x8d8   : > { %v997_v13 = vpop.permute.xlu1 %996 }
 0x8d9   : > { %v999_v14 = vmul.f32 %v997_v13, %v977_v6 }
 0x8db   : > { %1001 = vrot.lane.b32.xlu2 %v999_v14, %s2213_s15 }
 0x8e0   : > { %v1015_v22 = vpop.permute.xlu1 %1014 }
 0x935   : > { %v1002_v19 = vpop.permute.xlu2 %1001 }
 0x936   : > { %v1004_v15 = vadd.f32 %v2094_v12, %v1002_v19 }
 0x938   : > { %v1017_v17 = vsel %vm1012_vm3, %v1004_v15, %v1015_v22 }
 0x939   : > { %1019 = vrot.lane.b32.xlu2 %v1017_v17, %s2211_s16 }
 0x993   : > { %v1020_v18 = vpop.permute.xlu2 %1019 }
 0x994   : > { %v1022_v20 = vsel %vm841_vm6, %v1020_v18, 0.0  ;;  %v1921_v21 = vpack.c.bf16 %v1020_v18, %v1020_v18 }
 0x995   : > { %v1023_v23 = vsel %vm1012_vm3, %v1022_v20, 0.0 }
 0x996   : > { %v1024_v24 = vpack.c.bf16 %v1023_v23, %v1023_v23  ;;  %1922 = vmatmul.msk.bf16.vlgmr.msrb.gmra.mxu3 %vm2529_vm7, %v1921_v21 }
 0x998   : > { %1029 = vst [vmem:[%s1028_s18] sm:$0xf] %v1024_v24  ;;  %s1121_s18 = scalar_lea.vmem [#allocation2], %s2612_s20 }
 0x999   : > { %v1122_v11 = vld [vmem:[%s1121_s18] sm:$0xff] }
 0xa19   : > { %v1044_v25 = vpop.f32.mrf.mxu3 }
 0xa1a   : > { %v1045_v26 = vadd.f32 %v2500_v54, %v1044_v25 }
 0xa1c   : > { %1069 = vrot.lane.b32.xlu1 %v1045_v26, %s2211_s16  ;;  %v1048_v29 = vadd.f32 %v1919_v28, %v1045_v26 }
 0xa1e   : > { %v1923_v30 = vmul.f32 -1.442695, %v1048_v29 }
 0xa20   : > { %2095 = vpow2.f32 %v1923_v30 }
 0xa21   : > { %v1046_v27 = vpop.f32.mrf.mxu3 }
 0xa22   : > { %v1184_v27 = vstv %s1119_s19  ;;  %s2000_s19 = sadd.s32 40, %s2007_s9  ;;  %s1298_s9 = smul.u32 4294967291, %s2198_s27 }
 0xa23   : > { %vm1185_vm0 = vcmp.gt.s32.totalorder %v2518_v57, %v1184_v27  ;;  %s1293_s20 = sshra.s32 %s2000_s19, 3 }
 0xa24   : > { %s1938_s18 = sshll.u32 %s1293_s20, 2 }
 0xa25   : > { %s1296_s21 = scalar_lea.vmem %s2534_s30, %s1938_s18 [#allocation6]  ;;  %s2009_s18 = smul.u32 4294967240, %s2198_s27 }
 0xa26   : > { %v2096_v31 = vpop.eup %2095 }
 0xa27   : > { %v1052_v32 = vadd.f32 1.0, %v2096_v31 }
 0xa29   : > { %2097 = vrcp.f32 %v1052_v32  ;;  %v1064_v38 = vand.u32 2147483648, %v1052_v32  ;;  %vm1058_vm5 = vweird.f32 %v1052_v32  ;;  %v1062_v39 = vand.u32 2147483647, %v1052_v32 }
 0xa2b   : > { %v1065_v41 = vor.u32 1.1754944e-38, %v1064_v38  ;;  %vm1063_vm9 = vcmp.eq.f32.partialorder %v1062_v39, 8.507059e+37 }
 0xa2f   : > { %v2098_v33 = vpop.eup %2097 }
 0xa30   : > { %v1054_v34 = vmul.f32 %v2098_v33, %v1052_v32  ;;  %vm1059_vm4 = vweird.f32 %v2098_v33 }
 0xa31   : > { %vm1060_vm8 = vmor %vm1058_vm5, %vm1059_vm4 }
 0xa32   : > { %v1055_v35 = vsub.f32 1.0, %v1054_v34 }
 0xa34   : > { %v1056_v36 = vmul.f32 %v2098_v33, %v1055_v35 }
 0xa36   : > { %v1057_v37 = vadd.f32 %v2098_v33, %v1056_v36 }
 0xa38   : > { %v1061_v40 = vsel %vm1060_vm8, %v2098_v33, %v1057_v37 }
 0xa39   : > { %v1066_v43 = vsel %vm1063_vm9, %v1065_v41, %v1061_v40 }
 0xa8e   : > { %v1070_v42 = vpop.permute.xlu1 %1069 }
 0xa8f   : > { %v1072_v44 = vmul.f32 %v1070_v42, %v1066_v43 }
 0xa91   : > { %1074 = vrot.lane.b32.xlu2 %v1072_v44, %s2211_s16 }
 0xaeb   : > { %v1075_v45 = vpop.permute.xlu2 %1074 }
 0xaec   : > { %v1077_v46 = vadd.f32 %v1919_v28, %v1075_v45  ;;  %v1186_v28 = vsel %vm1185_vm0, 1, %v2214_v53 }
 0xaee   : > { %2099 = vtanh.f32 %v1077_v46  ;;  %v1933_v46 = vld [vmem:[%s1659_s11 + $0x28] sm:$0xff]  ;;  %s1299_s11 = sadd.s32 6, %s1298_s9 }
 0xaf4   : > { %v2100_v47 = vpop.eup %2099 }
 0xaf5   : > { %1080 = vrot.lane.b32.xlu0 %v2100_v47, %s2211_s16 }
 0xafd   : > { %1099 = vperm.xlu0 %2074, %v1097_v49  }
 0xb67   : > { %v1081_v50 = vpop.permute.xlu0 %1080 }
 0xb68   : > { %v1083_v51 = vsub.f32 %v1022_v20, %v1081_v50 }
 0xb6a   : > { %1085 = vrot.lane.b32.xlu1 %v1083_v51, %s2213_s15 }
 0xb6f   : > { %v1100_v56 = vpop.permute.xlu0 %1099 }
 0xb70   : > { %vm1101_vm11 = vcmp.eq.s32.totalorder %v1100_v56, 1 }
 0xb72   : > { %1103 = vrot.lane.b32.xlu1 %v1022_v20, %s2211_s16 }
 0xbdc   : > { %v1086_v52 = vpop.permute.xlu1 %1085 }
 0xbdd   : > { %v1088_v55 = vmul.f32 %v1086_v52, %v1066_v43 }
 0xbdf   : > { %1090 = vrot.lane.b32.xlu2 %v1088_v55, %s2213_s15 }
 0xbe4   : > { %v1104_v60 = vpop.permute.xlu1 %1103 }
 0xc39   : > { %v1091_v58 = vpop.permute.xlu2 %1090 }
 0xc3a   : > { %v1093_v59 = vadd.f32 %v2100_v47, %v1091_v58 }
 0xc3c   : > { %v1106_v61 = vsel %vm1101_vm11, %v1093_v59, %v1104_v60 }
 0xc3d   : > { %1108 = vrot.lane.b32.xlu2 %v1106_v61, %s2211_s16 }
 0xc97   : > { %v1109_v62 = vpop.permute.xlu2 %1108 }
 0xc98   : > { %v1111_v63 = vsel %vm841_vm6, %v1109_v62, 0.0  ;;  %v1927_v0 = vpack.c.bf16 %v1109_v62, %v1109_v62 }
 0xc99   : > { %v1112_v2 = vsel %vm1101_vm11, %v1111_v63, 0.0 }
 0xc9a   : > { %v1113_v5 = vpack.c.bf16 %v1112_v2, %v1112_v2  ;;  %1928 = vmatmul.msk.bf16.vlgmr.msrb.gmra.mxu0 %vm2529_vm7, %v1927_v0 }
 0xc9c   : > { %1118 = vst [vmem:[%s1117_s17] sm:$0xf] %v1113_v5  ;;  %s1209_s17 = sadd.s32 5, %s1208_s23  ;;  %s2002_s23 = sadd.s32 48, %s2008_s22 }
 0xd17   : > { %v1133_v6 = vpop.f32.mrf.mxu0 }
 0xd18   : > { %v1134_v8 = vadd.f32 %v2500_v54, %v1133_v6 }
 0xd1a   : > { %1158 = vrot.lane.b32.xlu0 %v1134_v8, %s2211_s16  ;;  %v1137_v12 = vadd.f32 %v1134_v8, %v1122_v11 }
 0xd1c   : > { %v1929_v1 = vmul.f32 -1.442695, %v1137_v12 }
 0xd1e   : > { %2101 = vpow2.f32 %v1929_v1 }
 0xd1f   : > { %v1135_v9 = vpop.f32.mrf.mxu0 }
 0xd20   : > { %v1274_v9 = vstv %s1209_s17  ;;  %s1383_s17 = sshra.s32 %s2002_s23, 3 }
 0xd21   : > { %vm1275_vm8 = vcmp.gt.s32.totalorder %v2518_v57, %v1274_v9  ;;  %s1946_s19 = sshll.u32 %s1383_s17, 2 }
 0xd22   : > { %s1386_s20 = scalar_lea.vmem %s2534_s30, %s1946_s19 [#allocation6] }
 0xd24   : > { %v2102_v4 = vpop.eup %2101 }
 0xd25   : > { %v1141_v7 = vadd.f32 1.0, %v2102_v4 }
 0xd27   : > { %2103 = vrcp.f32 %v1141_v7  ;;  %v1153_v15 = vand.u32 2147483648, %v1141_v7  ;;  %vm1147_vm13 = vweird.f32 %v1141_v7  ;;  %v1151_v22 = vand.u32 2147483647, %v1141_v7 }
 0xd29   : > { %v1154_v18 = vor.u32 1.1754944e-38, %v1153_v15  ;;  %vm1152_vm15 = vcmp.eq.f32.partialorder %v1151_v22, 8.507059e+37 }
 0xd2d   : > { %v2104_v10 = vpop.eup %2103 }
 0xd2e   : > { %v1143_v13 = vmul.f32 %v2104_v10, %v1141_v7  ;;  %vm1148_vm12 = vweird.f32 %v2104_v10 }
 0xd2f   : > { %vm1149_vm14 = vmor %vm1147_vm13, %vm1148_vm12 }
 0xd30   : > { %v1144_v14 = vsub.f32 1.0, %v1143_v13 }
 0xd32   : > { %v1145_v16 = vmul.f32 %v2104_v10, %v1144_v14 }
 0xd34   : > { %v1146_v19 = vadd.f32 %v2104_v10, %v1145_v16 }
 0xd36   : > { %v1150_v17 = vsel %vm1149_vm14, %v2104_v10, %v1146_v19 }
 0xd37   : > { %v1155_v21 = vsel %vm1152_vm15, %v1154_v18, %v1150_v17 }
 0xd8c   : > { %v1159_v20 = vpop.permute.xlu0 %1158 }
 0xd8d   : > { %v1161_v23 = vmul.f32 %v1159_v20, %v1155_v21 }
 0xd8f   : > { %1163 = vrot.lane.b32.xlu1 %v1161_v23, %s2211_s16 }
 0xe01   : > { %v1164_v24 = vpop.permute.xlu1 %1163 }
 0xe02   : > { %v1166_v25 = vadd.f32 %v1164_v24, %v1122_v11  ;;  %v1276_v11 = vsel %vm1275_vm8, 1, %v2214_v53 }
 0xe04   : > { %2105 = vtanh.f32 %v1166_v25 }
 0xe0a   : > { %v2106_v26 = vpop.eup %2105 }
 0xe0b   : > { %1169 = vrot.lane.b32.xlu2 %v2106_v26, %s2211_s16 }
 0xe13   : > { %1188 = vperm.xlu2 %2072, %v1186_v28  }
 0xe65   : > { %v1170_v29 = vpop.permute.xlu2 %1169 }
 0xe66   : > { %v1172_v30 = vsub.f32 %v1111_v63, %v1170_v29 }
 0xe68   : > { %1174 = vrot.lane.b32.xlu0 %v1172_v30, %s2213_s15 }
 0xe6d   : > { %v1189_v33 = vpop.permute.xlu2 %1188 }
 0xe6e   : > { %vm1190_vm1 = vcmp.eq.s32.totalorder %v1189_v33, 1 }
 0xe70   : > { %1192 = vrot.lane.b32.xlu0 %v1111_v63, %s2211_s16 }
 0xeda   : > { %v1175_v31 = vpop.permute.xlu0 %1174 }
 0xedb   : > { %v1177_v32 = vmul.f32 %v1175_v31, %v1155_v21 }
 0xedd   : > { %1179 = vrot.lane.b32.xlu1 %v1177_v32, %s2213_s15 }
 0xee2   : > { %v1193_v36 = vpop.permute.xlu0 %1192 }
 0xf4f   : > { %v1180_v34 = vpop.permute.xlu1 %1179 }
 0xf50   : > { %v1182_v35 = vadd.f32 %v2106_v26, %v1180_v34 }
 0xf52   : > { %v1195_v37 = vsel %vm1190_vm1, %v1182_v35, %v1193_v36 }
 0xf53   : > { %1197 = vrot.lane.b32.xlu1 %v1195_v37, %s2211_s16 }
 0xfc5   : > { %v1198_v38 = vpop.permute.xlu1 %1197 }
 0xfc6   : > { %v1200_v39 = vsel %vm841_vm6, %v1198_v38, 0.0  ;;  %v1935_v40 = vpack.c.bf16 %v1198_v38, %v1198_v38 }
 0xfc7   : > { %v1201_v41 = vsel %vm1190_vm1, %v1200_v39, 0.0 }
 0xfc8   : > { %v1202_v42 = vpack.c.bf16 %v1201_v41, %v1201_v41  ;;  %1936 = vmatmul.msk.bf16.vlgmr.msrb.gmra.mxu1 %vm2529_vm7, %v1935_v40 }
 0xfca   : > { %1207 = vst [vmem:[%s1206_s24] sm:$0xf] %v1202_v42  ;;  %s1665_s24 = scalar_lea.vmem [#allocation2], %s2008_s22 }
 0xfcb   : > { %v1941_v25 = vld [vmem:[%s1665_s24 + $0x30] sm:$0xff]  ;;  %s2004_s24 = sadd.s32 56, %s2009_s18 }
 0xfcc   : > { %s1473_s9 = sshra.s32 %s2004_s24, 3 }
 0xfcd   : > { %s1954_s23 = sshll.u32 %s1473_s9, 2 }
0x1045   : > { %v1223_v43 = vpop.f32.mrf.mxu1 }
0x1046   : > { %v1224_v44 = vadd.f32 %v2500_v54, %v1223_v43 }
0x1048   : > { %1248 = vrot.lane.b32.xlu2 %v1224_v44, %s2211_s16  ;;  %v1227_v47 = vadd.f32 %v1933_v46, %v1224_v44  ;;  %v1364_v44 = vstv %s1299_s11  ;;  %s1770_s11 = sshll.u32 %s2332_s10, 3  ;;  %s1956_s10 = sshll.u32 (%p2305_p9), %s2198_s27, 2 }
0x1049   : > { %vm1365_vm14 = vcmp.gt.s32.totalorder %v2518_v57, %v1364_v44 }
0x104a   : > { %v1937_v48 = vmul.f32 -1.442695, %v1227_v47 }
0x104c   : > { %2107 = vpow2.f32 %v1937_v48 }
0x104d   : > { %v1225_v45 = vpop.f32.mrf.mxu1 }
0x104e   : > { %v1366_v45 = vsel %vm1365_vm14, 1, %v2214_v53 }
0x1052   : > { %v2108_v49 = vpop.eup %2107 }
0x1053   : > { %v1231_v50 = vadd.f32 1.0, %v2108_v49 }
0x1055   : > { %2109 = vrcp.f32 %v1231_v50  ;;  %v1243_v59 = vand.u32 2147483648, %v1231_v50  ;;  %vm1237_vm3 = vweird.f32 %v1231_v50  ;;  %v1241_v60 = vand.u32 2147483647, %v1231_v50 }
0x1057   : > { %v1244_v62 = vor.u32 1.1754944e-38, %v1243_v59  ;;  %vm1242_vm5 = vcmp.eq.f32.partialorder %v1241_v60, 8.507059e+37 }
0x105b   : > { %v2110_v51 = vpop.eup %2109 }
0x105c   : > { %v1233_v52 = vmul.f32 %v2110_v51, %v1231_v50  ;;  %vm1238_vm2 = vweird.f32 %v2110_v51 }
0x105d   : > { %vm1239_vm4 = vmor %vm1237_vm3, %vm1238_vm2 }
0x105e   : > { %v1234_v55 = vsub.f32 1.0, %v1233_v52 }
0x1060   : > { %v1235_v56 = vmul.f32 %v2110_v51, %v1234_v55 }
0x1062   : > { %v1236_v58 = vadd.f32 %v2110_v51, %v1235_v56 }
0x1064   : > { %v1240_v61 = vsel %vm1239_vm4, %v2110_v51, %v1236_v58 }
0x1065   : > { %v1245_v0 = vsel %vm1242_vm5, %v1244_v62, %v1240_v61 }
0x10a2   : > { %v1249_v63 = vpop.permute.xlu2 %1248 }
0x10a3   : > { %v1251_v2 = vmul.f32 %v1249_v63, %v1245_v0 }
0x10a5   : > { %1253 = vrot.lane.b32.xlu0 %v1251_v2, %s2211_s16 }
0x1117   : > { %v1254_v5 = vpop.permute.xlu0 %1253 }
0x1118   : > { %v1256_v6 = vadd.f32 %v1933_v46, %v1254_v5 }
0x111a   : > { %2111 = vtanh.f32 %v1256_v6 }
0x1120   : > { %v2112_v8 = vpop.eup %2111 }
0x1121   : > { %1259 = vrot.lane.b32.xlu1 %v2112_v8, %s2211_s16 }
0x1129   : > { %1278 = vperm.xlu1 %2073, %v1276_v11  }
0x1193   : > { %v1260_v12 = vpop.permute.xlu1 %1259 }
0x1194   : > { %v1262_v1 = vsub.f32 %v1200_v39, %v1260_v12 }
0x1196   : > { %1264 = vrot.lane.b32.xlu2 %v1262_v1, %s2213_s15 }
0x119b   : > { %v1279_v10 = vpop.permute.xlu1 %1278 }
0x119c   : > { %vm1280_vm9 = vcmp.eq.s32.totalorder %v1279_v10, 1 }
0x119e   : > { %1282 = vrot.lane.b32.xlu2 %v1200_v39, %s2211_s16 }
0x11f0   : > { %v1265_v4 = vpop.permute.xlu2 %1264 }
0x11f1   : > { %v1267_v7 = vmul.f32 %v1265_v4, %v1245_v0  ;;  %v2125_v0 = vld [vmem:[%s2418_s12] ss:$0 sm:$0xff]  ;;  %s1388_s12 = smul.u32 4294967289, %s2198_s27 }
0x11f3   : > { %1269 = vrot.lane.b32.xlu0 %v1267_v7, %s2213_s15  ;;  %s1389_s22 = sadd.s32 7, %s1388_s12 }
0x11f8   : > { %v1283_v16 = vpop.permute.xlu2 %1282 }
0x1265   : > { %v1270_v13 = vpop.permute.xlu0 %1269 }
0x1266   : > { %v1272_v14 = vadd.f32 %v2112_v8, %v1270_v13 }
0x1268   : > { %v1285_v19 = vsel %vm1280_vm9, %v1272_v14, %v1283_v16 }
0x1269   : > { %1287 = vrot.lane.b32.xlu0 %v1285_v19, %s2211_s16 }
0x12db   : > { %v1288_v15 = vpop.permute.xlu0 %1287 }
0x12dc   : > { %v1290_v22 = vsel %vm841_vm6, %v1288_v15, 0.0  ;;  %v1943_v17 = vpack.c.bf16 %v1288_v15, %v1288_v15 }
0x12dd   : > { %v1291_v18 = vsel %vm1280_vm9, %v1290_v22, 0.0 }
0x12de   : > { %v1292_v20 = vpack.c.bf16 %v1291_v18, %v1291_v18  ;;  %1944 = vmatmul.msk.bf16.vlgmr.msra.gmra.mxu2 %vm2529_vm7, %v1943_v17 }
0x12e0   : > { %1297 = vst [vmem:[%s1296_s21] sm:$0xf] %v1292_v20  ;;  %s1671_s21 = scalar_lea.vmem [#allocation2], %s2009_s18 }
0x12e1   : > { %v1949_v6 = vld [vmem:[%s1671_s21 + $0x38] sm:$0xff]  ;;  %s1502_s21 = scalar_lea.vmem (%p2305_p9), %s2730_s6, %s1956_s10 }
0x1361   : > { %v1313_v21 = vpop.f32.mrf.mxu2 }
0x1362   : > { %v1314_v23 = vadd.f32 %v2500_v54, %v1313_v21 }
0x1364   : > { %1338 = vrot.lane.b32.xlu1 %v1314_v23, %s2211_s16  ;;  %v1317_v26 = vadd.f32 %v1941_v25, %v1314_v23  ;;  %v1454_v23 = vstv %s1389_s22 }
0x1365   : > { %vm1455_vm3 = vcmp.gt.s32.totalorder %v2518_v57, %v1454_v23 }
0x1366   : > { %v1945_v27 = vmul.f32 -1.442695, %v1317_v26 }
0x1368   : > { %2113 = vpow2.f32 %v1945_v27 }
0x1369   : > { %v1315_v24 = vpop.f32.mrf.mxu2 }
0x136a   : > { %v1456_v24 = vsel %vm1455_vm3, 1, %v2214_v53 }
0x136e   : > { %v2114_v28 = vpop.eup %2113 }
0x136f   : > { %v1321_v29 = vadd.f32 1.0, %v2114_v28 }
0x1371   : > { %2115 = vrcp.f32 %v1321_v29  ;;  %v1333_v54 = vand.u32 2147483648, %v1321_v29  ;;  %vm1327_vm11 = vweird.f32 %v1321_v29  ;;  %v1331_v35 = vand.u32 2147483647, %v1321_v29 }
0x1373   : > { %v1334_v37 = vor.u32 1.1754944e-38, %v1333_v54  ;;  %vm1332_vm13 = vcmp.eq.f32.partialorder %v1331_v35, 8.507059e+37 }
0x1377   : > { %v2116_v30 = vpop.eup %2115 }
0x1378   : > { %v1323_v31 = vmul.f32 %v2116_v30, %v1321_v29  ;;  %vm1328_vm10 = vweird.f32 %v2116_v30 }
0x1379   : > { %vm1329_vm12 = vmor %vm1327_vm11, %vm1328_vm10 }
0x137a   : > { %v1324_v32 = vsub.f32 1.0, %v1323_v31 }
0x137c   : > { %v1325_v33 = vmul.f32 %v2116_v30, %v1324_v32 }
0x137e   : > { %v1326_v34 = vadd.f32 %v2116_v30, %v1325_v33 }
0x1380   : > { %v1330_v36 = vsel %vm1329_vm12, %v2116_v30, %v1326_v34 }
0x1381   : > { %v1335_v39 = vsel %vm1332_vm13, %v1334_v37, %v1330_v36 }
0x13d6   : > { %v1339_v38 = vpop.permute.xlu1 %1338 }
0x13d7   : > { %v1341_v40 = vmul.f32 %v1339_v38, %v1335_v39 }
0x13d9   : > { %1343 = vrot.lane.b32.xlu2 %v1341_v40, %s2211_s16 }
0x1433   : > { %v1344_v41 = vpop.permute.xlu2 %1343 }
0x1434   : > { %v1346_v42 = vadd.f32 %v1941_v25, %v1344_v41 }
0x1436   : > { %2117 = vtanh.f32 %v1346_v42 }
0x143c   : > { %v2118_v43 = vpop.eup %2117 }
0x143d   : > { %1349 = vrot.lane.b32.xlu0 %v2118_v43, %s2211_s16 }
0x1445   : > { %1368 = vperm.xlu0 %2074, %v1366_v45  }
0x14af   : > { %v1350_v46 = vpop.permute.xlu0 %1349 }
0x14b0   : > { %v1352_v47 = vsub.f32 %v1290_v22, %v1350_v46 }
0x14b2   : > { %1354 = vrot.lane.b32.xlu1 %v1352_v47, %s2213_s15 }
0x14b7   : > { %v1369_v50 = vpop.permute.xlu0 %1368 }
0x14b8   : > { %vm1370_vm15 = vcmp.eq.s32.totalorder %v1369_v50, 1 }
0x14ba   : > { %1372 = vrot.lane.b32.xlu1 %v1290_v22, %s2211_s16 }
0x1524   : > { %v1355_v48 = vpop.permute.xlu1 %1354 }
0x1525   : > { %v1357_v49 = vmul.f32 %v1355_v48, %v1335_v39 }
0x1527   : > { %1359 = vrot.lane.b32.xlu2 %v1357_v49, %s2213_s15 }
0x152c   : > { %v1373_v55 = vpop.permute.xlu1 %1372 }
0x1581   : > { %v1360_v51 = vpop.permute.xlu2 %1359 }
0x1582   : > { %v1362_v52 = vadd.f32 %v2118_v43, %v1360_v51 }
0x1584   : > { %v1375_v56 = vsel %vm1370_vm15, %v1362_v52, %v1373_v55 }
0x1585   : > { %1377 = vrot.lane.b32.xlu2 %v1375_v56, %s2211_s16 }
0x15df   : > { %v1378_v58 = vpop.permute.xlu2 %1377 }
0x15e0   : > { %v1380_v59 = vsel %vm841_vm6, %v1378_v58, 0.0  ;;  %v1951_v60 = vpack.c.bf16 %v1378_v58, %v1378_v58 }
0x15e1   : > { %v1381_v61 = vsel %vm1370_vm15, %v1380_v59, 0.0 }
0x15e2   : > { %v1382_v62 = vpack.c.bf16 %v1381_v61, %v1381_v61  ;;  %1952 = vmatmul.msk.bf16.vlgmr.msra.gmra.mxu3 %vm2529_vm7, %v1951_v60 }
0x15e4   : > { %1387 = vst [vmem:[%s1386_s20] sm:$0xf] %v1382_v62  ;;  %s433_s20 = scalar_lea.vmem %s2731_s7, %s1770_s11 }
0x1665   : > { %v1403_v63 = vpop.f32.mrf.mxu3 }
0x1666   : > { %v1404_v2 = vadd.f32 %v2125_v0, %v1403_v63 }
0x1668   : > { %1428 = vrot.lane.b32.xlu0 %v1404_v2, %s2211_s16  ;;  %v1407_v8 = vadd.f32 %v1949_v6, %v1404_v2 }
0x166a   : > { %v1953_v9 = vmul.f32 -1.442695, %v1407_v8 }
0x166c   : > { %2119 = vpow2.f32 %v1953_v9 }
0x166d   : > { %v1405_v5 = vpop.f32.mrf.mxu3 }
0x1672   : > { %v2120_v11 = vpop.eup %2119 }
0x1673   : > { %v1411_v12 = vadd.f32 1.0, %v2120_v11 }
0x1675   : > { %2121 = vrcp.f32 %v1411_v12  ;;  %v1423_v13 = vand.u32 2147483648, %v1411_v12  ;;  %vm1417_vm0 = vweird.f32 %v1411_v12  ;;  %v1421_v14 = vand.u32 2147483647, %v1411_v12 }
0x1677   : > { %v1424_v19 = vor.u32 1.1754944e-38, %v1423_v13  ;;  %vm1422_vm2 = vcmp.eq.f32.partialorder %v1421_v14, 8.507059e+37 }
0x167b   : > { %v2122_v1 = vpop.eup %2121 }
0x167c   : > { %v1413_v3 = vmul.f32 %v2122_v1, %v1411_v12  ;;  %vm1418_vm7 = vweird.f32 %v2122_v1 }
0x167d   : > { %vm1419_vm1 = vmor %vm1417_vm0, %vm1418_vm7 }
0x167e   : > { %v1414_v4 = vsub.f32 1.0, %v1413_v3 }
0x1680   : > { %v1415_v7 = vmul.f32 %v2122_v1, %v1414_v4 }
0x1682   : > { %v1416_v10 = vadd.f32 %v2122_v1, %v1415_v7 }
0x1684   : > { %v1420_v16 = vsel %vm1419_vm1, %v2122_v1, %v1416_v10 }
0x1685   : > { %v1425_v22 = vsel %vm1422_vm2, %v1424_v19, %v1420_v16 }
0x16da   : > { %v1429_v15 = vpop.permute.xlu0 %1428 }
0x16db   : > { %v1431_v17 = vmul.f32 %v1429_v15, %v1425_v22 }
0x16dd   : > { %1433 = vrot.lane.b32.xlu1 %v1431_v17, %s2211_s16 }
0x174f   : > { %v1434_v18 = vpop.permute.xlu1 %1433 }
0x1750   : > { %v1436_v20 = vadd.f32 %v1949_v6, %v1434_v18 }
0x1752   : > { %2123 = vtanh.f32 %v1436_v20 }
0x1758   : > { %v2124_v21 = vpop.eup %2123 }
0x1759   : > { %1439 = vrot.lane.b32.xlu2 %v2124_v21, %s2211_s16 }
0x1761   : > { %1458 = vperm.xlu2 %2072, %v1456_v24  }
0x17b3   : > { %v1440_v25 = vpop.permute.xlu2 %1439 }
0x17b4   : > { %v1442_v26 = vsub.f32 %v1380_v59, %v1440_v25 }
0x17b6   : > { %1444 = vrot.lane.b32.xlu0 %v1442_v26, %s2213_s15 }
0x17bb   : > { %v1459_v29 = vpop.permute.xlu2 %1458 }
0x17bc   : > { %vm1460_vm4 = vcmp.eq.s32.totalorder %v1459_v29, 1 }
0x17be   : > { %1462 = vrot.lane.b32.xlu0 %v1380_v59, %s2211_s16 }
0x1828   : > { %v1445_v27 = vpop.permute.xlu0 %1444 }
0x1829   : > { %v1447_v28 = vmul.f32 %v1445_v27, %v1425_v22 }
0x182b   : > { %1449 = vrot.lane.b32.xlu1 %v1447_v28, %s2213_s15  ;;  %s1476_s15 = scalar_lea.vmem %s2534_s30, %s1954_s23 [#allocation6] }
0x1830   : > { %v1463_v57 = vpop.permute.xlu0 %1462 }
0x189d   : > { %v1450_v30 = vpop.permute.xlu1 %1449 }
0x189e   : > { %v1452_v31 = vadd.f32 %v2124_v21, %v1450_v30 }
0x18a0   : > { %v1465_v53 = vsel %vm1460_vm4, %v1452_v31, %v1463_v57 }
0x18a1   : > { %1467 = vrot.lane.b32.xlu1 %v1465_v53, %s2211_s16 }
0x1913   : > { %v1468_v32 = vpop.permute.xlu1 %1467 }
0x1914   : > { %v1470_v33 = vsel %vm841_vm6, %v1468_v32, 0.0  ;;  %1493 = sbr.rel (!%p2305_p9) target bundleno = 6440 (0x1928), region = 60 }
0x1915   : > { %v1471_v34 = vsel %vm1460_vm4, %v1470_v33, 0.0  ;;  %1482 = vst [vmem:[%s433_s20] sm:$0xff] %v1470_v33 }
0x1916   : > { %v1472_v54 = vpack.c.bf16 %v1471_v34, %v1471_v34 }
0x1918   : > { %1477 = vst [vmem:[%s1476_s15] sm:$0xf] %v1472_v54 }
0x191f   : > { %v1519_v35 = vld [vmem:[%s2534_s30] sm:$0xf]  ;;  %v1521_v36 = vld [vmem:[%s2534_s30 + $0x4] sm:$0xf]  ;;  %v1523_v37 = vld [vmem:[%s2534_s30 + $0x8] sm:$0xf] }
0x1920   : > { %1520 = vst [vmem:[%s1502_s21] sm:$0xf] %v1519_v35  ;;  %v1525_v38 = vld [vmem:[%s2534_s30 + $0xc] sm:$0xf]  ;;  %v1527_v39 = vld [vmem:[%s2534_s30 + $0x10] sm:$0xf] }
0x1921   : > { %1522 = vst [vmem:[%s1502_s21 + $0x8] sm:$0xf] %v1521_v36  ;;  %v1529_v40 = vld [vmem:[%s2534_s30 + $0x14] sm:$0xf]  ;;  %v1531_v41 = vld [vmem:[%s2534_s30 + $0x18] sm:$0xf] }
0x1922   : > { %1524 = vst [vmem:[%s1502_s21 + $0x10] sm:$0xf] %v1523_v37  ;;  %v1533_v42 = vld [vmem:[%s2534_s30 + $0x1c] sm:$0xf] }
0x1923   : > { %1526 = vst [vmem:[%s1502_s21 + $0x18] sm:$0xf] %v1525_v38 }
0x1924   : > { %1528 = vst [vmem:[%s1502_s21 + $0x20] sm:$0xf] %v1527_v39 }
0x1925   : > { %1530 = vst [vmem:[%s1502_s21 + $0x28] sm:$0xf] %v1529_v40 }
0x1926   : > { %1532 = vst [vmem:[%s1502_s21 + $0x30] sm:$0xf] %v1531_v41 }
0x1927   : > { %1534 = vst [vmem:[%s1502_s21 + $0x38] sm:$0xf] %v1533_v42 }
0x1928 PF: > { %s21_s29 = sadd.s32 1, %s2206_s29   ;;  %s2737_s24 = smov %s2190_s25 }
0x1929   : > { %p18_p2 = scmp.ge.s32.totalorder %s21_s29, 4   ;;  %s2738_s25 = smov %s2194_s26 }
0x192a   : > { %s2739_s26 = smov %s2303_s13  ;;  %s2740_s27 = smov %s2202_s28 }
0x192b   : > { %s2741_s28 = smov %s2743_s8  ;;  %20 = sbr.rel (!%p18_p2) target bundleno = 4 (0x4), region = 173 }
0x1930   :  { %1594 = vsyncpa [#allocation5], 1 }
0x1931   :  { %1596 = vsyncpa [#allocation5 + $0x1], 1 }

// kernel: encoder_rnn_forward.3
= control target key start
LH: loop header
LB: loop body
LE: loop exit
PB: predicated region body
PF: predicated region fallthrough
CT: control target
= control target key end

     0   :  { %s2818_s0 = inlined_call_operand.vmem [shape: s32[8,1], index: 0, kind: input, shape index: {}]   ;;  %s2819_s1 = inlined_call_operand.vmem [shape: bf16[64,256], index: 1, kind: input, shape index: {}]   ;;  %s2820_s2 = inlined_call_operand.hbm [shape: bf16[2,256,128], index: 2, kind: input, shape index: {}]   ;;  %s2821_s3 = inlined_call_operand.vmem [shape: f32[2,1,128], index: 3, kind: input, shape index: {}]   ;;  %s2822_s4 = inlined_call_operand.hbm [shape: bf16[2,128,128], index: 4, kind: input, shape index: {}]   ;;  %s2823_s5 = inlined_call_operand.vmem [shape: f32[2,1,128], index: 5, kind: input, shape index: {}]   ;;  %s2824_s6 = inlined_call_operand.vmem [shape: bf16[64,256], index: 6, kind: output, shape index: {0}]   ;;  %s2825_s7 = inlined_call_operand.vmem [shape: f32[2,8,128], index: 7, kind: output, shape index: {1}]  }
   0x1   :  { %2827 = sst [smem:[#allocation13_spill]] %s2820_s2 }
   0x2   :  { %13 = vsyncpa [#allocation5], 0 }
   0x3   :  { %15 = vsyncpa [#allocation5 + $0x1], 0 }
   0x4   :  { %16 = vsyncpa [#allocation7], 0 }
   0x5   :  { %18 = vsyncpa [#allocation7 + $0x1], 0  ;;  %s2329_s24 = smov 0   ;;  %s2331_s25 = smov 0  }
   0x6   :  { %s2333_s26 = smov 0   ;;  %s2335_s27 = smov 0  }
   0x7   :  { %s2337_s28 = smov 0   ;;  %s2339_s29 = smov 0  }
   0x8 LB: > { %s1790_s30 = sadd.s32 4294967295, %s2280_s29   ;;  %s36_s8 = sadd.s32 1, %s2276_s28  ;;  %s2280_s29 = sphi %s2339_s29, %s24_s29   ;;  %s2276_s28 = sphi %s2337_s28, %s2843_s28   ;;  %s2272_s27 = sphi %s2335_s27, %s2842_s27   ;;  %s2268_s26 = sphi %s2333_s26, %s2841_s26   ;;  %s2264_s25 = sphi %s2331_s25, %s2840_s25   ;;  %s2260_s24 = sphi %s2329_s24, %s2839_s24  }
   0x9   : > { %p38_p0 = scmp.ge.s32.totalorder %s36_s8, 2  ;;  %s98_s9 = sadd.s32 1, %s2268_s26 }
   0xa   : > { %p105_p1 = scmp.ne.s32.totalorder %s2268_s26, %s2264_s25  ;;  %p106_p2 = scmp.eq.s32.totalorder %s2280_s29, 0 }
   0xb   : > { %s2845_s8 = smov (%p38_p0, %s36_s8), 0  ;;  %p111_p4 = scmp.ne.s32.totalorder %s2264_s25, %s2260_s24 }
   0xc   : > { %2828 = sst [smem:[#allocation11_spill]] %s2845_s8  ;;  %p2365_p3 = por %p106_p2, %p105_p1 }
   0xd   : > { %s95_s11 = ssub.s32 %s2276_s28, %s2845_s8  ;;  %p112_p5 = scmp.eq.s32.totalorder %s1790_s30, 0 }
   0xe   : > { %p96_p6 = scmp.eq.s32.totalorder %s95_s11, 0  ;;  %p223_p7 = scmp.eq.s32.totalorder %s1790_s30, 1 }
   0xf   : > { %p2372_p8 = por %p112_p5, %p111_p4  ;;  %p2056_p10 = scmp.lt.s32.totalorder %s2280_s29, 2 }
  0x10   : > { %s2377_s13 = scalar_select %p96_p6, %s2268_s26, %s98_s9  }
  0x11   : > { %p2379_p9 = por %p223_p7, %p105_p1  ;;  %s2385_s15 = sand.u32 1, %s2268_s26  }
  0x12   : > { %2831 = sst [smem:[#allocation12_spill]] %s2377_s13  ;;  %s1994_s16 = sshll.u32 %s2276_s28, 7 }
  0x13   : > { %s1795_s17 = sshll.u32 %s2385_s15, 7  ;;  %s2833_s2 = sld [smem:[#allocation13_spill]] }
  0x14   : > { %s300_s22 = scalar_lea.vmem [#allocation4], %s1795_s17  ;;  %p2394_p11 = pnand %p2056_p10, %p2365_p3 }
  0x15   : > { %s308_s23 = sshll.u32 %s300_s22, 4  ;;  %p1801_p12 = scmp.ge.s32.totalorder %s2280_s29, 1  ;;  %s309_s23 = int_to_ptr.vmem [resolvable:$true] %s308_s23 }
  0x16   : > { %p350_p13 = scmp.lt.s32.totalorder %s2280_s29, 3  ;;  %s297_s30 = scalar_lea.sflag [#allocation5], %s2385_s15 }
  0x17   : > { %s2282_s9 = smov 64   ;;  %s2283_s11 = smov 4  }
  0x18   : > { %p351_p0 = pnand %p1801_p12, %p350_p13  ;;  %s1995_s17 = sshll.u32 %s2276_s28, 6 }
  0x19   : > { %s305_s20 = scalar_lea.hbm %s2833_s2, %s1994_s16  ;;  %s1798_s16 = sshll.u32 %s2385_s15, 6 }
  0x1a   : > { %s306_s21 = sshll.u32 %s305_s20, 4  ;;  %s333_s10 = scalar_lea.hbm %s2822_s4, %s1995_s17  ;;  %s307_s21 = int_to_ptr.hbm [resolvable:$true] %s306_s21 }
  0x1b   : > { %2052 = dma.hbm_to_vmem [thread:$0]  (!%p2394_p11), %s307_s21, 2048, %s309_s23, %s297_s30, %s2282_s9, %s2282_s9, %s2283_s11  }
  0x1c   : > { %s334_s20 = sshll.u32 %s333_s10, 4  ;;  %s328_s22 = scalar_lea.vmem [#allocation6], %s1798_s16  ;;  %s335_s20 = int_to_ptr.hbm [resolvable:$true] %s334_s20 }
  0x1d   : > { %s336_s2 = sshll.u32 %s328_s22, 4  ;;  %s325_s8 = scalar_lea.sflag [#allocation7], %s2385_s15  ;;  %s337_s2 = int_to_ptr.vmem [resolvable:$true] %s336_s2 }
  0x1e   : > { %2055 = dma.hbm_to_vmem [thread:$0]  (!%p2394_p11), %s335_s20, 1024, %s337_s2, %s325_s8, %s2282_s9, %s2282_s9, %s2283_s11  }
  0x1f   : > { %354 = sbr.rel (%p351_p0) target bundleno = 6454 (0x1936), region = 44  ;;  %s2412_s13 = sand.u32 (!%p351_p0), 1, %s2264_s25  }
  0x20   : > { %s1802_s21 = sshll.u32 (!%p351_p0), %s2412_s13, 7  ;;  %s357_s23 = scalar_lea.sflag (!%p351_p0), [#allocation5], %s2412_s13 }
  0x21   : > { %s2416_s30 = scalar_lea.vmem (!%p351_p0), [#allocation4], %s1802_s21 }
  0x24   : > { %2251 = dma.done.wait (%p2372_p8), %s357_s23, 2048  }
  0x25   : > { %2253 = vsyncadd (%p2372_p8), %s357_s23, 4294965248  ;;  %s1803_s2 = sshll.u32 %s2412_s13, 6  ;;  %s367_s8 = scalar_lea.sflag [#allocation7], %s2412_s13 }
  0x26   : > { %s2424_s15 = scalar_lea.vmem [#allocation6], %s1803_s2 }
  0x27   : > { %2255 = dma.done.wait (%p2372_p8), %s367_s8, 1024  }
  0x28   : > { %2257 = vsyncadd (%p2372_p8), %s367_s8, 4294966272  ;;  %v2011_v0 = vld [vmem:[%s2416_s30 + $0x38] sm:$0xff]  ;;  %v2010_v3 = vld [vmem:[%s2416_s30 + $0x30] sm:$0xff]  ;;  %p441_p1 = scmp.lt.s32.totalorder %s2272_s27, 1  ;;  %v2284_v30 = vmov 0.0|0.0   ;;  %s2285_s23 = smov 64  }
  0x29   : > { %v2432_v1 = vld [vmem:[%s2424_s15 + $0x38] sm:$0xff]  ;;  %645 = vmatpush.bf16.msra.mxu0 %v2011_v0  ;;  %v2438_v4 = vld [vmem:[%s2424_s15 + $0x30] sm:$0xff]  ;;  %v2009_v6 = vld [vmem:[%s2416_s30 + $0x28] sm:$0xff]  ;;  %s2287_s8 = smov 32   ;;  %s1804_s16 = sshll.u32 %s2412_s13, 5  ;;  %vm863_vm6 = vcmask 261120  }
  0x2a   : > { %v2019_v2 = vld [vmem:[%s2416_s30 + $0x78] sm:$0xff]  ;;  %786 = vmatpush.bf16.msra.mxu2 %v2432_v1  ;;  %v2018_v5 = vld [vmem:[%s2416_s30 + $0x70] sm:$0xff]  ;;  %878 = vmatpush.bf16.msra.mxu3 %v2432_v1  ;;  %v2446_v7 = vld [vmem:[%s2424_s15 + $0x28] sm:$0xff]  ;;  %s2450_s12 = scalar_select %p441_p1, %s2272_s27, 1 }
  0x2b   : > { %674 = vmatpush.bf16.msra.mxu1 %v2019_v2  ;;  %v2017_v8 = vld [vmem:[%s2416_s30 + $0x68] sm:$0xff]  ;;  %v2008_v9 = vld [vmem:[%s2416_s30 + $0x20] sm:$0xff]  ;;  %v2007_v12 = vld [vmem:[%s2416_s30 + $0x18] sm:$0xff]  ;;  %s2628_s19 = scalar_lea.vmem [#allocation8], %s1804_s16  ;;  %s2040_s13 = smul.u32 40, %s2272_s27 }
  0x2c   : > { %s443_s11 = scalar_lea.vmem %s2821_s3, %s2450_s12  ;;  %v2460_v10 = vld [vmem:[%s2424_s15 + $0x20] sm:$0xff]  ;;  %v2467_v13 = vld [vmem:[%s2424_s15 + $0x18] sm:$0xff]  ;;  %v2006_v15 = vld [vmem:[%s2416_s30 + $0x10] sm:$0xff]  ;;  %s2512_s2 = scalar_lea.vmem %s2823_s5, %s2450_s12 }
  0x2d   : > { %646 = vmatpush.bf16.msra.mxu0 %v2010_v3  ;;  %v2016_v11 = vld [vmem:[%s2416_s30 + $0x60] sm:$0xff]  ;;  %v2015_v14 = vld [vmem:[%s2416_s30 + $0x58] sm:$0xff]  ;;  %v2474_v16 = vld [vmem:[%s2424_s15 + $0x10] sm:$0xff]  ;;  %s1668_s20 = scalar_lea.vmem [#allocation2], %s2040_s13  ;;  %s872_s22 = smul.u32 5, %s2272_s27 }
  0x2e   : > { %787 = vmatpush.bf16.msra.mxu2 %v2438_v4  ;;  %879 = vmatpush.bf16.msra.mxu3 %v2438_v4  ;;  %v2014_v17 = vld [vmem:[%s2416_s30 + $0x50] sm:$0xff]  ;;  %v2005_v18 = vld [vmem:[%s2416_s30 + $0x8] sm:$0xff]  ;;  %v2004_v21 = vld [vmem:[%s2416_s30] sm:$0xff]  ;;  %s2041_s9 = smul.u32 24, %s2272_s27 }
  0x2f   : > { %675 = vmatpush.bf16.msra.mxu1 %v2018_v5  ;;  %v2481_v19 = vld [vmem:[%s2424_s15 + $0x8] sm:$0xff]  ;;  %v2488_v22 = vld [vmem:[%s2424_s15] sm:$0xff]  ;;  %v1816_v31 = vld [vmem:[%s2819_s1 + $0x10] sm:$0xf]  ;;  %s730_s15 = smul.u32 7, %s2272_s27  ;;  %s873_s21 = sadd.s32 1, %s872_s22 }
  0x30   : > { %v2013_v20 = vld [vmem:[%s2416_s30 + $0x48] sm:$0xff]  ;;  %v1808_v23 = vld [vmem:[%s2819_s1] sm:$0xf]  ;;  %v1996_v26 = vld [vmem:[%s2819_s1 + $0x4] sm:$0xf]  ;;  %s1674_s16 = scalar_lea.vmem [#allocation2], %s2041_s9 }
  0x31   : > { %647 = vmatpush.bf16.msra.mxu0 %v2009_v6  ;;  %v1997_v24 = vld [vmem:[%s2819_s1 + $0x4] sm:$0xf0]  ;;  %v2012_v25 = vld [vmem:[%s2416_s30 + $0x40] sm:$0xff]  ;;  %v1810_v27 = vld [vmem:[%s2819_s1 + $0x8] sm:$0xf0] }
  0x32   : > { %788 = vmatpush.bf16.msra.mxu2 %v2446_v7  ;;  %880 = vmatpush.bf16.msra.mxu3 %v2446_v7  ;;  %v1809_v28 = vor.u32 %v1997_v24, %v1808_v23  ;;  %v1813_v29 = vor.u32 %v1996_v26, %v1810_v27  ;;  %v1999_v32 = vld [vmem:[%s2819_s1 + $0x14] sm:$0xf0]  ;;  %v1998_v33 = vld [vmem:[%s2819_s1 + $0x14] sm:$0xf]  ;;  %v1818_v34 = vld [vmem:[%s2819_s1 + $0x18] sm:$0xf0] }
  0x33   : > { %676 = vmatpush.bf16.msra.mxu1 %v2017_v8  ;;  %v1817_v35 = vor.u32 %v1999_v32, %v1816_v31  ;;  %v1821_v36 = vor.u32 %v1998_v33, %v1818_v34  ;;  %v1824_v37 = vld [vmem:[%s2819_s1 + $0x20] sm:$0xf]  ;;  %v2001_v38 = vld [vmem:[%s2819_s1 + $0x24] sm:$0xf0]  ;;  %v2000_v39 = vld [vmem:[%s2819_s1 + $0x24] sm:$0xf] }
  0x34   : > { %v1826_v40 = vld [vmem:[%s2819_s1 + $0x28] sm:$0xf0]  ;;  %v1825_v41 = vor.u32 %v2001_v38, %v1824_v37  ;;  %v1832_v43 = vld [vmem:[%s2819_s1 + $0x30] sm:$0xf]  ;;  %v2003_v44 = vld [vmem:[%s2819_s1 + $0x34] sm:$0xf0] }
  0x35   : > { %648 = vmatpush.bf16.msra.mxu0 %v2008_v9  ;;  %v1829_v42 = vor.u32 %v2000_v39, %v1826_v40  ;;  %v2002_v45 = vld [vmem:[%s2819_s1 + $0x34] sm:$0xf]  ;;  %v1834_v46 = vld [vmem:[%s2819_s1 + $0x38] sm:$0xf0]  ;;  %v1833_v47 = vor.u32 %v2003_v44, %v1832_v43  ;;  %v2115_v49 = vld [vmem:[%s443_s11] ss:$0 sm:$0xff] }
  0x36   : > { %789 = vmatpush.bf16.msra.mxu2 %v2460_v10  ;;  %881 = vmatpush.bf16.msra.mxu3 %v2460_v10  ;;  %v1837_v48 = vor.u32 %v2002_v45, %v1834_v46  ;;  %v2594_v54 = vld [vmem:[%s2512_s2] ss:$0 sm:$0xff]  ;;  %s731_s11 = smul.u32 56, %s2272_s27  ;;  %vm2623_vm7 = vmpackc.low %vm863_vm6, %vm863_vm6 }
  0x37   : > { %677 = vmatpush.bf16.msra.mxu1 %v2016_v11 }
  0x38   : > { %s732_s30 = scalar_lea.vmem [#allocation2], %s731_s11  ;;  %s867_s17 = sshra.s32 %s731_s11, 3 }
  0x39   : > { %649 = vmatpush.bf16.msra.mxu0 %v2007_v12  ;;  %s1935_s18 = sshll.u32 %s867_s17, 2  ;;  %s2029_s11 = sadd.s32 8, %s2040_s13 }
  0x3a   : > { %790 = vmatpush.bf16.msra.mxu2 %v2467_v13  ;;  %882 = vmatpush.bf16.msra.mxu3 %v2467_v13  ;;  %s870_s10 = scalar_lea.vmem %s2628_s19, %s1935_s18 [#allocation8]  ;;  %s962_s17 = smul.u32 3, %s2272_s27 }
  0x3b   : > { %678 = vmatpush.bf16.msra.mxu1 %v2015_v14 }
  0x3c   : > { %s963_s18 = sadd.s32 2, %s962_s17  ;;  %s1141_s17 = ssub.s32 4, %s2272_s27 }
  0x3d   : > { %650 = vmatpush.bf16.msra.mxu0 %v2006_v15 }
  0x3e   : > { %791 = vmatpush.bf16.msra.mxu2 %v2474_v16  ;;  %883 = vmatpush.bf16.msra.mxu3 %v2474_v16 }
  0x3f   : > { %679 = vmatpush.bf16.msra.mxu1 %v2014_v17 }
  0x41   : > { %651 = vmatpush.bf16.msra.mxu0 %v2005_v18 }
  0x42   : > { %792 = vmatpush.bf16.msra.mxu2 %v2481_v19  ;;  %884 = vmatpush.bf16.msra.mxu3 %v2481_v19 }
  0x43   : > { %680 = vmatpush.bf16.msra.mxu1 %v2013_v20 }
  0x45   : > { %652 = vmatpush.bf16.msra.mxu0 %v2004_v21 }
  0x46   : > { %793 = vmatpush.bf16.msra.mxu2 %v2488_v22  ;;  %885 = vmatpush.bf16.msra.mxu3 %v2488_v22 }
  0x47   : > { %681 = vmatpush.bf16.msra.mxu1 %v2012_v25 }
  0x48   : > { %653 = vmatmul.bf16.vlgmr.msra.gmra.mxu0 %v1809_v28 }
  0x49   : > { %794 = vmatmul.bf16.vlgmr.msra.gmra.mxu2 %v2284_v30  ;;  %1146 = vmatpush.bf16.msrb.mxu0 %v2432_v1 }
  0x4a   : > { %968 = vmatpush.bf16.msrb.mxu2 %v2432_v1  ;;  %1057 = vmatpush.bf16.msrb.mxu3 %v2432_v1 }
  0x4b   : > { %682 = vmatmul.bf16.vlgmr.msra.gmra.mxu1 %v1813_v29 }
  0x4c   : > { %1236 = vmatpush.bf16.msrb.mxu1 %v2432_v1 }
  0x4d   : > { %1147 = vmatpush.bf16.msrb.mxu0 %v2438_v4 }
  0x4e   : > { %969 = vmatpush.bf16.msrb.mxu2 %v2438_v4  ;;  %1058 = vmatpush.bf16.msrb.mxu3 %v2438_v4 }
  0x50   : > { %1237 = vmatpush.bf16.msrb.mxu1 %v2438_v4 }
  0x51   : > { %1148 = vmatpush.bf16.msrb.mxu0 %v2446_v7 }
  0x52   : > { %970 = vmatpush.bf16.msrb.mxu2 %v2446_v7  ;;  %1059 = vmatpush.bf16.msrb.mxu3 %v2446_v7 }
  0x54   : > { %1238 = vmatpush.bf16.msrb.mxu1 %v2446_v7 }
  0x55   : > { %1149 = vmatpush.bf16.msrb.mxu0 %v2460_v10 }
  0x56   : > { %971 = vmatpush.bf16.msrb.mxu2 %v2460_v10  ;;  %1060 = vmatpush.bf16.msrb.mxu3 %v2460_v10 }
  0x58   : > { %1239 = vmatpush.bf16.msrb.mxu1 %v2460_v10  ;;  %658 = vmatmul.bf16.gmra.mxu0 %v1817_v35 }
  0x59   : > { %1150 = vmatpush.bf16.msrb.mxu0 %v2467_v13 }
  0x5a   : > { %972 = vmatpush.bf16.msrb.mxu2 %v2467_v13  ;;  %1061 = vmatpush.bf16.msrb.mxu3 %v2467_v13 }
  0x5b   : > { %687 = vmatmul.bf16.gmra.mxu1 %v1821_v36 }
  0x5c   : > { %1240 = vmatpush.bf16.msrb.mxu1 %v2467_v13 }
  0x5d   : > { %1151 = vmatpush.bf16.msrb.mxu0 %v2474_v16 }
  0x5e   : > { %973 = vmatpush.bf16.msrb.mxu2 %v2474_v16  ;;  %1062 = vmatpush.bf16.msrb.mxu3 %v2474_v16 }
  0x60   : > { %1241 = vmatpush.bf16.msrb.mxu1 %v2474_v16 }
  0x61   : > { %1152 = vmatpush.bf16.msrb.mxu0 %v2481_v19 }
  0x62   : > { %974 = vmatpush.bf16.msrb.mxu2 %v2481_v19  ;;  %1063 = vmatpush.bf16.msrb.mxu3 %v2481_v19 }
  0x64   : > { %1242 = vmatpush.bf16.msrb.mxu1 %v2481_v19 }
  0x65   : > { %1153 = vmatpush.bf16.msrb.mxu0 %v2488_v22 }
  0x66   : > { %975 = vmatpush.bf16.msrb.mxu2 %v2488_v22  ;;  %1064 = vmatpush.bf16.msrb.mxu3 %v2488_v22 }
  0x68   : > { %1243 = vmatpush.bf16.msrb.mxu1 %v2488_v22  ;;  %663 = vmatmul.bf16.gmra.mxu0 %v1825_v41 }
  0x6a   : > { %1326 = vmatpush.bf16.msra.mxu2 %v2432_v1 }
  0x6b   : > { %692 = vmatmul.bf16.gmra.mxu1 %v1829_v42 }
  0x6e   : > { %1327 = vmatpush.bf16.msra.mxu2 %v2438_v4 }
  0x72   : > { %1328 = vmatpush.bf16.msra.mxu2 %v2446_v7 }
  0x76   : > { %1329 = vmatpush.bf16.msra.mxu2 %v2460_v10 }
  0x78   : > { %668 = vmatmul.bf16.gmra.mxu0 %v1833_v47 }
  0x7a   : > { %1330 = vmatpush.bf16.msra.mxu2 %v2467_v13 }
  0x7b   : > { %697 = vmatmul.bf16.gmra.mxu1 %v1837_v48 }
  0x7e   : > { %1331 = vmatpush.bf16.msra.mxu2 %v2474_v16 }
  0x82   : > { %1332 = vmatpush.bf16.msra.mxu2 %v2481_v19 }
  0x86   : > { %1333 = vmatpush.bf16.msra.mxu2 %v2488_v22 }
  0xc5   : > { %v654_v50 = vpop.f32.mrf.mxu0 }
  0xc6   : > { %v655_v51 = vadd.f32 %v2115_v49, %v654_v50  ;;  %v2286_v50 = vmov 0.0  }
  0xc8   : > { %v683_v52 = vpop.f32.mrf.mxu1 }
  0xc9   : > { %v684_v53 = vadd.f32 %v683_v52, %v655_v51 }
  0xcb   : > { %703 = vst [vmem:[#allocation2] sm:$0xff] %v684_v53  ;;  %v2288_v53 = vmov 0  }
  0xcc   : > { %v795_v55 = vpop.f32.mrf.mxu2  ;;  %2112 = vset.pattern.permute.xlu2 %v2288_v53  ;;  %2113 = vset.pattern.permute.xlu1 %v2288_v53 }
  0xcd   : > { %v796_v56 = vadd.f32 %v2594_v54, %v795_v55  ;;  %v656_v57 = vpop.f32.mrf.mxu0  ;;  %2114 = vset.pattern.permute.xlu0 %v2288_v53 }
  0xce   : > { %v657_v58 = vadd.f32 %v2115_v49, %v656_v57  ;;  %v2612_v57 = vld [vmem:[%s2818_s0] sm:$0xff] }
  0xcf   : > { %820 = vrot.lane.b32.xlu0 %v796_v56, %s2285_s23 }
  0xd0   : > { %v685_v59 = vpop.f32.mrf.mxu1 }
  0xd1   : > { %v686_v60 = vadd.f32 %v685_v59, %v657_v58  ;;  %v847_v58 = vstv %s730_s15 }
  0xd2   : > { %vm848_vm4 = vcmp.gt.s32.totalorder %v2612_v57, %v847_v58 }
  0xd3   : > { %704 = vst [vmem:[#allocation2 + $0x8] sm:$0xff] %v686_v60  ;;  %v849_v59 = vsel %vm848_vm4, 1, %v2288_v53 }
  0xd4   : > { %v797_v61 = vpop.f32.mrf.mxu2 }
  0xd5   : > { %v659_v62 = vpop.f32.mrf.mxu0 }
  0xd6   : > { %v660_v63 = vadd.f32 %v2115_v49, %v659_v62 }
  0xd8   : > { %v688_v0 = vpop.f32.mrf.mxu1 }
  0xd9   : > { %v689_v2 = vadd.f32 %v688_v0, %v660_v63 }
  0xdb   : > { %705 = vst [vmem:[#allocation2 + $0x10] sm:$0xff] %v689_v2 }
  0xdd   : > { %v661_v3 = vpop.f32.mrf.mxu0 }
  0xde   : > { %v662_v5 = vadd.f32 %v2115_v49, %v661_v3 }
  0xe0   : > { %v690_v6 = vpop.f32.mrf.mxu1 }
  0xe1   : > { %v691_v8 = vadd.f32 %v690_v6, %v662_v5 }
  0xe3   : > { %706 = vst [vmem:[#allocation2 + $0x18] sm:$0xff] %v691_v8 }
  0xe5   : > { %v664_v9 = vpop.f32.mrf.mxu0 }
  0xe6   : > { %v665_v11 = vadd.f32 %v2115_v49, %v664_v9 }
  0xe8   : > { %v693_v12 = vpop.f32.mrf.mxu1 }
  0xe9   : > { %v694_v14 = vadd.f32 %v693_v12, %v665_v11 }
  0xeb   : > { %707 = vst [vmem:[#allocation2 + $0x20] sm:$0xff] %v694_v14 }
  0xed   : > { %v666_v15 = vpop.f32.mrf.mxu0 }
  0xee   : > { %v667_v17 = vadd.f32 %v2115_v49, %v666_v15 }
  0xf0   : > { %v695_v18 = vpop.f32.mrf.mxu1 }
  0xf1   : > { %v696_v20 = vadd.f32 %v695_v18, %v667_v17 }
  0xf3   : > { %708 = vst [vmem:[#allocation2 + $0x28] sm:$0xff] %v696_v20 }
  0xf5   : > { %v669_v21 = vpop.f32.mrf.mxu0 }
  0xf6   : > { %v670_v23 = vadd.f32 %v2115_v49, %v669_v21 }
  0xf8   : > { %v698_v24 = vpop.f32.mrf.mxu1 }
  0xf9   : > { %v699_v25 = vadd.f32 %v698_v24, %v670_v23 }
  0xfb   : > { %709 = vst [vmem:[#allocation2 + $0x30] sm:$0xff] %v699_v25 }
  0xfd   : > { %v671_v26 = vpop.f32.mrf.mxu0 }
  0xfe   : > { %v672_v27 = vadd.f32 %v2115_v49, %v671_v26 }
 0x100   : > { %v700_v28 = vpop.f32.mrf.mxu1 }
 0x101   : > { %v701_v29 = vadd.f32 %v700_v28, %v672_v27 }
 0x103   : > { %710 = vst [vmem:[#allocation2 + $0x38] sm:$0xff] %v701_v29 }
 0x10a   : > { %v733_v30 = vld [vmem:[%s732_s30] sm:$0xff]  ;;  %s957_s30 = sshra.s32 %s2029_s11, 3 }
 0x10b   : > { %v799_v31 = vadd.f32 %v796_v56, %v733_v30  ;;  %s1943_s15 = sshll.u32 %s957_s30, 2  ;;  %s1052_s30 = sadd.s32 3, %s2272_s27 }
 0x10c   : > { %s960_s24 = scalar_lea.vmem %s2628_s19, %s1943_s15 [#allocation8] }
 0x10d   : > { %v1934_v32 = vmul.f32 -1.442695, %v799_v31 }
 0x10f   : > { %2117 = vpow2.f32 %v1934_v32  ;;  %v938_v32 = vstv %s873_s21  ;;  %s2032_s21 = sshll.u32 %s2272_s27, 3 }
 0x110   : > { %vm939_vm12 = vcmp.gt.s32.totalorder %v2612_v57, %v938_v32  ;;  %s1679_s11 = scalar_lea.vmem [#allocation2], %s2032_s21  ;;  %s2033_s15 = sadd.s32 24, %s2032_s21 }
 0x111   : > { %s2042_s21 = smul.u32 4294967272, %s2272_s27 }
 0x115   : > { %v2118_v33 = vpop.eup %2117 }
 0x116   : > { %v803_v34 = vadd.f32 1.0, %v2118_v33  ;;  %v940_v33 = vsel %vm939_vm12, 1, %v2288_v53 }
 0x118   : > { %2119 = vrcp.f32 %v803_v34  ;;  %v815_v40 = vand.u32 2147483648, %v803_v34  ;;  %vm809_vm1 = vweird.f32 %v803_v34  ;;  %v813_v41 = vand.u32 2147483647, %v803_v34 }
 0x11a   : > { %v816_v43 = vor.u32 1.1754944e-38, %v815_v40  ;;  %vm814_vm3 = vcmp.eq.f32.partialorder %v813_v41, 8.507059e+37 }
 0x11e   : > { %v2120_v35 = vpop.eup %2119 }
 0x11f   : > { %v805_v36 = vmul.f32 %v2120_v35, %v803_v34  ;;  %vm810_vm0 = vweird.f32 %v2120_v35 }
 0x120   : > { %vm811_vm2 = vmor %vm809_vm1, %vm810_vm0 }
 0x121   : > { %v806_v37 = vsub.f32 1.0, %v805_v36 }
 0x123   : > { %v807_v38 = vmul.f32 %v2120_v35, %v806_v37 }
 0x125   : > { %v808_v39 = vadd.f32 %v2120_v35, %v807_v38 }
 0x127   : > { %v812_v42 = vsel %vm811_vm2, %v2120_v35, %v808_v39 }
 0x128   : > { %v817_v45 = vsel %vm814_vm3, %v816_v43, %v812_v42 }
 0x141   : > { %v821_v44 = vpop.permute.xlu0 %820 }
 0x142   : > { %v823_v46 = vmul.f32 %v821_v44, %v817_v45 }
 0x144   : > { %825 = vrot.lane.b32.xlu0 %v823_v46, %s2285_s23 }
 0x14c   : > { %855 = vrot.lane.b32.xlu0 %v2286_v50, %s2285_s23 }
 0x1b6   : > { %v826_v47 = vpop.permute.xlu0 %825 }
 0x1b7   : > { %v828_v48 = vadd.f32 %v826_v47, %v733_v30 }
 0x1b9   : > { %2121 = vtanh.f32 %v828_v48 }
 0x1be   : > { %v856_v61 = vpop.permute.xlu0 %855 }
 0x1bf   : > { %v2122_v49 = vpop.eup %2121 }
 0x1c0   : > { %831 = vrot.lane.b32.xlu1 %v2122_v49, %s2285_s23 }
 0x232   : > { %v832_v51 = vpop.permute.xlu1 %831 }
 0x233   : > { %v834_v52 = vsub.f32 0.0, %v832_v51 }
 0x235   : > { %836 = vrot.lane.b32.xlu1 %v834_v52, %s2287_s8 }
 0x2a7   : > { %v837_v55 = vpop.permute.xlu1 %836 }
 0x2a8   : > { %v839_v56 = vmul.f32 %v837_v55, %v817_v45 }
 0x2aa   : > { %841 = vrot.lane.b32.xlu2 %v839_v56, %s2287_s8 }
 0x2b2   : > { %851 = vperm.xlu2 %2112, %v849_v59  }
 0x304   : > { %v842_v60 = vpop.permute.xlu2 %841 }
 0x305   : > { %v844_v62 = vadd.f32 %v2122_v49, %v842_v60  ;;  %v1946_v49 = vld [vmem:[%s1674_s16 + $0x10] sm:$0xff] }
 0x30c   : > { %v852_v63 = vpop.permute.xlu2 %851 }
 0x30d   : > { %vm853_vm5 = vcmp.eq.s32.totalorder %v852_v63, 1 }
 0x30e   : > { %v858_v0 = vsel %vm853_vm5, %v844_v62, %v856_v61 }
 0x30f   : > { %860 = vrot.lane.b32.xlu1 %v858_v0, %s2285_s23 }
 0x381   : > { %v861_v2 = vpop.permute.xlu1 %860 }
 0x382   : > { %v864_v5 = vsel %vm863_vm6, %v861_v2, 0.0  ;;  %v1940_v6 = vpack.c.bf16 %v861_v2, %v861_v2 }
 0x383   : > { %v865_v8 = vsel %vm853_vm5, %v864_v5, 0.0 }
 0x384   : > { %v866_v9 = vpack.c.bf16 %v865_v8, %v865_v8  ;;  %1941 = vmatmul.msk.bf16.vlgmr.msra.gmra.mxu3 %vm2623_vm7, %v1940_v6 }
 0x385   : > { %1416 = vmatpush.bf16.msra.mxu3 %v2432_v1 }
 0x386   : > { %871 = vst [vmem:[%s870_s10] sm:$0xf] %v866_v9  ;;  %s2031_s10 = sadd.s32 16, %s2041_s9 }
 0x387   : > { %s1047_s13 = sshra.s32 %s2031_s10, 3 }
 0x389   : > { %1417 = vmatpush.bf16.msra.mxu3 %v2438_v4  ;;  %v1938_v4 = vld [vmem:[%s1668_s20 + $0x8] sm:$0xff]  ;;  %s1951_s20 = sshll.u32 %s1047_s13, 2 }
 0x38a   : > { %s1050_s22 = scalar_lea.vmem %s2628_s19, %s1951_s20 [#allocation8] }
 0x38d   : > { %1418 = vmatpush.bf16.msra.mxu3 %v2446_v7 }
 0x391   : > { %1419 = vmatpush.bf16.msra.mxu3 %v2460_v10 }
 0x395   : > { %1420 = vmatpush.bf16.msra.mxu3 %v2467_v13 }
 0x399   : > { %1421 = vmatpush.bf16.msra.mxu3 %v2474_v16 }
 0x39d   : > { %1422 = vmatpush.bf16.msra.mxu3 %v2481_v19 }
 0x3a1   : > { %1423 = vmatpush.bf16.msra.mxu3 %v2488_v22 }
 0x407   : > { %v887_v11 = vpop.f32.mrf.mxu3 }
 0x408   : > { %v888_v12 = vadd.f32 %v2594_v54, %v887_v11 }
 0x40a   : > { %912 = vrot.lane.b32.xlu2 %v888_v12, %s2285_s23  ;;  %v891_v7 = vadd.f32 %v1938_v4, %v888_v12 }
 0x40c   : > { %v1942_v10 = vmul.f32 -1.442695, %v891_v7 }
 0x40e   : > { %2123 = vpow2.f32 %v1942_v10 }
 0x40f   : > { %v889_v1 = vpop.f32.mrf.mxu3 }
 0x410   : > { %v1028_v1 = vstv %s963_s18  ;;  %s2706_s18 = sshll.u32 %s1141_s17, 3 }
 0x411   : > { %vm1029_vm2 = vcmp.gt.s32.totalorder %v2612_v57, %v1028_v1  ;;  %s1143_s10 = scalar_lea.vmem [#allocation2], %s2706_s18  ;;  %s1225_s13 = sshra.s32 %s2706_s18, 3 }
 0x412   : > { %s1965_s20 = sshll.u32 %s1225_s13, 2  ;;  %s2043_s18 = smul.u32 4294967256, %s2272_s27 }
 0x413   : > { %s1320_s13 = smul.u32 4294967291, %s2272_s27 }
 0x414   : > { %v2124_v13 = vpop.eup %2123 }
 0x415   : > { %v895_v14 = vadd.f32 1.0, %v2124_v13 }
 0x417   : > { %2125 = vrcp.f32 %v895_v14  ;;  %v907_v18 = vand.u32 2147483648, %v895_v14  ;;  %vm901_vm9 = vweird.f32 %v895_v14  ;;  %v905_v20 = vand.u32 2147483647, %v895_v14 }
 0x419   : > { %v908_v23 = vor.u32 1.1754944e-38, %v907_v18  ;;  %vm906_vm11 = vcmp.eq.f32.partialorder %v905_v20, 8.507059e+37 }
 0x41d   : > { %v2126_v16 = vpop.eup %2125 }
 0x41e   : > { %v897_v19 = vmul.f32 %v2126_v16, %v895_v14  ;;  %vm902_vm8 = vweird.f32 %v2126_v16 }
 0x41f   : > { %vm903_vm10 = vmor %vm901_vm9, %vm902_vm8 }
 0x420   : > { %v898_v15 = vsub.f32 1.0, %v897_v19 }
 0x422   : > { %v899_v22 = vmul.f32 %v2126_v16, %v898_v15 }
 0x424   : > { %v900_v17 = vadd.f32 %v2126_v16, %v899_v22 }
 0x426   : > { %v904_v21 = vsel %vm903_vm10, %v2126_v16, %v900_v17 }
 0x427   : > { %v909_v25 = vsel %vm906_vm11, %v908_v23, %v904_v21 }
 0x464   : > { %v913_v24 = vpop.permute.xlu2 %912 }
 0x465   : > { %v915_v26 = vmul.f32 %v913_v24, %v909_v25 }
 0x467   : > { %917 = vrot.lane.b32.xlu0 %v915_v26, %s2285_s23 }
 0x4d9   : > { %v918_v27 = vpop.permute.xlu0 %917 }
 0x4da   : > { %v920_v28 = vadd.f32 %v1938_v4, %v918_v27  ;;  %v1030_v4 = vsel %vm1029_vm2, 1, %v2288_v53 }
 0x4dc   : > { %2127 = vtanh.f32 %v920_v28  ;;  %v1954_v28 = vld [vmem:[%s1679_s11 + $0x18] sm:$0xff]  ;;  %s1689_s11 = scalar_lea.vmem [#allocation2], %s2042_s21 }
 0x4e2   : > { %v2128_v29 = vpop.eup %2127 }
 0x4e3   : > { %923 = vrot.lane.b32.xlu1 %v2128_v29, %s2285_s23 }
 0x4eb   : > { %942 = vperm.xlu1 %2113, %v940_v33  }
 0x555   : > { %v924_v30 = vpop.permute.xlu1 %923 }
 0x556   : > { %v926_v31 = vsub.f32 %v864_v5, %v924_v30 }
 0x558   : > { %928 = vrot.lane.b32.xlu2 %v926_v31, %s2287_s8 }
 0x55d   : > { %v943_v36 = vpop.permute.xlu1 %942 }
 0x55e   : > { %vm944_vm13 = vcmp.eq.s32.totalorder %v943_v36, 1 }
 0x560   : > { %946 = vrot.lane.b32.xlu2 %v864_v5, %s2285_s23 }
 0x5b2   : > { %v929_v34 = vpop.permute.xlu2 %928 }
 0x5b3   : > { %v931_v35 = vmul.f32 %v929_v34, %v909_v25 }
 0x5b5   : > { %933 = vrot.lane.b32.xlu0 %v931_v35, %s2287_s8 }
 0x5ba   : > { %v947_v39 = vpop.permute.xlu2 %946 }
 0x627   : > { %v934_v37 = vpop.permute.xlu0 %933 }
 0x628   : > { %v936_v38 = vadd.f32 %v2128_v29, %v934_v37 }
 0x62a   : > { %v949_v40 = vsel %vm944_vm13, %v936_v38, %v947_v39 }
 0x62b   : > { %951 = vrot.lane.b32.xlu0 %v949_v40, %s2285_s23 }
 0x69d   : > { %v952_v41 = vpop.permute.xlu0 %951 }
 0x69e   : > { %v954_v42 = vsel %vm863_vm6, %v952_v41, 0.0  ;;  %v1948_v43 = vpack.c.bf16 %v952_v41, %v952_v41 }
 0x69f   : > { %v955_v44 = vsel %vm944_vm13, %v954_v42, 0.0 }
 0x6a0   : > { %v956_v45 = vpack.c.bf16 %v955_v44, %v955_v44  ;;  %1949 = vmatmul.msk.bf16.vlgmr.msrb.gmra.mxu2 %vm2623_vm7, %v1948_v43 }
 0x6a2   : > { %961 = vst [vmem:[%s960_s24] sm:$0xf] %v956_v45  ;;  %s1136_s24 = sshra.s32 %s2033_s15, 3 }
 0x6a3   : > { %s1959_s9 = sshll.u32 %s1136_s24, 2  ;;  %s2035_s24 = sadd.s32 40, %s2042_s21 }
 0x6a4   : > { %s1139_s16 = scalar_lea.vmem %s2628_s19, %s1959_s9 [#allocation8]  ;;  %s1315_s9 = sshra.s32 %s2035_s24, 3 }
 0x723   : > { %v977_v46 = vpop.f32.mrf.mxu2 }
 0x724   : > { %v978_v47 = vadd.f32 %v2594_v54, %v977_v46 }
 0x726   : > { %1002 = vrot.lane.b32.xlu1 %v978_v47, %s2285_s23  ;;  %v981_v50 = vadd.f32 %v1946_v49, %v978_v47 }
 0x728   : > { %v1950_v51 = vmul.f32 -1.442695, %v981_v50 }
 0x72a   : > { %2129 = vpow2.f32 %v1950_v51 }
 0x72b   : > { %v979_v48 = vpop.f32.mrf.mxu2 }
 0x72c   : > { %v1117_v48 = vstv %s1052_s30  ;;  %s1230_s30 = smul.u32 4294967293, %s2272_s27 }
 0x72d   : > { %vm1118_vm10 = vcmp.gt.s32.totalorder %v2612_v57, %v1117_v48 }
 0x72e   : > { %s1231_s15 = sadd.s32 5, %s1230_s30 }
 0x730   : > { %v2130_v52 = vpop.eup %2129 }
 0x731   : > { %v985_v55 = vadd.f32 1.0, %v2130_v52 }
 0x733   : > { %2131 = vrcp.f32 %v985_v55  ;;  %v997_v62 = vand.u32 2147483648, %v985_v55  ;;  %vm991_vm15 = vweird.f32 %v985_v55  ;;  %v995_v63 = vand.u32 2147483647, %v985_v55 }
 0x735   : > { %v998_v2 = vor.u32 1.1754944e-38, %v997_v62  ;;  %vm996_vm1 = vcmp.eq.f32.partialorder %v995_v63, 8.507059e+37 }
 0x739   : > { %v2132_v56 = vpop.eup %2131 }
 0x73a   : > { %v987_v58 = vmul.f32 %v2132_v56, %v985_v55  ;;  %vm992_vm14 = vweird.f32 %v2132_v56 }
 0x73b   : > { %vm993_vm0 = vmor %vm991_vm15, %vm992_vm14 }
 0x73c   : > { %v988_v59 = vsub.f32 1.0, %v987_v58 }
 0x73e   : > { %v989_v60 = vmul.f32 %v2132_v56, %v988_v59 }
 0x740   : > { %v990_v61 = vadd.f32 %v2132_v56, %v989_v60 }
 0x742   : > { %v994_v0 = vsel %vm993_vm0, %v2132_v56, %v990_v61 }
 0x743   : > { %v999_v6 = vsel %vm996_vm1, %v998_v2, %v994_v0 }
 0x798   : > { %v1003_v5 = vpop.permute.xlu1 %1002 }
 0x799   : > { %v1005_v8 = vmul.f32 %v1003_v5, %v999_v6 }
 0x79b   : > { %1007 = vrot.lane.b32.xlu2 %v1005_v8, %s2285_s23 }
 0x7f5   : > { %v1008_v9 = vpop.permute.xlu2 %1007 }
 0x7f6   : > { %v1010_v11 = vadd.f32 %v1946_v49, %v1008_v9  ;;  %v1119_v49 = vsel %vm1118_vm10, 1, %v2288_v53 }
 0x7f8   : > { %2133 = vtanh.f32 %v1010_v11  ;;  %v1144_v11 = vld [vmem:[%s1143_s10] sm:$0xff]  ;;  %s1695_s10 = scalar_lea.vmem [#allocation2], %s2043_s18 }
 0x7fe   : > { %v2134_v12 = vpop.eup %2133 }
 0x7ff   : > { %1013 = vrot.lane.b32.xlu0 %v2134_v12, %s2285_s23 }
 0x807   : > { %1032 = vperm.xlu0 %2114, %v1030_v4  }
 0x871   : > { %v1014_v7 = vpop.permute.xlu0 %1013 }
 0x872   : > { %v1016_v10 = vsub.f32 %v954_v42, %v1014_v7 }
 0x874   : > { %1018 = vrot.lane.b32.xlu1 %v1016_v10, %s2287_s8 }
 0x879   : > { %v1033_v16 = vpop.permute.xlu0 %1032 }
 0x87a   : > { %vm1034_vm3 = vcmp.eq.s32.totalorder %v1033_v16, 1 }
 0x87c   : > { %1036 = vrot.lane.b32.xlu1 %v954_v42, %s2285_s23 }
 0x8e6   : > { %v1019_v13 = vpop.permute.xlu1 %1018 }
 0x8e7   : > { %v1021_v14 = vmul.f32 %v1019_v13, %v999_v6 }
 0x8e9   : > { %1023 = vrot.lane.b32.xlu2 %v1021_v14, %s2287_s8 }
 0x8ee   : > { %v1037_v22 = vpop.permute.xlu1 %1036 }
 0x943   : > { %v1024_v19 = vpop.permute.xlu2 %1023 }
 0x944   : > { %v1026_v15 = vadd.f32 %v2134_v12, %v1024_v19 }
 0x946   : > { %v1039_v17 = vsel %vm1034_vm3, %v1026_v15, %v1037_v22 }
 0x947   : > { %1041 = vrot.lane.b32.xlu2 %v1039_v17, %s2285_s23 }
 0x9a1   : > { %v1042_v18 = vpop.permute.xlu2 %1041 }
 0x9a2   : > { %v1044_v20 = vsel %vm863_vm6, %v1042_v18, 0.0  ;;  %v1956_v21 = vpack.c.bf16 %v1042_v18, %v1042_v18 }
 0x9a3   : > { %v1045_v23 = vsel %vm1034_vm3, %v1044_v20, 0.0 }
 0x9a4   : > { %v1046_v24 = vpack.c.bf16 %v1045_v23, %v1045_v23  ;;  %1957 = vmatmul.msk.bf16.vlgmr.msrb.gmra.mxu3 %vm2623_vm7, %v1956_v21 }
 0x9a6   : > { %1051 = vst [vmem:[%s1050_s22] sm:$0xf] %v1046_v24  ;;  %s1228_s22 = scalar_lea.vmem %s2628_s19, %s1965_s20 [#allocation8]  ;;  %s1321_s20 = sadd.s32 6, %s1320_s13 }
 0xa27   : > { %v1066_v25 = vpop.f32.mrf.mxu3 }
 0xa28   : > { %v1067_v26 = vadd.f32 %v2594_v54, %v1066_v25 }
 0xa2a   : > { %1091 = vrot.lane.b32.xlu1 %v1067_v26, %s2285_s23  ;;  %v1070_v29 = vadd.f32 %v1954_v28, %v1067_v26 }
 0xa2c   : > { %v1958_v30 = vmul.f32 -1.442695, %v1070_v29 }
 0xa2e   : > { %2135 = vpow2.f32 %v1958_v30 }
 0xa2f   : > { %v1068_v27 = vpop.f32.mrf.mxu3 }
 0xa30   : > { %v1206_v27 = vstv %s1141_s17 }
 0xa31   : > { %vm1207_vm0 = vcmp.gt.s32.totalorder %v2612_v57, %v1206_v27 }
 0xa34   : > { %v2136_v31 = vpop.eup %2135 }
 0xa35   : > { %v1074_v32 = vadd.f32 1.0, %v2136_v31 }
 0xa37   : > { %2137 = vrcp.f32 %v1074_v32  ;;  %v1086_v38 = vand.u32 2147483648, %v1074_v32  ;;  %vm1080_vm5 = vweird.f32 %v1074_v32  ;;  %v1084_v39 = vand.u32 2147483647, %v1074_v32 }
 0xa39   : > { %v1087_v41 = vor.u32 1.1754944e-38, %v1086_v38  ;;  %vm1085_vm9 = vcmp.eq.f32.partialorder %v1084_v39, 8.507059e+37 }
 0xa3d   : > { %v2138_v33 = vpop.eup %2137 }
 0xa3e   : > { %v1076_v34 = vmul.f32 %v2138_v33, %v1074_v32  ;;  %vm1081_vm4 = vweird.f32 %v2138_v33 }
 0xa3f   : > { %vm1082_vm8 = vmor %vm1080_vm5, %vm1081_vm4 }
 0xa40   : > { %v1077_v35 = vsub.f32 1.0, %v1076_v34 }
 0xa42   : > { %v1078_v36 = vmul.f32 %v2138_v33, %v1077_v35 }
 0xa44   : > { %v1079_v37 = vadd.f32 %v2138_v33, %v1078_v36 }
 0xa46   : > { %v1083_v40 = vsel %vm1082_vm8, %v2138_v33, %v1079_v37 }
 0xa47   : > { %v1088_v43 = vsel %vm1085_vm9, %v1087_v41, %v1083_v40 }
 0xa9c   : > { %v1092_v42 = vpop.permute.xlu1 %1091 }
 0xa9d   : > { %v1094_v44 = vmul.f32 %v1092_v42, %v1088_v43 }
 0xa9f   : > { %1096 = vrot.lane.b32.xlu2 %v1094_v44, %s2285_s23 }
 0xaf9   : > { %v1097_v45 = vpop.permute.xlu2 %1096 }
 0xafa   : > { %v1099_v46 = vadd.f32 %v1954_v28, %v1097_v45  ;;  %v1208_v28 = vsel %vm1207_vm0, 1, %v2288_v53 }
 0xafc   : > { %2139 = vtanh.f32 %v1099_v46  ;;  %v1968_v46 = vld [vmem:[%s1689_s11 + $0x28] sm:$0xff] }
 0xb02   : > { %v2140_v47 = vpop.eup %2139 }
 0xb03   : > { %1102 = vrot.lane.b32.xlu0 %v2140_v47, %s2285_s23 }
 0xb0b   : > { %1121 = vperm.xlu0 %2114, %v1119_v49  }
 0xb75   : > { %v1103_v50 = vpop.permute.xlu0 %1102 }
 0xb76   : > { %v1105_v51 = vsub.f32 %v1044_v20, %v1103_v50 }
 0xb78   : > { %1107 = vrot.lane.b32.xlu1 %v1105_v51, %s2287_s8 }
 0xb7d   : > { %v1122_v56 = vpop.permute.xlu0 %1121 }
 0xb7e   : > { %vm1123_vm11 = vcmp.eq.s32.totalorder %v1122_v56, 1 }
 0xb80   : > { %1125 = vrot.lane.b32.xlu1 %v1044_v20, %s2285_s23 }
 0xbea   : > { %v1108_v52 = vpop.permute.xlu1 %1107 }
 0xbeb   : > { %v1110_v55 = vmul.f32 %v1108_v52, %v1088_v43 }
 0xbed   : > { %1112 = vrot.lane.b32.xlu2 %v1110_v55, %s2287_s8 }
 0xbf2   : > { %v1126_v60 = vpop.permute.xlu1 %1125 }
 0xc47   : > { %v1113_v58 = vpop.permute.xlu2 %1112 }
 0xc48   : > { %v1115_v59 = vadd.f32 %v2140_v47, %v1113_v58 }
 0xc4a   : > { %v1128_v61 = vsel %vm1123_vm11, %v1115_v59, %v1126_v60 }
 0xc4b   : > { %1130 = vrot.lane.b32.xlu2 %v1128_v61, %s2285_s23 }
 0xca5   : > { %v1131_v62 = vpop.permute.xlu2 %1130 }
 0xca6   : > { %v1133_v63 = vsel %vm863_vm6, %v1131_v62, 0.0  ;;  %v1962_v0 = vpack.c.bf16 %v1131_v62, %v1131_v62 }
 0xca7   : > { %v1134_v2 = vsel %vm1123_vm11, %v1133_v63, 0.0 }
 0xca8   : > { %v1135_v5 = vpack.c.bf16 %v1134_v2, %v1134_v2  ;;  %1963 = vmatmul.msk.bf16.vlgmr.msrb.gmra.mxu0 %vm2623_vm7, %v1962_v0 }
 0xcaa   : > { %1140 = vst [vmem:[%s1139_s16] sm:$0xf] %v1135_v5  ;;  %s1973_s16 = sshll.u32 %s1315_s9, 2 }
 0xcab   : > { %s1318_s17 = scalar_lea.vmem %s2628_s19, %s1973_s16 [#allocation8] }
 0xd25   : > { %v1155_v6 = vpop.f32.mrf.mxu0 }
 0xd26   : > { %v1156_v8 = vadd.f32 %v2594_v54, %v1155_v6 }
 0xd28   : > { %1180 = vrot.lane.b32.xlu0 %v1156_v8, %s2285_s23  ;;  %v1159_v12 = vadd.f32 %v1156_v8, %v1144_v11 }
 0xd2a   : > { %v1964_v1 = vmul.f32 -1.442695, %v1159_v12 }
 0xd2c   : > { %2141 = vpow2.f32 %v1964_v1 }
 0xd2d   : > { %v1157_v9 = vpop.f32.mrf.mxu0 }
 0xd2e   : > { %v1296_v9 = vstv %s1231_s15  ;;  %s2044_s15 = smul.u32 4294967240, %s2272_s27 }
 0xd2f   : > { %vm1297_vm8 = vcmp.gt.s32.totalorder %v2612_v57, %v1296_v9 }
 0xd30   : > { %s1701_s24 = scalar_lea.vmem [#allocation2], %s2044_s15  ;;  %s2039_s16 = sadd.s32 56, %s2044_s15 }
 0xd32   : > { %v2142_v4 = vpop.eup %2141 }
 0xd33   : > { %v1163_v7 = vadd.f32 1.0, %v2142_v4 }
 0xd35   : > { %2143 = vrcp.f32 %v1163_v7  ;;  %v1175_v15 = vand.u32 2147483648, %v1163_v7  ;;  %vm1169_vm13 = vweird.f32 %v1163_v7  ;;  %v1173_v22 = vand.u32 2147483647, %v1163_v7 }
 0xd37   : > { %v1176_v18 = vor.u32 1.1754944e-38, %v1175_v15  ;;  %vm1174_vm15 = vcmp.eq.f32.partialorder %v1173_v22, 8.507059e+37 }
 0xd3b   : > { %v2144_v10 = vpop.eup %2143 }
 0xd3c   : > { %v1165_v13 = vmul.f32 %v2144_v10, %v1163_v7  ;;  %vm1170_vm12 = vweird.f32 %v2144_v10 }
 0xd3d   : > { %vm1171_vm14 = vmor %vm1169_vm13, %vm1170_vm12 }
 0xd3e   : > { %v1166_v14 = vsub.f32 1.0, %v1165_v13 }
 0xd40   : > { %v1167_v16 = vmul.f32 %v2144_v10, %v1166_v14 }
 0xd42   : > { %v1168_v19 = vadd.f32 %v2144_v10, %v1167_v16 }
 0xd44   : > { %v1172_v17 = vsel %vm1171_vm14, %v2144_v10, %v1168_v19 }
 0xd45   : > { %v1177_v21 = vsel %vm1174_vm15, %v1176_v18, %v1172_v17 }
 0xd9a   : > { %v1181_v20 = vpop.permute.xlu0 %1180 }
 0xd9b   : > { %v1183_v23 = vmul.f32 %v1181_v20, %v1177_v21 }
 0xd9d   : > { %1185 = vrot.lane.b32.xlu1 %v1183_v23, %s2285_s23 }
 0xe0f   : > { %v1186_v24 = vpop.permute.xlu1 %1185 }
 0xe10   : > { %v1188_v25 = vadd.f32 %v1186_v24, %v1144_v11  ;;  %v1298_v11 = vsel %vm1297_vm8, 1, %v2288_v53 }
 0xe12   : > { %2145 = vtanh.f32 %v1188_v25  ;;  %v1976_v25 = vld [vmem:[%s1695_s10 + $0x30] sm:$0xff] }
 0xe18   : > { %v2146_v26 = vpop.eup %2145 }
 0xe19   : > { %1191 = vrot.lane.b32.xlu2 %v2146_v26, %s2285_s23 }
 0xe21   : > { %1210 = vperm.xlu2 %2112, %v1208_v28  }
 0xe73   : > { %v1192_v29 = vpop.permute.xlu2 %1191 }
 0xe74   : > { %v1194_v30 = vsub.f32 %v1133_v63, %v1192_v29 }
 0xe76   : > { %1196 = vrot.lane.b32.xlu0 %v1194_v30, %s2287_s8 }
 0xe7b   : > { %v1211_v33 = vpop.permute.xlu2 %1210 }
 0xe7c   : > { %vm1212_vm1 = vcmp.eq.s32.totalorder %v1211_v33, 1 }
 0xe7e   : > { %1214 = vrot.lane.b32.xlu0 %v1133_v63, %s2285_s23 }
 0xee8   : > { %v1197_v31 = vpop.permute.xlu0 %1196 }
 0xee9   : > { %v1199_v32 = vmul.f32 %v1197_v31, %v1177_v21 }
 0xeeb   : > { %1201 = vrot.lane.b32.xlu1 %v1199_v32, %s2287_s8 }
 0xef0   : > { %v1215_v36 = vpop.permute.xlu0 %1214 }
 0xf5d   : > { %v1202_v34 = vpop.permute.xlu1 %1201 }
 0xf5e   : > { %v1204_v35 = vadd.f32 %v2146_v26, %v1202_v34 }
 0xf60   : > { %v1217_v37 = vsel %vm1212_vm1, %v1204_v35, %v1215_v36 }
 0xf61   : > { %1219 = vrot.lane.b32.xlu1 %v1217_v37, %s2285_s23 }
 0xfd3   : > { %v1220_v38 = vpop.permute.xlu1 %1219 }
 0xfd4   : > { %v1222_v39 = vsel %vm863_vm6, %v1220_v38, 0.0  ;;  %v1970_v40 = vpack.c.bf16 %v1220_v38, %v1220_v38 }
 0xfd5   : > { %v1223_v41 = vsel %vm1212_vm1, %v1222_v39, 0.0 }
 0xfd6   : > { %v1224_v42 = vpack.c.bf16 %v1223_v41, %v1223_v41  ;;  %1971 = vmatmul.msk.bf16.vlgmr.msrb.gmra.mxu1 %vm2623_vm7, %v1970_v40 }
 0xfd8   : > { %1229 = vst [vmem:[%s1228_s22] sm:$0xf] %v1224_v42  ;;  %s2037_s22 = sadd.s32 48, %s2043_s18  ;;  %s1805_s18 = sshll.u32 %s2450_s12, 3 }
 0xfd9   : > { %s1405_s21 = sshra.s32 %s2037_s22, 3  ;;  %s455_s22 = scalar_lea.vmem %s2825_s7, %s1805_s18 }
 0xfda   : > { %s1981_s11 = sshll.u32 %s1405_s21, 2  ;;  %s1991_s12 = sshll.u32 (%p2379_p9), %s2272_s27, 2 }
 0xfdb   : > { %s1408_s30 = scalar_lea.vmem %s2628_s19, %s1981_s11 [#allocation8]  ;;  %s1524_s11 = scalar_lea.vmem (%p2379_p9), %s2824_s6, %s1991_s12 }
0x1053   : > { %v1245_v43 = vpop.f32.mrf.mxu1 }
0x1054   : > { %v1246_v44 = vadd.f32 %v2594_v54, %v1245_v43 }
0x1056   : > { %1270 = vrot.lane.b32.xlu2 %v1246_v44, %s2285_s23  ;;  %v1249_v47 = vadd.f32 %v1968_v46, %v1246_v44  ;;  %v1386_v44 = vstv %s1321_s20 }
0x1057   : > { %vm1387_vm14 = vcmp.gt.s32.totalorder %v2612_v57, %v1386_v44 }
0x1058   : > { %v1972_v48 = vmul.f32 -1.442695, %v1249_v47 }
0x105a   : > { %2147 = vpow2.f32 %v1972_v48 }
0x105b   : > { %v1247_v45 = vpop.f32.mrf.mxu1 }
0x105c   : > { %v1388_v45 = vsel %vm1387_vm14, 1, %v2288_v53 }
0x1060   : > { %v2148_v49 = vpop.eup %2147 }
0x1061   : > { %v1253_v50 = vadd.f32 1.0, %v2148_v49 }
0x1063   : > { %2149 = vrcp.f32 %v1253_v50  ;;  %v1265_v59 = vand.u32 2147483648, %v1253_v50  ;;  %vm1259_vm3 = vweird.f32 %v1253_v50  ;;  %v1263_v60 = vand.u32 2147483647, %v1253_v50 }
0x1065   : > { %v1266_v62 = vor.u32 1.1754944e-38, %v1265_v59  ;;  %vm1264_vm5 = vcmp.eq.f32.partialorder %v1263_v60, 8.507059e+37 }
0x1069   : > { %v2150_v51 = vpop.eup %2149 }
0x106a   : > { %v1255_v52 = vmul.f32 %v2150_v51, %v1253_v50  ;;  %vm1260_vm2 = vweird.f32 %v2150_v51 }
0x106b   : > { %vm1261_vm4 = vmor %vm1259_vm3, %vm1260_vm2 }
0x106c   : > { %v1256_v55 = vsub.f32 1.0, %v1255_v52 }
0x106e   : > { %v1257_v56 = vmul.f32 %v2150_v51, %v1256_v55 }
0x1070   : > { %v1258_v58 = vadd.f32 %v2150_v51, %v1257_v56 }
0x1072   : > { %v1262_v61 = vsel %vm1261_vm4, %v2150_v51, %v1258_v58 }
0x1073   : > { %v1267_v0 = vsel %vm1264_vm5, %v1266_v62, %v1262_v61 }
0x10b0   : > { %v1271_v63 = vpop.permute.xlu2 %1270 }
0x10b1   : > { %v1273_v2 = vmul.f32 %v1271_v63, %v1267_v0 }
0x10b3   : > { %1275 = vrot.lane.b32.xlu0 %v1273_v2, %s2285_s23 }
0x1125   : > { %v1276_v5 = vpop.permute.xlu0 %1275 }
0x1126   : > { %v1278_v6 = vadd.f32 %v1968_v46, %v1276_v5 }
0x1128   : > { %2151 = vtanh.f32 %v1278_v6  ;;  %v1984_v6 = vld [vmem:[%s1701_s24 + $0x38] sm:$0xff] }
0x112e   : > { %v2152_v8 = vpop.eup %2151 }
0x112f   : > { %1281 = vrot.lane.b32.xlu1 %v2152_v8, %s2285_s23 }
0x1137   : > { %1300 = vperm.xlu1 %2113, %v1298_v11  }
0x11a1   : > { %v1282_v12 = vpop.permute.xlu1 %1281 }
0x11a2   : > { %v1284_v1 = vsub.f32 %v1222_v39, %v1282_v12 }
0x11a4   : > { %1286 = vrot.lane.b32.xlu2 %v1284_v1, %s2287_s8 }
0x11a9   : > { %v1301_v10 = vpop.permute.xlu1 %1300 }
0x11aa   : > { %vm1302_vm9 = vcmp.eq.s32.totalorder %v1301_v10, 1 }
0x11ac   : > { %1304 = vrot.lane.b32.xlu2 %v1222_v39, %s2285_s23 }
0x11fe   : > { %v1287_v4 = vpop.permute.xlu2 %1286 }
0x11ff   : > { %v1289_v7 = vmul.f32 %v1287_v4, %v1267_v0  ;;  %v2165_v0 = vld [vmem:[%s2512_s2] ss:$0 sm:$0xff]  ;;  %s1410_s2 = smul.u32 4294967289, %s2272_s27 }
0x1201   : > { %1291 = vrot.lane.b32.xlu0 %v1289_v7, %s2287_s8  ;;  %s1411_s9 = sadd.s32 7, %s1410_s2 }
0x1206   : > { %v1305_v16 = vpop.permute.xlu2 %1304 }
0x1273   : > { %v1292_v13 = vpop.permute.xlu0 %1291 }
0x1274   : > { %v1294_v14 = vadd.f32 %v2152_v8, %v1292_v13 }
0x1276   : > { %v1307_v19 = vsel %vm1302_vm9, %v1294_v14, %v1305_v16 }
0x1277   : > { %1309 = vrot.lane.b32.xlu0 %v1307_v19, %s2285_s23 }
0x12e9   : > { %v1310_v15 = vpop.permute.xlu0 %1309 }
0x12ea   : > { %v1312_v22 = vsel %vm863_vm6, %v1310_v15, 0.0  ;;  %v1978_v17 = vpack.c.bf16 %v1310_v15, %v1310_v15 }
0x12eb   : > { %v1313_v18 = vsel %vm1302_vm9, %v1312_v22, 0.0 }
0x12ec   : > { %v1314_v20 = vpack.c.bf16 %v1313_v18, %v1313_v18  ;;  %1979 = vmatmul.msk.bf16.vlgmr.msra.gmra.mxu2 %vm2623_vm7, %v1978_v17 }
0x12ee   : > { %1319 = vst [vmem:[%s1318_s17] sm:$0xf] %v1314_v20  ;;  %s1495_s17 = sshra.s32 %s2039_s16, 3 }
0x12ef   : > { %s1989_s10 = sshll.u32 %s1495_s17, 2 }
0x136f   : > { %v1335_v21 = vpop.f32.mrf.mxu2 }
0x1370   : > { %v1336_v23 = vadd.f32 %v2594_v54, %v1335_v21 }
0x1372   : > { %1360 = vrot.lane.b32.xlu1 %v1336_v23, %s2285_s23  ;;  %v1339_v26 = vadd.f32 %v1976_v25, %v1336_v23  ;;  %v1476_v23 = vstv %s1411_s9 }
0x1373   : > { %vm1477_vm3 = vcmp.gt.s32.totalorder %v2612_v57, %v1476_v23 }
0x1374   : > { %v1980_v27 = vmul.f32 -1.442695, %v1339_v26 }
0x1376   : > { %2153 = vpow2.f32 %v1980_v27 }
0x1377   : > { %v1337_v24 = vpop.f32.mrf.mxu2 }
0x1378   : > { %v1478_v24 = vsel %vm1477_vm3, 1, %v2288_v53 }
0x137c   : > { %v2154_v28 = vpop.eup %2153 }
0x137d   : > { %v1343_v29 = vadd.f32 1.0, %v2154_v28 }
0x137f   : > { %2155 = vrcp.f32 %v1343_v29  ;;  %v1355_v54 = vand.u32 2147483648, %v1343_v29  ;;  %vm1349_vm11 = vweird.f32 %v1343_v29  ;;  %v1353_v35 = vand.u32 2147483647, %v1343_v29 }
0x1381   : > { %v1356_v37 = vor.u32 1.1754944e-38, %v1355_v54  ;;  %vm1354_vm13 = vcmp.eq.f32.partialorder %v1353_v35, 8.507059e+37 }
0x1385   : > { %v2156_v30 = vpop.eup %2155 }
0x1386   : > { %v1345_v31 = vmul.f32 %v2156_v30, %v1343_v29  ;;  %vm1350_vm10 = vweird.f32 %v2156_v30 }
0x1387   : > { %vm1351_vm12 = vmor %vm1349_vm11, %vm1350_vm10 }
0x1388   : > { %v1346_v32 = vsub.f32 1.0, %v1345_v31 }
0x138a   : > { %v1347_v33 = vmul.f32 %v2156_v30, %v1346_v32 }
0x138c   : > { %v1348_v34 = vadd.f32 %v2156_v30, %v1347_v33 }
0x138e   : > { %v1352_v36 = vsel %vm1351_vm12, %v2156_v30, %v1348_v34 }
0x138f   : > { %v1357_v39 = vsel %vm1354_vm13, %v1356_v37, %v1352_v36 }
0x13e4   : > { %v1361_v38 = vpop.permute.xlu1 %1360 }
0x13e5   : > { %v1363_v40 = vmul.f32 %v1361_v38, %v1357_v39 }
0x13e7   : > { %1365 = vrot.lane.b32.xlu2 %v1363_v40, %s2285_s23 }
0x1441   : > { %v1366_v41 = vpop.permute.xlu2 %1365 }
0x1442   : > { %v1368_v42 = vadd.f32 %v1976_v25, %v1366_v41 }
0x1444   : > { %2157 = vtanh.f32 %v1368_v42 }
0x144a   : > { %v2158_v43 = vpop.eup %2157 }
0x144b   : > { %1371 = vrot.lane.b32.xlu0 %v2158_v43, %s2285_s23 }
0x1453   : > { %1390 = vperm.xlu0 %2114, %v1388_v45  }
0x14bd   : > { %v1372_v46 = vpop.permute.xlu0 %1371 }
0x14be   : > { %v1374_v47 = vsub.f32 %v1312_v22, %v1372_v46 }
0x14c0   : > { %1376 = vrot.lane.b32.xlu1 %v1374_v47, %s2287_s8 }
0x14c5   : > { %v1391_v50 = vpop.permute.xlu0 %1390 }
0x14c6   : > { %vm1392_vm15 = vcmp.eq.s32.totalorder %v1391_v50, 1 }
0x14c8   : > { %1394 = vrot.lane.b32.xlu1 %v1312_v22, %s2285_s23 }
0x1532   : > { %v1377_v48 = vpop.permute.xlu1 %1376 }
0x1533   : > { %v1379_v49 = vmul.f32 %v1377_v48, %v1357_v39 }
0x1535   : > { %1381 = vrot.lane.b32.xlu2 %v1379_v49, %s2287_s8 }
0x153a   : > { %v1395_v55 = vpop.permute.xlu1 %1394 }
0x158f   : > { %v1382_v51 = vpop.permute.xlu2 %1381 }
0x1590   : > { %v1384_v52 = vadd.f32 %v2158_v43, %v1382_v51 }
0x1592   : > { %v1397_v56 = vsel %vm1392_vm15, %v1384_v52, %v1395_v55 }
0x1593   : > { %1399 = vrot.lane.b32.xlu2 %v1397_v56, %s2285_s23 }
0x15ed   : > { %v1400_v58 = vpop.permute.xlu2 %1399 }
0x15ee   : > { %v1402_v59 = vsel %vm863_vm6, %v1400_v58, 0.0  ;;  %v1986_v60 = vpack.c.bf16 %v1400_v58, %v1400_v58 }
0x15ef   : > { %v1403_v61 = vsel %vm1392_vm15, %v1402_v59, 0.0 }
0x15f0   : > { %v1404_v62 = vpack.c.bf16 %v1403_v61, %v1403_v61  ;;  %1987 = vmatmul.msk.bf16.vlgmr.msra.gmra.mxu3 %vm2623_vm7, %v1986_v60 }
0x15f2   : > { %1409 = vst [vmem:[%s1408_s30] sm:$0xf] %v1404_v62 }
0x1673   : > { %v1425_v63 = vpop.f32.mrf.mxu3 }
0x1674   : > { %v1426_v2 = vadd.f32 %v2165_v0, %v1425_v63 }
0x1676   : > { %1450 = vrot.lane.b32.xlu0 %v1426_v2, %s2285_s23  ;;  %v1429_v8 = vadd.f32 %v1984_v6, %v1426_v2 }
0x1678   : > { %v1988_v9 = vmul.f32 -1.442695, %v1429_v8 }
0x167a   : > { %2159 = vpow2.f32 %v1988_v9 }
0x167b   : > { %v1427_v5 = vpop.f32.mrf.mxu3 }
0x1680   : > { %v2160_v11 = vpop.eup %2159 }
0x1681   : > { %v1433_v12 = vadd.f32 1.0, %v2160_v11 }
0x1683   : > { %2161 = vrcp.f32 %v1433_v12  ;;  %v1445_v13 = vand.u32 2147483648, %v1433_v12  ;;  %vm1439_vm0 = vweird.f32 %v1433_v12  ;;  %v1443_v14 = vand.u32 2147483647, %v1433_v12 }
0x1685   : > { %v1446_v19 = vor.u32 1.1754944e-38, %v1445_v13  ;;  %vm1444_vm2 = vcmp.eq.f32.partialorder %v1443_v14, 8.507059e+37 }
0x1689   : > { %v2162_v1 = vpop.eup %2161 }
0x168a   : > { %v1435_v3 = vmul.f32 %v2162_v1, %v1433_v12  ;;  %vm1440_vm7 = vweird.f32 %v2162_v1 }
0x168b   : > { %vm1441_vm1 = vmor %vm1439_vm0, %vm1440_vm7 }
0x168c   : > { %v1436_v4 = vsub.f32 1.0, %v1435_v3 }
0x168e   : > { %v1437_v7 = vmul.f32 %v2162_v1, %v1436_v4 }
0x1690   : > { %v1438_v10 = vadd.f32 %v2162_v1, %v1437_v7 }
0x1692   : > { %v1442_v16 = vsel %vm1441_vm1, %v2162_v1, %v1438_v10 }
0x1693   : > { %v1447_v22 = vsel %vm1444_vm2, %v1446_v19, %v1442_v16 }
0x16e8   : > { %v1451_v15 = vpop.permute.xlu0 %1450 }
0x16e9   : > { %v1453_v17 = vmul.f32 %v1451_v15, %v1447_v22 }
0x16eb   : > { %1455 = vrot.lane.b32.xlu1 %v1453_v17, %s2285_s23 }
0x175d   : > { %v1456_v18 = vpop.permute.xlu1 %1455 }
0x175e   : > { %v1458_v20 = vadd.f32 %v1984_v6, %v1456_v18 }
0x1760   : > { %2163 = vtanh.f32 %v1458_v20 }
0x1766   : > { %v2164_v21 = vpop.eup %2163 }
0x1767   : > { %1461 = vrot.lane.b32.xlu2 %v2164_v21, %s2285_s23 }
0x176f   : > { %1480 = vperm.xlu2 %2112, %v1478_v24  }
0x17c1   : > { %v1462_v25 = vpop.permute.xlu2 %1461 }
0x17c2   : > { %v1464_v26 = vsub.f32 %v1402_v59, %v1462_v25 }
0x17c4   : > { %1466 = vrot.lane.b32.xlu0 %v1464_v26, %s2287_s8 }
0x17c9   : > { %v1481_v29 = vpop.permute.xlu2 %1480 }
0x17ca   : > { %vm1482_vm4 = vcmp.eq.s32.totalorder %v1481_v29, 1 }
0x17cc   : > { %1484 = vrot.lane.b32.xlu0 %v1402_v59, %s2285_s23 }
0x1836   : > { %v1467_v27 = vpop.permute.xlu0 %1466 }
0x1837   : > { %v1469_v28 = vmul.f32 %v1467_v27, %v1447_v22 }
0x1839   : > { %1471 = vrot.lane.b32.xlu1 %v1469_v28, %s2287_s8  ;;  %s1498_s8 = scalar_lea.vmem %s2628_s19, %s1989_s10 [#allocation8] }
0x183e   : > { %v1485_v57 = vpop.permute.xlu0 %1484 }
0x18ab   : > { %v1472_v30 = vpop.permute.xlu1 %1471 }
0x18ac   : > { %v1474_v31 = vadd.f32 %v2164_v21, %v1472_v30 }
0x18ae   : > { %v1487_v53 = vsel %vm1482_vm4, %v1474_v31, %v1485_v57 }
0x18af   : > { %1489 = vrot.lane.b32.xlu1 %v1487_v53, %s2285_s23 }
0x1921   : > { %v1490_v32 = vpop.permute.xlu1 %1489 }
0x1922   : > { %v1492_v33 = vsel %vm863_vm6, %v1490_v32, 0.0  ;;  %1515 = sbr.rel (!%p2379_p9) target bundleno = 6454 (0x1936), region = 64 }
0x1923   : > { %v1493_v34 = vsel %vm1482_vm4, %v1492_v33, 0.0  ;;  %1504 = vst [vmem:[%s455_s22] sm:$0xff] %v1492_v33 }
0x1924   : > { %v1494_v54 = vpack.c.bf16 %v1493_v34, %v1493_v34 }
0x1926   : > { %1499 = vst [vmem:[%s1498_s8] sm:$0xf] %v1494_v54 }
0x192d   : > { %v1541_v35 = vld [vmem:[%s2628_s19] sm:$0xf]  ;;  %v1543_v36 = vld [vmem:[%s2628_s19 + $0x4] sm:$0xf]  ;;  %v1545_v37 = vld [vmem:[%s2628_s19 + $0x8] sm:$0xf] }
0x192e   : > { %1542 = vst [vmem:[%s1524_s11] sm:$0xf] %v1541_v35  ;;  %v1547_v38 = vld [vmem:[%s2628_s19 + $0xc] sm:$0xf]  ;;  %v1549_v39 = vld [vmem:[%s2628_s19 + $0x10] sm:$0xf] }
0x192f   : > { %1544 = vst [vmem:[%s1524_s11 + $0x8] sm:$0xf] %v1543_v36  ;;  %v1551_v40 = vld [vmem:[%s2628_s19 + $0x14] sm:$0xf]  ;;  %v1553_v41 = vld [vmem:[%s2628_s19 + $0x18] sm:$0xf] }
0x1930   : > { %1546 = vst [vmem:[%s1524_s11 + $0x10] sm:$0xf] %v1545_v37  ;;  %v1555_v42 = vld [vmem:[%s2628_s19 + $0x1c] sm:$0xf] }
0x1931   : > { %1548 = vst [vmem:[%s1524_s11 + $0x18] sm:$0xf] %v1547_v38 }
0x1932   : > { %1550 = vst [vmem:[%s1524_s11 + $0x20] sm:$0xf] %v1549_v39 }
0x1933   : > { %1552 = vst [vmem:[%s1524_s11 + $0x28] sm:$0xf] %v1551_v40 }
0x1934   : > { %1554 = vst [vmem:[%s1524_s11 + $0x30] sm:$0xf] %v1553_v41 }
0x1935   : > { %1556 = vst [vmem:[%s1524_s11 + $0x38] sm:$0xf] %v1555_v42 }
0x1936 PF: > { %s24_s29 = sadd.s32 1, %s2280_s29   ;;  %s2837_s27 = sld [smem:[#allocation12_spill]] }
0x1937   : > { %p21_p2 = scmp.ge.s32.totalorder %s24_s29, 4   ;;  %s2838_s14 = sld [smem:[#allocation11_spill]] }
0x1938   : > { %s2839_s24 = smov %s2264_s25  ;;  %s2840_s25 = smov %s2268_s26 }
0x1939   :  { %23 = sbr.rel (!%p21_p2) target bundleno = 8 (0x8), region = 183 }
0x193c   : > { %s2841_s26 = smov %s2837_s27  ;;  %s2842_s27 = smov %s2276_s28 }
0x193d   : > { %s2843_s28 = smov %s2838_s14 }
0x193e   :  { %1616 = vsyncpa [#allocation5], 1 }
0x193f   :  { %1618 = vsyncpa [#allocation5 + $0x1], 1 }
0x1940   :  { %1619 = vsyncpa [#allocation7], 1 }
0x1941   :  { %1621 = vsyncpa [#allocation7 + $0x1], 1 }

</bundles_post_ra>
